<compile_context>
chip_gen: v6e
topology: v6e:2x2x1
jax: 0.10.0
libtpu: 0.0.40
codegen_flags: <defaults>
</compile_context>

<pallas_src>
import functools

import jax
import jax.numpy as jnp
from jax.experimental import pallas as pl
from jax.experimental.pallas import tpu as pltpu

_NEG_INF = -1e30          # large finite negative: safe even for fully-masked rows
_LN_EPS = 1e-5            # torch.nn.LayerNorm default


# ------------------------- in-kernel helpers -------------------------------

def _layernorm(v, g, b):
    mu = jnp.mean(v, axis=-1, keepdims=True)
    var = jnp.mean(jnp.square(v - mu), axis=-1, keepdims=True)
    return (v - mu) * jax.lax.rsqrt(var + _LN_EPS) * g + b


def _split_heads(flat, n_heads):
    """(L, H*w) with head-major column blocks -> (H, L, w).

    Implemented as static lane slices + stack along a new leading axis
    (pure layout glue: no matmul, no broadcast of activations)."""
    L, Dw = flat.shape
    w = Dw // n_heads
    return jnp.stack([flat[:, h * w:(h + 1) * w] for h in range(n_heads)], axis=0)


def _attend(q3, k3, v3, wo, mask, cd):
    """q3: (H, Lq, hd), k3/v3: (H, Lk, hd), all in compute dtype (QK scale is
    folded into the Q weights).  wo: (H*hd, D).  Returns (Lq, D) fp32.
    Output projection is ONE (Lq, H*hd) @ (H*hd, D) matmul."""
    H, Lq, hd = q3.shape
    s = jnp.einsum('hid,hjd->hij', q3, k3,
                   preferred_element_type=jnp.float32)          # (H, Lq, Lk) fp32
    if mask is not None:
        s = jnp.where(mask, _NEG_INF, s)
    s = s - jnp.max(s, axis=-1, keepdims=True)
    p = jnp.exp(s)
    p = p * pl.reciprocal(jnp.sum(p, axis=-1, keepdims=True), approx=True)
    o = jnp.einsum('hij,hjd->hid', p.astype(cd), v3,
                   preferred_element_type=jnp.float32).astype(cd)   # (H, Lq, hd)
    o_flat = jnp.concatenate([o[h] for h in range(H)], axis=-1)     # (Lq, H*hd)
    return jnp.dot(o_flat, wo, preferred_element_type=jnp.float32)  # (Lq, D) fp32


def _project(x_f32, w_ref, cd):
    """(L, D) fp32 activation  x  resident weight -> compute-dtype result
    (single big-N matmul, fp32 accumulation, one cast)."""
    return jnp.dot(x_f32.astype(cd), w_ref[...],
                   preferred_element_type=jnp.float32).astype(cd)


# ------------------------------- kernels -------------------------------------

def _decoder_kernel_cross(xf_ref, kvm_ref,
                          wq1_ref, wkv1_ref, wo1_ref,
                          wq2_ref, wkv2_ref, wo2_ref,
                          w1_ref, b1_ref, w2_ref, b2_ref, ln_ref,
                          o_ref,
                          kvs_ref, kvc_ref,
                          *, n_heads, q_tile, cd):
    L, D = xf_ref.shape[1], xf_ref.shape[2]
    hd = D // n_heads
    t = pl.program_id(1)
    ln = ln_ref[...]

    # --- K/V projections hoisted out of the q-tile loop: once per batch -----
    @pl.when(t == 0)
    def _():
        kvs_ref[...] = _split_heads(
            _project(xf_ref[0].astype(jnp.float32), wkv1_ref, cd), n_heads)
        kvc_ref[...] = _split_heads(
            _project(kvm_ref[0].astype(jnp.float32), wkv2_ref, cd), n_heads)

    # query tile sliced in-kernel from the resident full-L block (no extra DMA)
    q0 = pl.multiple_of(t * q_tile, q_tile)
    xq = xf_ref[0, pl.ds(q0, q_tile), :].astype(jnp.float32)     # (Lt, D)

    # causal mask built once per program, offset by the tile position
    row = jax.lax.broadcasted_iota(jnp.int32, (1, q_tile, L), 1) + q0
    col = jax.lax.broadcasted_iota(jnp.int32, (1, q_tile, L), 2)
    causal = col > row

    # 1) masked self-attention + residual + LayerNorm
    kvs = kvs_ref[...]                                           # (H, L, 2*hd)
    q3 = _split_heads(_project(xq, wq1_ref, cd), n_heads)        # (H, Lt, hd)
    a1 = _attend(q3, kvs[..., :hd], kvs[..., hd:], wo1_ref[...], causal, cd)
    x1 = _layernorm(xq + a1, ln[0:1], ln[1:2])

    # 2) cross-attention over encoder memory + residual + LayerNorm
    kvc = kvc_ref[...]                                           # (H, Lk, 2*hd)
    q3 = _split_heads(_project(x1, wq2_ref, cd), n_heads)
    a2 = _attend(q3, kvc[..., :hd], kvc[..., hd:], wo2_ref[...], None, cd)
    x2 = _layernorm(x1 + a2, ln[2:3], ln[3:4])

    # 3) FFN (Linear -> ReLU -> Linear) + residual + LayerNorm
    ffh = jnp.dot(x2.astype(cd), w1_ref[...], preferred_element_type=jnp.float32)
    ffh = jnp.maximum(ffh + b1_ref[...], 0.0)
    ff = jnp.dot(ffh.astype(cd), w2_ref[...],
                 preferred_element_type=jnp.float32) + b2_ref[...]
    x3 = _layernorm(x2 + ff, ln[4:5], ln[5:6])

    o_ref[0] = x3.astype(o_ref.dtype)


def _decoder_kernel_self(x_ref,
                         wqkv1_ref, wo1_ref, wqkv2_ref, wo2_ref,
                         w1_ref, b1_ref, w2_ref, b2_ref, ln_ref,
                         o_ref, *, n_heads, cd):
    x = x_ref[0].astype(jnp.float32)      # (L, D)
    L, D = x.shape
    hd = D // n_heads
    ln = ln_ref[...]

    row = jax.lax.broadcasted_iota(jnp.int32, (1, L, L), 1)
    col = jax.lax.broadcasted_iota(jnp.int32, (1, L, L), 2)
    causal = col > row

    # 1) masked self-attention (one fused (L,D)@(D,3D) projection)
    qkv3 = _split_heads(_project(x, wqkv1_ref, cd), n_heads)     # (H, L, 3*hd)
    a1 = _attend(qkv3[..., :hd], qkv3[..., hd:2 * hd], qkv3[..., 2 * hd:],
                 wo1_ref[...], causal, cd)
    x1 = _layernorm(x + a1, ln[0:1], ln[1:2])

    # 2) unmasked self-attention on x1 (PyTorch semantics when kv is None)
    qkv3 = _split_heads(_project(x1, wqkv2_ref, cd), n_heads)
    a2 = _attend(qkv3[..., :hd], qkv3[..., hd:2 * hd], qkv3[..., 2 * hd:],
                 wo2_ref[...], None, cd)
    x2 = _layernorm(x1 + a2, ln[2:3], ln[3:4])

    # 3) FFN + residual + LayerNorm
    ffh = jnp.dot(x2.astype(cd), w1_ref[...], preferred_element_type=jnp.float32)
    ffh = jnp.maximum(ffh + b1_ref[...], 0.0)
    ff = jnp.dot(ffh.astype(cd), w2_ref[...],
                 preferred_element_type=jnp.float32) + b2_ref[...]
    x3 = _layernorm(x2 + ff, ln[4:5], ln[5:6])

    o_ref[0] = x3.astype(o_ref.dtype)


# ------------------------------ wrapper --------------------------------------

def _fuse_heads(ws, n_heads):
    """Fuse several (D, H*hd) projection weights into one (D, H*len(ws)*hd)
    weight whose columns are laid out head-major with per-head [w0|w1|...]
    blocks (so a single in-kernel stack of lane slices splits all heads)."""
    D = ws[0].shape[0]
    hd = ws[0].shape[1] // n_heads
    ws4 = [w.reshape(D, n_heads, hd) for w in ws]
    return jnp.concatenate(ws4, axis=-1).reshape(D, n_heads * len(ws) * hd)


def _vmem_limit_bytes():
    cap = 128 * 1024 * 1024
    try:
        cap = int(getattr(pltpu.get_tpu_info(), "vmem_capacity_bytes", cap))
    except Exception:
        pass
    # ~3/4 of physical VMEM, capped: ~48 MiB on v7x (64 MiB), ~96 MiB on v5e/v6e.
    return min((cap * 3) // 4, 100 * 1024 * 1024)


def _pick_q_tile(L, q_tile):
    """Round to the largest multiple of 8 (<= requested) that divides L."""
    if q_tile is None:
        q_tile = 256
    q_tile = max(8, min(int(q_tile), L))
    q_tile -= q_tile % 8
    while q_tile > 8 and L % q_tile:
        q_tile -= 8
    if q_tile < 8 or L % q_tile:
        q_tile = L
    return q_tile


def decoder_layer(x, kv, params, n_heads, *, q_tile=None,
                  compute_dtype=jnp.bfloat16):
    """Pallas DecoderLayer forward. kv=None -> second attention is
    self-attention on the output of the first block (matches PyTorch)."""
    (wq1, wk1, wv1, wo1, wq2, wk2, wv2, wo2,
     w1, b1, w2, b2, g1, be1, g2, be2, g3, be3) = params
    B, L, D = x.shape
    assert D % n_heads == 0
    hd = D // n_heads
    cd = compute_dtype
    scale = 1.0 / (hd ** 0.5)      # folded into the Q weights

    w1c, w2c = w1.astype(cd), w2.astype(cd)
    b1f, b2f = b1.astype(jnp.float32), b2.astype(jnp.float32)
    wo1c, wo2c = wo1.astype(cd), wo2.astype(cd)
    ln = jnp.concatenate([g1, be1, g2, be2, g3, be3], axis=0).astype(jnp.float32)

    # Weights are small & grid-invariant: single resident VMEM copy (no
    # per-step double-buffering).
    vmem_spec = pl.BlockSpec(memory_space=pltpu.MemorySpace.VMEM)
    cparams = dict(vmem_limit_bytes=_vmem_limit_bytes())

    if kv is None:
        # Fully fused per-head-interleaved Q|K|V weights (one matmul each).
        wqkv1 = _fuse_heads([wq1 * scale, wk1, wv1], n_heads).astype(cd)
        wqkv2 = _fuse_heads([wq2 * scale, wk2, wv2], n_heads).astype(cd)
        weights = (wqkv1, wo1c, wqkv2, wo2c, w1c, b1f, w2c, b2f, ln)
        x_spec = pl.BlockSpec((1, L, D), lambda b: (b, 0, 0))
        kernel = functools.partial(_decoder_kernel_self, n_heads=n_heads, cd=cd)
        return pl.pallas_call(
            kernel,
            out_shape=jax.ShapeDtypeStruct((B, L, D), x.dtype),
            grid=(B,),
            in_specs=[x_spec] + [vmem_spec] * len(weights),
            out_specs=x_spec,
            compiler_params=pltpu.CompilerParams(
                dimension_semantics=("parallel",), **cparams),
        )(x, *weights)

    Lk = kv.shape[1]
    q_tile = _pick_q_tile(L, q_tile)
    wq1c = (wq1 * scale).astype(cd)
    wq2c = (wq2 * scale).astype(cd)
    wkv1 = _fuse_heads([wk1, wv1], n_heads).astype(cd)
    wkv2 = _fuse_heads([wk2, wv2], n_heads).astype(cd)
    weights = (wq1c, wkv1, wo1c, wq2c, wkv2, wo2c, w1c, b1f, w2c, b2f, ln)

    xf_spec = pl.BlockSpec((1, L, D), lambda b, t: (b, 0, 0))    # x stays resident per batch
    kv_spec = pl.BlockSpec((1, Lk, D), lambda b, t: (b, 0, 0))
    out_spec = pl.BlockSpec((1, q_tile, D), lambda b, t: (b, t, 0))
    kernel = functools.partial(_decoder_kernel_cross, n_heads=n_heads,
                               q_tile=q_tile, cd=cd)
    return pl.pallas_call(
        kernel,
        out_shape=jax.ShapeDtypeStruct((B, L, D), x.dtype),
        grid=(B, L // q_tile),
        in_specs=[xf_spec, kv_spec] + [vmem_spec] * len(weights),
        out_specs=out_spec,
        scratch_shapes=[pltpu.VMEM((n_heads, L, 2 * hd), cd),    # hoisted self K|V
                        pltpu.VMEM((n_heads, Lk, 2 * hd), cd)],  # hoisted cross K|V
        compiler_params=pltpu.CompilerParams(
            # t must be "arbitrary": the hoisted-K/V scratch is written at t==0
            # and reused by later tiles of the same batch. Batch stays parallel
            # (v7x megacore: keep B even so both TensorCores get work).
            dimension_semantics=("parallel", "arbitrary"), **cparams),
    )(x, kv, *weights)


# --------------------------- pure-JAX reference ------------------------------

def _ref_layernorm(v, g, b):
    mu = jnp.mean(v, axis=-1, keepdims=True)
    var = jnp.mean(jnp.square(v - mu), axis=-1, keepdims=True)
    return (v - mu) / jnp.sqrt(var + _LN_EPS) * g + b


def _ref_mha(q_in, kv_in, wq, wk, wv, wo, n_heads, causal):
    B, Lq, D = q_in.shape
    Lk = kv_in.shape[1]
    hd = D // n_heads
    q = (q_in @ wq).reshape(B, Lq, n_heads, hd).transpose(0, 2, 1, 3)
    k = (kv_in @ wk).reshape(B, Lk, n_heads, hd).transpose(0, 2, 1, 3)
    v = (kv_in @ wv).reshape(B, Lk, n_heads, hd).transpose(0, 2, 1, 3)
    s = jnp.einsum('bhid,bhjd->bhij', q, k) / (hd ** 0.5)
    if causal:
        s = jnp.where(jnp.arange(Lk)[None, :] > jnp.arange(Lq)[:, None],
                      -jnp.inf, s)
    p = jax.nn.softmax(s, axis=-1)
    o = jnp.einsum('bhij,bhjd->bhid', p, v)
    return o.transpose(0, 2, 1, 3).reshape(B, Lq, D) @ wo


def decoder_layer_ref(x, kv, params, n_heads):
    (wq1, wk1, wv1, wo1, wq2, wk2, wv2, wo2,
     w1, b1, w2, b2, g1, be1, g2, be2, g3, be3) = params
    x1 = _ref_layernorm(
        x + _ref_mha(x, x, wq1, wk1, wv1, wo1, n_heads, True), g1, be1)
    kv2 = x1 if kv is None else kv
    x2 = _ref_layernorm(
        x1 + _ref_mha(x1, kv2, wq2, wk2, wv2, wo2, n_heads, False), g2, be2)
    ff = jnp.maximum(x2 @ w1 + b1, 0.0) @ w2 + b2
    return _ref_layernorm(x2 + ff, g3, be3)


# --------------------------------- main ---------------------------------------

if __name__ == "__main__":
    B, L, D, H = 2, 64, 128, 4     # lane-dense D (multiple of 128), L multiple of 8
    FF = 4 * D
    Q_TILE = 32                    # grid = (B, L // Q_TILE) = (2, 2)

    key = jax.random.PRNGKey(0)
    ks = jax.random.split(key, 20)

    def w(k, shape, s=0.05):
        return (s * jax.random.normal(k, shape)).astype(jnp.float32)

    # projection / FFN weights stored as (in, out)  (== PyTorch Linear weight.T)
    wq1, wk1, wv1, wo1 = (w(ks[i], (D, D)) for i in range(4))
    wq2, wk2, wv2, wo2 = (w(ks[i + 4], (D, D)) for i in range(4))
    w1 = w(ks[8], (D, FF))
    b1 = w(ks[9], (1, FF), 0.01)
    w2 = w(ks[10], (FF, D))
    b2 = w(ks[11], (1, D), 0.01)
    g1 = 1.0 + w(ks[12], (1, D), 0.01)
    be1 = w(ks[13], (1, D), 0.01)
    g2 = 1.0 + w(ks[14], (1, D), 0.01)
    be2 = w(ks[15], (1, D), 0.01)
    g3 = 1.0 + w(ks[16], (1, D), 0.01)
    be3 = w(ks[17], (1, D), 0.01)

    params = (wq1, wk1, wv1, wo1, wq2, wk2, wv2, wo2,
              w1, b1, w2, b2, g1, be1, g2, be2, g3, be3)

    x = jax.random.normal(ks[18], (B, L, D), dtype=jnp.float32)
    kv = jax.random.normal(ks[19], (B, L, D), dtype=jnp.float32)

    # cross-attention path, fp32 MXU operands (validation)
    out = jax.block_until_ready(
        decoder_layer(x, kv, params, H, q_tile=Q_TILE,
                      compute_dtype=jnp.float32))
    ref = decoder_layer_ref(x, kv, params, H)
    assert out.shape == (B, L, D)
    err = float(jnp.max(jnp.abs(out - ref)))
    assert err < 2e-3, f"fp32 cross path mismatch: {err}"

    # same path with bf16 MXU operands (fp32 accumulation / softmax / LayerNorm)
    out_bf = jax.block_until_ready(
        decoder_layer(x, kv, params, H, q_tile=Q_TILE,
                      compute_dtype=jnp.bfloat16))
    err_bf = float(jnp.max(jnp.abs(out_bf - ref)))
    assert err_bf < 2e-2, f"bf16 cross path mismatch: {err_bf}"

    # kv=None path (second attention is self-attention on x1; kv operand skipped)
    out_self = jax.block_until_ready(
        decoder_layer(x, None, params, H, compute_dtype=jnp.float32))
    ref_self = decoder_layer_ref(x, None, params, H)
    err_self = float(jnp.max(jnp.abs(out_self - ref_self)))
    assert err_self < 2e-3, f"fp32 self path mismatch: {err_self}"

    print("KERNEL_OK")
</pallas_src>

<mosaic_0001>
module attributes {stable_mosaic.version = 11 : i64} {
  func.func @_decoder_kernel_cross(%arg0: i32, %arg1: i32, %arg2: memref<1x64x128xf32, #tpu.memory_space<vmem>>, %arg3: memref<1x64x128xf32, #tpu.memory_space<vmem>>, %arg4: memref<128x128xf32, #tpu.memory_space<vmem>>, %arg5: memref<128x256xf32, #tpu.memory_space<vmem>>, %arg6: memref<128x128xf32, #tpu.memory_space<vmem>>, %arg7: memref<128x128xf32, #tpu.memory_space<vmem>>, %arg8: memref<128x256xf32, #tpu.memory_space<vmem>>, %arg9: memref<128x128xf32, #tpu.memory_space<vmem>>, %arg10: memref<128x512xf32, #tpu.memory_space<vmem>>, %arg11: memref<1x512xf32, #tpu.memory_space<vmem>>, %arg12: memref<512x128xf32, #tpu.memory_space<vmem>>, %arg13: memref<1x128xf32, #tpu.memory_space<vmem>>, %arg14: memref<6x128xf32, #tpu.memory_space<vmem>>, %arg15: memref<1x32x128xf32, #tpu.memory_space<vmem>>, %arg16: memref<4x64x64xf32, #tpu.memory_space<vmem>>, %arg17: memref<4x64x64xf32, #tpu.memory_space<vmem>>) attributes {dimension_semantics = [#tpu.dimension_semantics<parallel>, #tpu.dimension_semantics<arbitrary>], iteration_bounds = array<i64: 2, 2>, scalar_prefetch = 0 : i64, scratch_operands = 2 : i64, tpu.core_type = #tpu.core_type<tc>, window_params = [{transform_indices = @transform_0, window_bounds = array<i64: 1, 64, 128>}, {transform_indices = @transform_1, window_bounds = array<i64: 1, 64, 128>}, {pipeline_mode = #tpu.pipeline_mode<synchronous>, transform_indices = @transform_2, window_bounds = array<i64: 128, 128>}, {pipeline_mode = #tpu.pipeline_mode<synchronous>, transform_indices = @transform_3, window_bounds = array<i64: 128, 256>}, {pipeline_mode = #tpu.pipeline_mode<synchronous>, transform_indices = @transform_4, window_bounds = array<i64: 128, 128>}, {pipeline_mode = #tpu.pipeline_mode<synchronous>, transform_indices = @transform_5, window_bounds = array<i64: 128, 128>}, {pipeline_mode = #tpu.pipeline_mode<synchronous>, transform_indices = @transform_6, window_bounds = array<i64: 128, 256>}, {pipeline_mode = #tpu.pipeline_mode<synchronous>, transform_indices = @transform_7, window_bounds = array<i64: 128, 128>}, {pipeline_mode = #tpu.pipeline_mode<synchronous>, transform_indices = @transform_8, window_bounds = array<i64: 128, 512>}, {pipeline_mode = #tpu.pipeline_mode<synchronous>, transform_indices = @transform_9, window_bounds = array<i64: 1, 512>}, {pipeline_mode = #tpu.pipeline_mode<synchronous>, transform_indices = @transform_10, window_bounds = array<i64: 512, 128>}, {pipeline_mode = #tpu.pipeline_mode<synchronous>, transform_indices = @transform_11, window_bounds = array<i64: 1, 128>}, {pipeline_mode = #tpu.pipeline_mode<synchronous>, transform_indices = @transform_12, window_bounds = array<i64: 6, 128>}, {transform_indices = @transform_13, window_bounds = array<i64: 1, 32, 128>}]} {
    %c0 = arith.constant 0 : index
    %c0_0 = arith.constant 0 : index
    %0 = vector.load %arg14[%c0, %c0_0] : memref<6x128xf32, #tpu.memory_space<vmem>>, vector<6x128xf32>
    %c0_i32 = arith.constant 0 : i32
    %1 = arith.cmpi eq, %arg1, %c0_i32 : i32
    %2 = arith.extui %1 : i1 to i32
    %c0_i32_1 = arith.constant 0 : i32
    %3 = arith.cmpi ne, %2, %c0_i32_1 : i32
    scf.if %3 {
      %c0_59 = arith.constant 0 : index
      %c0_60 = arith.constant 0 : index
      %c0_61 = arith.constant 0 : index
      %182 = vector.load %arg2[%c0_59, %c0_60, %c0_61] : memref<1x64x128xf32, #tpu.memory_space<vmem>>, vector<1x64x128xf32>
      %183 = vector.shape_cast %182 : vector<1x64x128xf32> to vector<64x128xf32>
      %c0_62 = arith.constant 0 : index
      %c0_63 = arith.constant 0 : index
      %184 = vector.load %arg5[%c0_62, %c0_63] : memref<128x256xf32, #tpu.memory_space<vmem>>, vector<128x256xf32>
      %cst_64 = arith.constant dense<0.000000e+00> : vector<64x256xf32>
      %185 = tpu.matmul %183, %184, %cst_64 {dimension_numbers = #tpu.dot_dimension_numbers<[1], [0], [0], [1], [0, 0, 1, 1], [], []>} : vector<64x128xf32>, vector<128x256xf32>, vector<64x256xf32> -> vector<64x256xf32>
      %186 = vector.extract_strided_slice %185 {offsets = [0, 0], sizes = [64, 64], strides = [1, 1]} : vector<64x256xf32> to vector<64x64xf32>
      %187 = vector.extract_strided_slice %185 {offsets = [0, 64], sizes = [64, 64], strides = [1, 1]} : vector<64x256xf32> to vector<64x64xf32>
      %188 = vector.extract_strided_slice %185 {offsets = [0, 128], sizes = [64, 64], strides = [1, 1]} : vector<64x256xf32> to vector<64x64xf32>
      %189 = vector.extract_strided_slice %185 {offsets = [0, 192], sizes = [64, 64], strides = [1, 1]} : vector<64x256xf32> to vector<64x64xf32>
      %190 = vector.shape_cast %186 : vector<64x64xf32> to vector<1x64x64xf32>
      %191 = vector.shape_cast %187 : vector<64x64xf32> to vector<1x64x64xf32>
      %192 = vector.shape_cast %188 : vector<64x64xf32> to vector<1x64x64xf32>
      %193 = vector.shape_cast %189 : vector<64x64xf32> to vector<1x64x64xf32>
      %194 = tpu.concatenate %190, %191, %192, %193 in 0 : vector<1x64x64xf32>, vector<1x64x64xf32>, vector<1x64x64xf32>, vector<1x64x64xf32> -> vector<4x64x64xf32>
      %c0_65 = arith.constant 0 : index
      %c0_66 = arith.constant 0 : index
      %c0_67 = arith.constant 0 : index
      %195 = vector.load %arg16[%c0_65, %c0_66, %c0_67] : memref<4x64x64xf32, #tpu.memory_space<vmem>>, vector<4x64x64xf32>
      tpu.vector_store %arg16[%c0_65, %c0_66, %c0_67], %194 {strides = array<i32>} : memref<4x64x64xf32, #tpu.memory_space<vmem>>, vector<4x64x64xf32>,
      %c0_68 = arith.constant 0 : index
      %c0_69 = arith.constant 0 : index
      %c0_70 = arith.constant 0 : index
      %196 = vector.load %arg3[%c0_68, %c0_69, %c0_70] : memref<1x64x128xf32, #tpu.memory_space<vmem>>, vector<1x64x128xf32>
      %197 = vector.shape_cast %196 : vector<1x64x128xf32> to vector<64x128xf32>
      %c0_71 = arith.constant 0 : index
      %c0_72 = arith.constant 0 : index
      %198 = vector.load %arg8[%c0_71, %c0_72] : memref<128x256xf32, #tpu.memory_space<vmem>>, vector<128x256xf32>
      %cst_73 = arith.constant dense<0.000000e+00> : vector<64x256xf32>
      %199 = tpu.matmul %197, %198, %cst_73 {dimension_numbers = #tpu.dot_dimension_numbers<[1], [0], [0], [1], [0, 0, 1, 1], [], []>} : vector<64x128xf32>, vector<128x256xf32>, vector<64x256xf32> -> vector<64x256xf32>
      %200 = vector.extract_strided_slice %199 {offsets = [0, 0], sizes = [64, 64], strides = [1, 1]} : vector<64x256xf32> to vector<64x64xf32>
      %201 = vector.extract_strided_slice %199 {offsets = [0, 64], sizes = [64, 64], strides = [1, 1]} : vector<64x256xf32> to vector<64x64xf32>
      %202 = vector.extract_strided_slice %199 {offsets = [0, 128], sizes = [64, 64], strides = [1, 1]} : vector<64x256xf32> to vector<64x64xf32>
      %203 = vector.extract_strided_slice %199 {offsets = [0, 192], sizes = [64, 64], strides = [1, 1]} : vector<64x256xf32> to vector<64x64xf32>
      %204 = vector.shape_cast %200 : vector<64x64xf32> to vector<1x64x64xf32>
      %205 = vector.shape_cast %201 : vector<64x64xf32> to vector<1x64x64xf32>
      %206 = vector.shape_cast %202 : vector<64x64xf32> to vector<1x64x64xf32>
      %207 = vector.shape_cast %203 : vector<64x64xf32> to vector<1x64x64xf32>
      %208 = tpu.concatenate %204, %205, %206, %207 in 0 : vector<1x64x64xf32>, vector<1x64x64xf32>, vector<1x64x64xf32>, vector<1x64x64xf32> -> vector<4x64x64xf32>
      %c0_74 = arith.constant 0 : index
      %c0_75 = arith.constant 0 : index
      %c0_76 = arith.constant 0 : index
      %209 = vector.load %arg17[%c0_74, %c0_75, %c0_76] : memref<4x64x64xf32, #tpu.memory_space<vmem>>, vector<4x64x64xf32>
      tpu.vector_store %arg17[%c0_74, %c0_75, %c0_76], %208 {strides = array<i32>} : memref<4x64x64xf32, #tpu.memory_space<vmem>>, vector<4x64x64xf32>,
    } else {
    }
    %c32_i32 = arith.constant 32 : i32
    %4 = arith.muli %arg1, %c32_i32 : i32
    %5 = tpu.assume_multiple %4, 32 : i32
    %c0_2 = arith.constant 0 : index
    %6 = arith.index_cast %5 : i32 to index
    %c0_3 = arith.constant 0 : index
    %7 = vector.load %arg2[%c0_2, %6, %c0_3] : memref<1x64x128xf32, #tpu.memory_space<vmem>>, vector<1x32x128xf32>
    %8 = vector.shape_cast %7 : vector<1x32x128xf32> to vector<32x128xf32>
    %9 = tpu.iota {dimensions = array<i32: 1>} : vector<1x32x64xi32>
    %10 = vector.broadcast %5 : i32 to vector<1x32x64xi32>
    %11 = arith.addi %9, %10 : vector<1x32x64xi32>
    %12 = tpu.iota {dimensions = array<i32: 2>} : vector<1x32x64xi32>
    %13 = arith.cmpi sgt, %12, %11 : vector<1x32x64xi32>
    %c0_4 = arith.constant 0 : index
    %c0_5 = arith.constant 0 : index
    %c0_6 = arith.constant 0 : index
    %14 = vector.load %arg16[%c0_4, %c0_5, %c0_6] : memref<4x64x64xf32, #tpu.memory_space<vmem>>, vector<4x64x64xf32>
    %c0_7 = arith.constant 0 : index
    %c0_8 = arith.constant 0 : index
    %15 = vector.load %arg4[%c0_7, %c0_8] : memref<128x128xf32, #tpu.memory_space<vmem>>, vector<128x128xf32>
    %cst = arith.constant dense<0.000000e+00> : vector<32x128xf32>
    %16 = tpu.matmul %8, %15, %cst {dimension_numbers = #tpu.dot_dimension_numbers<[1], [0], [0], [1], [0, 0, 1, 1], [], []>} : vector<32x128xf32>, vector<128x128xf32>, vector<32x128xf32> -> vector<32x128xf32>
    %17 = vector.extract_strided_slice %16 {offsets = [0, 0], sizes = [32, 32], strides = [1, 1]} : vector<32x128xf32> to vector<32x32xf32>
    %18 = vector.extract_strided_slice %16 {offsets = [0, 32], sizes = [32, 32], strides = [1, 1]} : vector<32x128xf32> to vector<32x32xf32>
    %19 = vector.extract_strided_slice %16 {offsets = [0, 64], sizes = [32, 32], strides = [1, 1]} : vector<32x128xf32> to vector<32x32xf32>
    %20 = vector.extract_strided_slice %16 {offsets = [0, 96], sizes = [32, 32], strides = [1, 1]} : vector<32x128xf32> to vector<32x32xf32>
    %21 = vector.shape_cast %17 : vector<32x32xf32> to vector<1x32x32xf32>
    %22 = vector.shape_cast %18 : vector<32x32xf32> to vector<1x32x32xf32>
    %23 = vector.shape_cast %19 : vector<32x32xf32> to vector<1x32x32xf32>
    %24 = vector.shape_cast %20 : vector<32x32xf32> to vector<1x32x32xf32>
    %25 = tpu.concatenate %21, %22, %23, %24 in 0 : vector<1x32x32xf32>, vector<1x32x32xf32>, vector<1x32x32xf32>, vector<1x32x32xf32> -> vector<4x32x32xf32>
    %26 = vector.extract_strided_slice %14 {offsets = [0, 0, 0], sizes = [4, 64, 32], strides = [1, 1, 1]} : vector<4x64x64xf32> to vector<4x64x32xf32>
    %27 = vector.extract_strided_slice %14 {offsets = [0, 0, 32], sizes = [4, 64, 32], strides = [1, 1, 1]} : vector<4x64x64xf32> to vector<4x64x32xf32>
    %c0_9 = arith.constant 0 : index
    %c0_10 = arith.constant 0 : index
    %28 = vector.load %arg6[%c0_9, %c0_10] : memref<128x128xf32, #tpu.memory_space<vmem>>, vector<128x128xf32>
    "tpu.trace_start"() <{level = 10 : i32, message = "hid,hjd->hij"}> : () -> ()
    %cst_11 = arith.constant dense<0.000000e+00> : vector<4x32x64xf32>
    %29 = tpu.matmul %25, %26, %cst_11 {dimension_numbers = #tpu.dot_dimension_numbers<[2], [2], [1], [1], [0, 0, 0, 1, 1, 1], [0], [0]>} : vector<4x32x32xf32>, vector<4x64x32xf32>, vector<4x32x64xf32> -> vector<4x32x64xf32>
    %cst_12 = arith.constant -1.000000e+30 : f32
    "tpu.trace_stop"() : () -> ()
    %30 = vector.shape_cast %13 : vector<1x32x64xi1> to vector<1x32x64xi1>
    %31 = vector.broadcast %30 : vector<1x32x64xi1> to vector<4x32x64xi1>
    %32 = vector.broadcast %cst_12 : f32 to vector<4x32x64xf32>
    %33 = arith.select %31, %32, %29 : vector<4x32x64xi1>, vector<4x32x64xf32>
    %cst_13 = arith.constant dense<0xFF800000> : vector<4x32xf32>
    %34 = vector.multi_reduction <maximumf>, %33, %cst_13 [2] : vector<4x32x64xf32> to vector<4x32xf32>
    %35 = vector.shape_cast %34 : vector<4x32xf32> to vector<4x32x1xf32>
    %36 = vector.broadcast %35 : vector<4x32x1xf32> to vector<4x32x64xf32>
    %37 = arith.subf %33, %36 : vector<4x32x64xf32>
    %38 = math.exp %37 : vector<4x32x64xf32>
    %cst_14 = arith.constant dense<0.000000e+00> : vector<4x32xf32>
    %39 = vector.multi_reduction <add>, %38, %cst_14 [2] : vector<4x32x64xf32> to vector<4x32xf32>
    %40 = vector.shape_cast %39 : vector<4x32xf32> to vector<4x32x1xf32>
    %41 = tpu.reciprocal %40 {approx = true} : vector<4x32x1xf32> -> vector<4x32x1xf32>
    %42 = vector.broadcast %41 : vector<4x32x1xf32> to vector<4x32x64xf32>
    %43 = arith.mulf %38, %42 : vector<4x32x64xf32>
    "tpu.trace_start"() <{level = 10 : i32, message = "hij,hjd->hid"}> : () -> ()
    %cst_15 = arith.constant dense<0.000000e+00> : vector<4x32x32xf32>
    %44 = tpu.matmul %43, %27, %cst_15 {dimension_numbers = #tpu.dot_dimension_numbers<[2], [1], [1], [2], [0, 0, 0, 1, 1, 2], [0], [0]>} : vector<4x32x64xf32>, vector<4x64x32xf32>, vector<4x32x32xf32> -> vector<4x32x32xf32>
    "tpu.trace_stop"() : () -> ()
    %45 = vector.extract_strided_slice %44 {offsets = [0, 0, 0], sizes = [1, 32, 32], strides = [1, 1, 1]} : vector<4x32x32xf32> to vector<1x32x32xf32>
    %46 = vector.shape_cast %45 : vector<1x32x32xf32> to vector<32x32xf32>
    %47 = vector.extract_strided_slice %44 {offsets = [1, 0, 0], sizes = [1, 32, 32], strides = [1, 1, 1]} : vector<4x32x32xf32> to vector<1x32x32xf32>
    %48 = vector.shape_cast %47 : vector<1x32x32xf32> to vector<32x32xf32>
    %49 = vector.extract_strided_slice %44 {offsets = [2, 0, 0], sizes = [1, 32, 32], strides = [1, 1, 1]} : vector<4x32x32xf32> to vector<1x32x32xf32>
    %50 = vector.shape_cast %49 : vector<1x32x32xf32> to vector<32x32xf32>
    %51 = vector.extract_strided_slice %44 {offsets = [3, 0, 0], sizes = [1, 32, 32], strides = [1, 1, 1]} : vector<4x32x32xf32> to vector<1x32x32xf32>
    %52 = vector.shape_cast %51 : vector<1x32x32xf32> to vector<32x32xf32>
    %53 = tpu.concatenate %46, %48, %50, %52 in 1 : vector<32x32xf32>, vector<32x32xf32>, vector<32x32xf32>, vector<32x32xf32> -> vector<32x128xf32>
    %cst_16 = arith.constant dense<0.000000e+00> : vector<32x128xf32>
    %54 = tpu.matmul %53, %28, %cst_16 {dimension_numbers = #tpu.dot_dimension_numbers<[1], [0], [0], [1], [0, 0, 1, 1], [], []>} : vector<32x128xf32>, vector<128x128xf32>, vector<32x128xf32> -> vector<32x128xf32>
    %55 = arith.addf %8, %54 : vector<32x128xf32>
    %56 = vector.extract_strided_slice %0 {offsets = [0, 0], sizes = [1, 128], strides = [1, 1]} : vector<6x128xf32> to vector<1x128xf32>
    %57 = vector.extract_strided_slice %0 {offsets = [1, 0], sizes = [1, 128], strides = [1, 1]} : vector<6x128xf32> to vector<1x128xf32>
    %cst_17 = arith.constant dense<0.000000e+00> : vector<32xf32>
    %58 = vector.multi_reduction <add>, %55, %cst_17 [1] : vector<32x128xf32> to vector<32xf32>
    %59 = vector.shape_cast %58 : vector<32xf32> to vector<32x1xf32>
    %cst_18 = arith.constant 1.280000e+02 : f32
    %60 = vector.broadcast %cst_18 : f32 to vector<32x1xf32>
    %61 = arith.divf %59, %60 : vector<32x1xf32>
    %62 = vector.broadcast %61 : vector<32x1xf32> to vector<32x128xf32>
    %63 = arith.subf %55, %62 : vector<32x128xf32>
    %64 = arith.mulf %63, %63 : vector<32x128xf32>
    %cst_19 = arith.constant dense<0.000000e+00> : vector<32xf32>
    %65 = vector.multi_reduction <add>, %64, %cst_19 [1] : vector<32x128xf32> to vector<32xf32>
    %66 = vector.shape_cast %65 : vector<32xf32> to vector<32x1xf32>
    %cst_20 = arith.constant 1.280000e+02 : f32
    %67 = vector.broadcast %cst_20 : f32 to vector<32x1xf32>
    %68 = arith.divf %66, %67 : vector<32x1xf32>
    %69 = vector.broadcast %61 : vector<32x1xf32> to vector<32x128xf32>
    %70 = arith.subf %55, %69 : vector<32x128xf32>
    %cst_21 = arith.constant 9.99999974E-6 : f32
    %71 = vector.broadcast %cst_21 : f32 to vector<32x1xf32>
    %72 = arith.addf %68, %71 : vector<32x1xf32>
    %73 = math.rsqrt %72 : vector<32x1xf32>
    %74 = vector.broadcast %73 : vector<32x1xf32> to vector<32x128xf32>
    %75 = arith.mulf %70, %74 : vector<32x128xf32>
    %76 = vector.broadcast %56 : vector<1x128xf32> to vector<32x128xf32>
    %77 = arith.mulf %75, %76 : vector<32x128xf32>
    %78 = vector.broadcast %57 : vector<1x128xf32> to vector<32x128xf32>
    %79 = arith.addf %77, %78 : vector<32x128xf32>
    %c0_22 = arith.constant 0 : index
    %c0_23 = arith.constant 0 : index
    %c0_24 = arith.constant 0 : index
    %80 = vector.load %arg17[%c0_22, %c0_23, %c0_24] : memref<4x64x64xf32, #tpu.memory_space<vmem>>, vector<4x64x64xf32>
    %c0_25 = arith.constant 0 : index
    %c0_26 = arith.constant 0 : index
    %81 = vector.load %arg7[%c0_25, %c0_26] : memref<128x128xf32, #tpu.memory_space<vmem>>, vector<128x128xf32>
    %cst_27 = arith.constant dense<0.000000e+00> : vector<32x128xf32>
    %82 = tpu.matmul %79, %81, %cst_27 {dimension_numbers = #tpu.dot_dimension_numbers<[1], [0], [0], [1], [0, 0, 1, 1], [], []>} : vector<32x128xf32>, vector<128x128xf32>, vector<32x128xf32> -> vector<32x128xf32>
    %83 = vector.extract_strided_slice %82 {offsets = [0, 0], sizes = [32, 32], strides = [1, 1]} : vector<32x128xf32> to vector<32x32xf32>
    %84 = vector.extract_strided_slice %82 {offsets = [0, 32], sizes = [32, 32], strides = [1, 1]} : vector<32x128xf32> to vector<32x32xf32>
    %85 = vector.extract_strided_slice %82 {offsets = [0, 64], sizes = [32, 32], strides = [1, 1]} : vector<32x128xf32> to vector<32x32xf32>
    %86 = vector.extract_strided_slice %82 {offsets = [0, 96], sizes = [32, 32], strides = [1, 1]} : vector<32x128xf32> to vector<32x32xf32>
    %87 = vector.shape_cast %83 : vector<32x32xf32> to vector<1x32x32xf32>
    %88 = vector.shape_cast %84 : vector<32x32xf32> to vector<1x32x32xf32>
    %89 = vector.shape_cast %85 : vector<32x32xf32> to vector<1x32x32xf32>
    %90 = vector.shape_cast %86 : vector<32x32xf32> to vector<1x32x32xf32>
    %91 = tpu.concatenate %87, %88, %89, %90 in 0 : vector<1x32x32xf32>, vector<1x32x32xf32>, vector<1x32x32xf32>, vector<1x32x32xf32> -> vector<4x32x32xf32>
    %92 = vector.extract_strided_slice %80 {offsets = [0, 0, 0], sizes = [4, 64, 32], strides = [1, 1, 1]} : vector<4x64x64xf32> to vector<4x64x32xf32>
    %93 = vector.extract_strided_slice %80 {offsets = [0, 0, 32], sizes = [4, 64, 32], strides = [1, 1, 1]} : vector<4x64x64xf32> to vector<4x64x32xf32>
    %c0_28 = arith.constant 0 : index
    %c0_29 = arith.constant 0 : index
    %94 = vector.load %arg9[%c0_28, %c0_29] : memref<128x128xf32, #tpu.memory_space<vmem>>, vector<128x128xf32>
    "tpu.trace_start"() <{level = 10 : i32, message = "hid,hjd->hij"}> : () -> ()
    %cst_30 = arith.constant dense<0.000000e+00> : vector<4x32x64xf32>
    %95 = tpu.matmul %91, %92, %cst_30 {dimension_numbers = #tpu.dot_dimension_numbers<[2], [2], [1], [1], [0, 0, 0, 1, 1, 1], [0], [0]>} : vector<4x32x32xf32>, vector<4x64x32xf32>, vector<4x32x64xf32> -> vector<4x32x64xf32>
    "tpu.trace_stop"() : () -> ()
    %cst_31 = arith.constant dense<0xFF800000> : vector<4x32xf32>
    %96 = vector.multi_reduction <maximumf>, %95, %cst_31 [2] : vector<4x32x64xf32> to vector<4x32xf32>
    %97 = vector.shape_cast %96 : vector<4x32xf32> to vector<4x32x1xf32>
    %98 = vector.broadcast %97 : vector<4x32x1xf32> to vector<4x32x64xf32>
    %99 = arith.subf %95, %98 : vector<4x32x64xf32>
    %100 = math.exp %99 : vector<4x32x64xf32>
    %cst_32 = arith.constant dense<0.000000e+00> : vector<4x32xf32>
    %101 = vector.multi_reduction <add>, %100, %cst_32 [2] : vector<4x32x64xf32> to vector<4x32xf32>
    %102 = vector.shape_cast %101 : vector<4x32xf32> to vector<4x32x1xf32>
    %103 = tpu.reciprocal %102 {approx = true} : vector<4x32x1xf32> -> vector<4x32x1xf32>
    %104 = vector.broadcast %103 : vector<4x32x1xf32> to vector<4x32x64xf32>
    %105 = arith.mulf %100, %104 : vector<4x32x64xf32>
    "tpu.trace_start"() <{level = 10 : i32, message = "hij,hjd->hid"}> : () -> ()
    %cst_33 = arith.constant dense<0.000000e+00> : vector<4x32x32xf32>
    %106 = tpu.matmul %105, %93, %cst_33 {dimension_numbers = #tpu.dot_dimension_numbers<[2], [1], [1], [2], [0, 0, 0, 1, 1, 2], [0], [0]>} : vector<4x32x64xf32>, vector<4x64x32xf32>, vector<4x32x32xf32> -> vector<4x32x32xf32>
    "tpu.trace_stop"() : () -> ()
    %107 = vector.extract_strided_slice %106 {offsets = [0, 0, 0], sizes = [1, 32, 32], strides = [1, 1, 1]} : vector<4x32x32xf32> to vector<1x32x32xf32>
    %108 = vector.shape_cast %107 : vector<1x32x32xf32> to vector<32x32xf32>
    %109 = vector.extract_strided_slice %106 {offsets = [1, 0, 0], sizes = [1, 32, 32], strides = [1, 1, 1]} : vector<4x32x32xf32> to vector<1x32x32xf32>
    %110 = vector.shape_cast %109 : vector<1x32x32xf32> to vector<32x32xf32>
    %111 = vector.extract_strided_slice %106 {offsets = [2, 0, 0], sizes = [1, 32, 32], strides = [1, 1, 1]} : vector<4x32x32xf32> to vector<1x32x32xf32>
    %112 = vector.shape_cast %111 : vector<1x32x32xf32> to vector<32x32xf32>
    %113 = vector.extract_strided_slice %106 {offsets = [3, 0, 0], sizes = [1, 32, 32], strides = [1, 1, 1]} : vector<4x32x32xf32> to vector<1x32x32xf32>
    %114 = vector.shape_cast %113 : vector<1x32x32xf32> to vector<32x32xf32>
    %115 = tpu.concatenate %108, %110, %112, %114 in 1 : vector<32x32xf32>, vector<32x32xf32>, vector<32x32xf32>, vector<32x32xf32> -> vector<32x128xf32>
    %cst_34 = arith.constant dense<0.000000e+00> : vector<32x128xf32>
    %116 = tpu.matmul %115, %94, %cst_34 {dimension_numbers = #tpu.dot_dimension_numbers<[1], [0], [0], [1], [0, 0, 1, 1], [], []>} : vector<32x128xf32>, vector<128x128xf32>, vector<32x128xf32> -> vector<32x128xf32>
    %117 = arith.addf %79, %116 : vector<32x128xf32>
    %118 = vector.extract_strided_slice %0 {offsets = [2, 0], sizes = [1, 128], strides = [1, 1]} : vector<6x128xf32> to vector<1x128xf32>
    %119 = vector.extract_strided_slice %0 {offsets = [3, 0], sizes = [1, 128], strides = [1, 1]} : vector<6x128xf32> to vector<1x128xf32>
    %cst_35 = arith.constant dense<0.000000e+00> : vector<32xf32>
    %120 = vector.multi_reduction <add>, %117, %cst_35 [1] : vector<32x128xf32> to vector<32xf32>
    %121 = vector.shape_cast %120 : vector<32xf32> to vector<32x1xf32>
    %cst_36 = arith.constant 1.280000e+02 : f32
    %122 = vector.broadcast %cst_36 : f32 to vector<32x1xf32>
    %123 = arith.divf %121, %122 : vector<32x1xf32>
    %124 = vector.broadcast %123 : vector<32x1xf32> to vector<32x128xf32>
    %125 = arith.subf %117, %124 : vector<32x128xf32>
    %126 = arith.mulf %125, %125 : vector<32x128xf32>
    %cst_37 = arith.constant dense<0.000000e+00> : vector<32xf32>
    %127 = vector.multi_reduction <add>, %126, %cst_37 [1] : vector<32x128xf32> to vector<32xf32>
    %128 = vector.shape_cast %127 : vector<32xf32> to vector<32x1xf32>
    %cst_38 = arith.constant 1.280000e+02 : f32
    %129 = vector.broadcast %cst_38 : f32 to vector<32x1xf32>
    %130 = arith.divf %128, %129 : vector<32x1xf32>
    %131 = vector.broadcast %123 : vector<32x1xf32> to vector<32x128xf32>
    %132 = arith.subf %117, %131 : vector<32x128xf32>
    %cst_39 = arith.constant 9.99999974E-6 : f32
    %133 = vector.broadcast %cst_39 : f32 to vector<32x1xf32>
    %134 = arith.addf %130, %133 : vector<32x1xf32>
    %135 = math.rsqrt %134 : vector<32x1xf32>
    %136 = vector.broadcast %135 : vector<32x1xf32> to vector<32x128xf32>
    %137 = arith.mulf %132, %136 : vector<32x128xf32>
    %138 = vector.broadcast %118 : vector<1x128xf32> to vector<32x128xf32>
    %139 = arith.mulf %137, %138 : vector<32x128xf32>
    %140 = vector.broadcast %119 : vector<1x128xf32> to vector<32x128xf32>
    %141 = arith.addf %139, %140 : vector<32x128xf32>
    %c0_40 = arith.constant 0 : index
    %c0_41 = arith.constant 0 : index
    %142 = vector.load %arg10[%c0_40, %c0_41] : memref<128x512xf32, #tpu.memory_space<vmem>>, vector<128x512xf32>
    %cst_42 = arith.constant dense<0.000000e+00> : vector<32x512xf32>
    %143 = tpu.matmul %141, %142, %cst_42 {dimension_numbers = #tpu.dot_dimension_numbers<[1], [0], [0], [1], [0, 0, 1, 1], [], []>} : vector<32x128xf32>, vector<128x512xf32>, vector<32x512xf32> -> vector<32x512xf32>
    %c0_43 = arith.constant 0 : index
    %c0_44 = arith.constant 0 : index
    %144 = vector.load %arg11[%c0_43, %c0_44] : memref<1x512xf32, #tpu.memory_space<vmem>>, vector<1x512xf32>
    %145 = vector.broadcast %144 : vector<1x512xf32> to vector<32x512xf32>
    %146 = arith.addf %143, %145 : vector<32x512xf32>
    %cst_45 = arith.constant 0.000000e+00 : f32
    %147 = vector.broadcast %cst_45 : f32 to vector<32x512xf32>
    %148 = arith.maximumf %146, %147 : vector<32x512xf32>
    %c0_46 = arith.constant 0 : index
    %c0_47 = arith.constant 0 : index
    %149 = vector.load %arg12[%c0_46, %c0_47] : memref<512x128xf32, #tpu.memory_space<vmem>>, vector<512x128xf32>
    %cst_48 = arith.constant dense<0.000000e+00> : vector<32x128xf32>
    %150 = tpu.matmul %148, %149, %cst_48 {dimension_numbers = #tpu.dot_dimension_numbers<[1], [0], [0], [1], [0, 0, 1, 1], [], []>} : vector<32x512xf32>, vector<512x128xf32>, vector<32x128xf32> -> vector<32x128xf32>
    %c0_49 = arith.constant 0 : index
    %c0_50 = arith.constant 0 : index
    %151 = vector.load %arg13[%c0_49, %c0_50] : memref<1x128xf32, #tpu.memory_space<vmem>>, vector<1x128xf32>
    %152 = vector.broadcast %151 : vector<1x128xf32> to vector<32x128xf32>
    %153 = arith.addf %150, %152 : vector<32x128xf32>
    %154 = arith.addf %141, %153 : vector<32x128xf32>
    %155 = vector.extract_strided_slice %0 {offsets = [4, 0], sizes = [1, 128], strides = [1, 1]} : vector<6x128xf32> to vector<1x128xf32>
    %156 = vector.extract_strided_slice %0 {offsets = [5, 0], sizes = [1, 128], strides = [1, 1]} : vector<6x128xf32> to vector<1x128xf32>
    %cst_51 = arith.constant dense<0.000000e+00> : vector<32xf32>
    %157 = vector.multi_reduction <add>, %154, %cst_51 [1] : vector<32x128xf32> to vector<32xf32>
    %158 = vector.shape_cast %157 : vector<32xf32> to vector<32x1xf32>
    %cst_52 = arith.constant 1.280000e+02 : f32
    %159 = vector.broadcast %cst_52 : f32 to vector<32x1xf32>
    %160 = arith.divf %158, %159 : vector<32x1xf32>
    %161 = vector.broadcast %160 : vector<32x1xf32> to vector<32x128xf32>
    %162 = arith.subf %154, %161 : vector<32x128xf32>
    %163 = arith.mulf %162, %162 : vector<32x128xf32>
    %cst_53 = arith.constant dense<0.000000e+00> : vector<32xf32>
    %164 = vector.multi_reduction <add>, %163, %cst_53 [1] : vector<32x128xf32> to vector<32xf32>
    %165 = vector.shape_cast %164 : vector<32xf32> to vector<32x1xf32>
    %cst_54 = arith.constant 1.280000e+02 : f32
    %166 = vector.broadcast %cst_54 : f32 to vector<32x1xf32>
    %167 = arith.divf %165, %166 : vector<32x1xf32>
    %168 = vector.broadcast %160 : vector<32x1xf32> to vector<32x128xf32>
    %169 = arith.subf %154, %168 : vector<32x128xf32>
    %cst_55 = arith.constant 9.99999974E-6 : f32
    %170 = vector.broadcast %cst_55 : f32 to vector<32x1xf32>
    %171 = arith.addf %167, %170 : vector<32x1xf32>
    %172 = math.rsqrt %171 : vector<32x1xf32>
    %173 = vector.broadcast %172 : vector<32x1xf32> to vector<32x128xf32>
    %174 = arith.mulf %169, %173 : vector<32x128xf32>
    %175 = vector.broadcast %155 : vector<1x128xf32> to vector<32x128xf32>
    %176 = arith.mulf %174, %175 : vector<32x128xf32>
    %177 = vector.broadcast %156 : vector<1x128xf32> to vector<32x128xf32>
    %178 = arith.addf %176, %177 : vector<32x128xf32>
    %c0_56 = arith.constant 0 : index
    %c0_57 = arith.constant 0 : index
    %c0_58 = arith.constant 0 : index
    %179 = vector.load %arg15[%c0_56, %c0_57, %c0_58] : memref<1x32x128xf32, #tpu.memory_space<vmem>>, vector<1x32x128xf32>
    %180 = vector.shape_cast %179 : vector<1x32x128xf32> to vector<32x128xf32>
    %181 = vector.shape_cast %178 : vector<32x128xf32> to vector<1x32x128xf32>
    tpu.vector_store %arg15[%c0_56, %c0_57, %c0_58], %181 {strides = array<i32>} : memref<1x32x128xf32, #tpu.memory_space<vmem>>, vector<1x32x128xf32>,
    return
  }
  func.func @transform_0(%arg0: i32, %arg1: i32) -> (i32, i32, i32) {
    %c0_i32 = arith.constant 0 : i32
    %c0_i32_0 = arith.constant 0 : i32
    %c0_i32_1 = arith.constant 0 : i32
    return %arg0, %c0_i32, %c0_i32_0 : i32, i32, i32
  }
  func.func @transform_1(%arg0: i32, %arg1: i32) -> (i32, i32, i32) {
    %c0_i32 = arith.constant 0 : i32
    %c0_i32_0 = arith.constant 0 : i32
    %c0_i32_1 = arith.constant 0 : i32
    return %arg0, %c0_i32, %c0_i32_0 : i32, i32, i32
  }
  func.func @transform_2(%arg0: i32, %arg1: i32) -> (i32, i32) {
    %c0_i32 = arith.constant 0 : i32
    %c0_i32_0 = arith.constant 0 : i32
    %c0_i32_1 = arith.constant 0 : i32
    return %c0_i32, %c0_i32_0 : i32, i32
  }
  func.func @transform_3(%arg0: i32, %arg1: i32) -> (i32, i32) {
    %c0_i32 = arith.constant 0 : i32
    %c0_i32_0 = arith.constant 0 : i32
    %c0_i32_1 = arith.constant 0 : i32
    return %c0_i32, %c0_i32_0 : i32, i32
  }
  func.func @transform_4(%arg0: i32, %arg1: i32) -> (i32, i32) {
    %c0_i32 = arith.constant 0 : i32
    %c0_i32_0 = arith.constant 0 : i32
    %c0_i32_1 = arith.constant 0 : i32
    return %c0_i32, %c0_i32_0 : i32, i32
  }
  func.func @transform_5(%arg0: i32, %arg1: i32) -> (i32, i32) {
    %c0_i32 = arith.constant 0 : i32
    %c0_i32_0 = arith.constant 0 : i32
    %c0_i32_1 = arith.constant 0 : i32
    return %c0_i32, %c0_i32_0 : i32, i32
  }
  func.func @transform_6(%arg0: i32, %arg1: i32) -> (i32, i32) {
    %c0_i32 = arith.constant 0 : i32
    %c0_i32_0 = arith.constant 0 : i32
    %c0_i32_1 = arith.constant 0 : i32
    return %c0_i32, %c0_i32_0 : i32, i32
  }
  func.func @transform_7(%arg0: i32, %arg1: i32) -> (i32, i32) {
    %c0_i32 = arith.constant 0 : i32
    %c0_i32_0 = arith.constant 0 : i32
    %c0_i32_1 = arith.constant 0 : i32
    return %c0_i32, %c0_i32_0 : i32, i32
  }
  func.func @transform_8(%arg0: i32, %arg1: i32) -> (i32, i32) {
    %c0_i32 = arith.constant 0 : i32
    %c0_i32_0 = arith.constant 0 : i32
    %c0_i32_1 = arith.constant 0 : i32
    return %c0_i32, %c0_i32_0 : i32, i32
  }
  func.func @transform_9(%arg0: i32, %arg1: i32) -> (i32, i32) {
    %c0_i32 = arith.constant 0 : i32
    %c0_i32_0 = arith.constant 0 : i32
    %c0_i32_1 = arith.constant 0 : i32
    return %c0_i32, %c0_i32_0 : i32, i32
  }
  func.func @transform_10(%arg0: i32, %arg1: i32) -> (i32, i32) {
    %c0_i32 = arith.constant 0 : i32
    %c0_i32_0 = arith.constant 0 : i32
    %c0_i32_1 = arith.constant 0 : i32
    return %c0_i32, %c0_i32_0 : i32, i32
  }
  func.func @transform_11(%arg0: i32, %arg1: i32) -> (i32, i32) {
    %c0_i32 = arith.constant 0 : i32
    %c0_i32_0 = arith.constant 0 : i32
    %c0_i32_1 = arith.constant 0 : i32
    return %c0_i32, %c0_i32_0 : i32, i32
  }
  func.func @transform_12(%arg0: i32, %arg1: i32) -> (i32, i32) {
    %c0_i32 = arith.constant 0 : i32
    %c0_i32_0 = arith.constant 0 : i32
    %c0_i32_1 = arith.constant 0 : i32
    return %c0_i32, %c0_i32_0 : i32, i32
  }
  func.func @transform_13(%arg0: i32, %arg1: i32) -> (i32, i32, i32) {
    %c0_i32 = arith.constant 0 : i32
    %c0_i32_0 = arith.constant 0 : i32
    return %arg0, %arg1, %c0_i32 : i32, i32, i32
  }
}

</mosaic_0001>

<bundles_post_ra>
// kernel: tpu_custom_call.1
= control target key start
LH: loop header
LB: loop body
LE: loop exit
PB: predicated region body
PF: predicated region fallthrough
CT: control target
= control target key end

     0   :  { %s8649_s0 = inlined_call_operand.hbm [shape: f32[2,64,128], index: 0, kind: input, shape index: {}]   ;;  %s8650_s1 = inlined_call_operand.hbm [shape: f32[2,64,128], index: 1, kind: input, shape index: {}]   ;;  %s8651_s2 = inlined_call_operand.hbm [shape: f32[128,128], index: 2, kind: input, shape index: {}]   ;;  %s8652_s3 = inlined_call_operand.hbm [shape: f32[128,256], index: 3, kind: input, shape index: {}]   ;;  %s8653_s4 = inlined_call_operand.hbm [shape: f32[128,128], index: 4, kind: input, shape index: {}]   ;;  %s8654_s5 = inlined_call_operand.hbm [shape: f32[128,128], index: 5, kind: input, shape index: {}]   ;;  %s8655_s6 = inlined_call_operand.hbm [shape: f32[128,256], index: 6, kind: input, shape index: {}]   ;;  %s8656_s7 = inlined_call_operand.hbm [shape: f32[128,128], index: 7, kind: input, shape index: {}]   ;;  %s8657_s8 = inlined_call_operand.hbm [shape: f32[128,512], index: 8, kind: input, shape index: {}]   ;;  %s8658_s9 = inlined_call_operand.vmem [shape: f32[1,512], index: 9, kind: input, shape index: {}]   ;;  %s8659_s10 = inlined_call_operand.hbm [shape: f32[512,128], index: 10, kind: input, shape index: {}]   ;;  %s8660_s11 = inlined_call_operand.vmem [shape: f32[1,128], index: 11, kind: input, shape index: {}]   ;;  %s8661_s12 = inlined_call_operand.vmem [shape: f32[6,128], index: 12, kind: input, shape index: {}]   ;;  %s8662_s13 = inlined_call_operand.hbm [shape: f32[2,64,128], index: 13, kind: output, shape index: {}]  }
   0x1   :  { %8675 = sst [smem:[#allocation36_spill]] %s8651_s2 }
   0x2   :  { %8676 = sst [smem:[#allocation37_spill]] %s8652_s3 }
   0x3   :  { %8677 = sst [smem:[#allocation38_spill]] %s8653_s4 }
   0x4   :  { %8678 = sst [smem:[#allocation39_spill]] %s8654_s5 }
   0x5   :  { %8679 = sst [smem:[#allocation40_spill]] %s8655_s6 }
   0x6   :  { %8680 = sst [smem:[#allocation41_spill]] %s8656_s7 }
   0x7   :  { %8681 = sst [smem:[#allocation42_spill]] %s8657_s8 }
   0x8   :  { %8682 = sst [smem:[#allocation43_spill]] %s8658_s9 }
   0x9   :  { %8683 = sst [smem:[#allocation44_spill]] %s8659_s10 }
   0xa   :  { %8684 = sst [smem:[#allocation45_spill]] %s8660_s11 }
   0xb   :  { %8685 = sst [smem:[#allocation46_spill]] %s8661_s12 }
   0xc   :  { %8686 = sst [smem:[#allocation47_spill]] %s8662_s13 }
   0xd   :  { %18 = vsyncpa [#allocation5], 0 }
   0xe   :  { %20 = vsyncpa [#allocation5 + $0x1], 0 }
   0xf   :  { %21 = vsyncpa [#allocation8], 0 }
  0x10   :  { %23 = vsyncpa [#allocation8 + $0x1], 0 }
  0x11   :  { %24 = vsyncpa [#allocation11], 0 }
  0x12   :  { %25 = vsyncpa [#allocation14], 0 }
  0x13   :  { %26 = vsyncpa [#allocation17], 0 }
  0x14   :  { %27 = vsyncpa [#allocation20], 0 }
  0x15   :  { %28 = vsyncpa [#allocation6], 0 }
  0x16   :  { %30 = vsyncpa [#allocation6 + $0x1], 0  ;;  %s6961_s25 = smov 0   ;;  %s6963_s26 = smov 0  }
  0x17   :  { %s6965_s27 = smov 0   ;;  %s6967_s28 = smov 0  }
  0x18   :  { %s6969_s29 = smov 0   ;;  %s6971_s30 = smov 0  }
  0x19   :  { %s6973_s14 = smov 0   ;;  %s6975_s15 = smov 0  }
  0x1a   :  { %s6977_s16 = smov 0   ;;  %s6979_s17 = smov 0  }
  0x1b   :  { %s6981_s18 = smov 0  }
  0x1c LB: > { %8687 = sst [smem:[#allocation30_spill]] %s6848_s14  ;;  %s7017_s19 = sadd.s32 4294967295, %s6864_s18   ;;  %s6864_s18 = sphi %s6981_s18, %s36_s18   ;;  %s6860_s17 = sphi %s6979_s17, %s8723_s17   ;;  %s6856_s16 = sphi %s6977_s16, %s8731_s16   ;;  %s6852_s15 = sphi %s6975_s15, %s8721_s15   ;;  %s6848_s14 = sphi %s6973_s14, %s8730_s14   ;;  %s6844_s30 = sphi %s6971_s30, %s8729_s30   ;;  %s6840_s29 = sphi %s6969_s29, %s8728_s29   ;;  %s6836_s28 = sphi %s6967_s28, %s8727_s28   ;;  %s6832_s27 = sphi %s6965_s27, %s8726_s27   ;;  %s6828_s26 = sphi %s6963_s26, %s8725_s26   ;;  %s6824_s25 = sphi %s6961_s25, %s8724_s25  }
  0x1d   : > { %8688 = sst [smem:[#allocation31_spill]] %s6852_s15  ;;  %p5007_p0 = scmp.ge.s32.totalorder %s6864_s18, 1 }
  0x1e   : > { %8689 = sst [smem:[#allocation32_spill]] %s6860_s17  ;;  %p69_p1 = scmp.eq.s32.totalorder %s7017_s19, 0 }
  0x1f   : > { %p364_p2 = scmp.lt.s32.totalorder %s6864_s18, 5  ;;  %s6866_s21 = smov [#allocation9]  }
  0x20   : > { %s376_s22 = sshll.u32 %s6866_s21, 4  ;;  %s6867_s24 = smov [#allocation10]   ;;  %s377_s22 = int_to_ptr.vmem [resolvable:$true] %s376_s22 }
  0x21   : > { %p7022_p3 = pnand %p5007_p0, %p364_p2  ;;  %s389_s13 = sshll.u32 %s6867_s24, 4  ;;  %s390_s13 = int_to_ptr.vmem [resolvable:$true] %s389_s13 }
  0x22   : > { %s6467_s11 = scalar_lea.vmem %s377_s22, 2048  ;;  %p6475_p10 = scmp.lt.s32.totalorder %s377_s22, %s377_s22 }
  0x23   : > { %s8690_s20 = scalar_select %p7022_p3, 1, 0 }
  0x24   : > { %p6076_p4 = pneg %p7022_p3  ;;  %p6468_p7 = scmp.ne.s32.totalorder %s377_s22, %s6467_s11 }
  0x25   : > { %8691 = sst [smem:[#allocation33_spill]] %s8690_s20  ;;  %p6476_p11 = scmp.lt.s32.totalorder %s6467_s11, %s6467_s11 }
  0x26   : > { %p7030_p5 = pnand %p6076_p4, %p69_p1 }
  0x27   : > { %p6477_p12 = por %p6476_p11, %p6475_p10 }
  0x28   : > { %p7036_p6 = pneg %p7030_p5 }
  0x2a   : > { %p6470_p8 = pnand %p6468_p7, %p7036_p6 }
  0x2c   : > { %p6471_p9 = pneg %p6470_p8 }
  0x2e   : > { %p6478_p13 = pnand %p6477_p12, %p6471_p9 }
  0x30   : > { %6481 = shalt.err (!%p6478_p13)
}
  0x31   : > { %s8666_s21 = smov 128   ;;  %s8668_s24 = smov 8  }
  0x32   : > { %s8694_s2 = sld [smem:[#allocation36_spill]]  ;;  %s6493_s12 = scalar_lea.vmem %s390_s13, 4096 }
  0x33   : > { %p6494_p0 = scmp.ne.s32.totalorder %s390_s13, %s6493_s12  ;;  %p6501_p7 = scmp.lt.s32.totalorder %s390_s13, %s390_s13 }
  0x34   : > { %p6502_p8 = scmp.lt.s32.totalorder %s6493_s12, %s6493_s12 }
  0x35   : > { %p6496_p2 = pnand %p6494_p0, %p7036_p6 }
  0x36   : > { %p6503_p9 = por %p6502_p8, %p6501_p7 }
  0x37   : > { %p6497_p4 = pneg %p6496_p2 }
  0x38   : > { %6079 = dma.hbm_to_vmem [thread:$0]  (!%p7030_p5), %s8694_s2, 2048, %s377_s22, [#allocation8], %s8666_s21, %s8666_s21, %s8668_s24  }
  0x39   : > { %p6504_p10 = pnand %p6503_p9, %p6497_p4 }
  0x3b   : > { %6507 = shalt.err (!%p6504_p10)
}
  0x3c   : > { %s8670_s11 = smov 256   ;;  %s8671_s20 = smov 16  }
  0x3d   : > { %s8695_s3 = sld [smem:[#allocation37_spill]]  ;;  %s6872_s22 = smov [#allocation13]  }
  0x3e   : > { %s415_s21 = sshll.u32 %s6872_s22, 4  ;;  %s6873_s24 = smov [#allocation16]   ;;  %s416_s21 = int_to_ptr.vmem [resolvable:$true] %s415_s21 }
  0x3f   : > { %s441_s2 = sshll.u32 %s6873_s24, 4  ;;  %s6519_s12 = scalar_lea.vmem %s416_s21, 2048  ;;  %s442_s2 = int_to_ptr.vmem [resolvable:$true] %s441_s2 }
  0x40   : > { %p6520_p11 = scmp.ne.s32.totalorder %s416_s21, %s6519_s12  ;;  %p6527_p0 = scmp.lt.s32.totalorder %s416_s21, %s416_s21 }
  0x41   : > { %p6528_p2 = scmp.lt.s32.totalorder %s6519_s12, %s6519_s12 }
  0x42   : > { %p6522_p12 = pnand %p6520_p11, %p7036_p6 }
  0x43   : > { %6082 = dma.hbm_to_vmem [thread:$0]  (!%p7030_p5), %s8695_s3, 4096, %s390_s13, [#allocation11], %s8670_s11, %s8670_s11, %s8671_s20  }
  0x44   : > { %p6523_p13 = pneg %p6522_p12  ;;  %p6529_p4 = por %p6528_p2, %p6527_p0 }
  0x46   : > { %p6530_p7 = pnand %p6529_p4, %p6523_p13 }
  0x48   : > { %6533 = shalt.err (!%p6530_p7)
}
  0x49   : > { %s8696_s9 = smov 8   ;;  %s8697_s13 = smov 128  }
  0x4a   : > { %s8698_s5 = sld [smem:[#allocation39_spill]]  ;;  %s6545_s24 = scalar_lea.vmem %s442_s2, 2048 }
  0x4b   : > { %p6546_p8 = scmp.ne.s32.totalorder %s442_s2, %s6545_s24  ;;  %p6553_p11 = scmp.lt.s32.totalorder %s442_s2, %s442_s2 }
  0x4c   : > { %p6554_p12 = scmp.lt.s32.totalorder %s6545_s24, %s6545_s24 }
  0x4d   : > { %p6548_p9 = pnand %p6546_p8, %p7036_p6 }
  0x4e   : > { %p6555_p0 = por %p6554_p12, %p6553_p11 }
  0x4f   : > { %p6549_p10 = pneg %p6548_p9 }
  0x50   : > { %6088 = dma.hbm_to_vmem [thread:$0]  (!%p7030_p5), %s8698_s5, 2048, %s416_s21, [#allocation14], %s8697_s13, %s8697_s13, %s8696_s9  }
  0x51   : > { %p6556_p13 = pnand %p6555_p0, %p6549_p10 }
  0x53   : > { %6559 = shalt.err (!%p6556_p13)
}
  0x54   : > { %s8699_s7 = sld [smem:[#allocation41_spill]]  ;;  %s6874_s21 = smov [#allocation12]  }
  0x55   : > { %s402_s14 = sshll.u32 %s6874_s21, 4  ;;  %s6875_s22 = smov [#allocation15]   ;;  %s403_s14 = int_to_ptr.vmem [resolvable:$true] %s402_s14 }
  0x56   : > { %s428_s20 = sshll.u32 %s6875_s22, 4  ;;  %s6571_s24 = scalar_lea.vmem %s403_s14, 2048  ;;  %s429_s20 = int_to_ptr.vmem [resolvable:$true] %s428_s20 }
  0x57   : > { %p6572_p2 = scmp.ne.s32.totalorder %s403_s14, %s6571_s24  ;;  %p6579_p8 = scmp.lt.s32.totalorder %s403_s14, %s403_s14 }
  0x58   : > { %p6580_p9 = scmp.lt.s32.totalorder %s6571_s24, %s6571_s24 }
  0x59   : > { %p6574_p4 = pnand %p6572_p2, %p7036_p6 }
  0x5a   : > { %6094 = dma.hbm_to_vmem [thread:$0]  (!%p7030_p5), %s8699_s7, 2048, %s442_s2, [#allocation17], %s8697_s13, %s8697_s13, %s8696_s9  }
  0x5b   : > { %p6575_p7 = pneg %p6574_p4  ;;  %p6581_p10 = por %p6580_p9, %p6579_p8 }
  0x5d   : > { %p6582_p11 = pnand %p6581_p10, %p6575_p7 }
  0x5f   : > { %6585 = shalt.err (!%p6582_p11)
}
  0x60   : > { %s8700_s4 = sld [smem:[#allocation38_spill]]  ;;  %s6597_s12 = scalar_lea.vmem %s429_s20, 4096 }
  0x61   : > { %p6598_p12 = scmp.ne.s32.totalorder %s429_s20, %s6597_s12  ;;  %p6605_p2 = scmp.lt.s32.totalorder %s429_s20, %s429_s20 }
  0x62   : > { %p6606_p4 = scmp.lt.s32.totalorder %s6597_s12, %s6597_s12 }
  0x63   : > { %p6600_p0 = pnand %p6598_p12, %p7036_p6 }
  0x64   : > { %p6607_p8 = por %p6606_p4, %p6605_p2 }
  0x65   : > { %p6601_p13 = pneg %p6600_p0 }
  0x66   : > { %6085 = dma.hbm_to_vmem [thread:$0]  (!%p7030_p5), %s8700_s4, 2048, %s403_s14, [#allocation11], %s8697_s13, %s8697_s13, %s8696_s9  }
  0x67   : > { %p6608_p7 = pnand %p6607_p8, %p6601_p13 }
  0x69   : > { %6611 = shalt.err (!%p6608_p7)
}
  0x6a   : > { %s8701_s21 = smov 16   ;;  %s8702_s22 = smov 256  }
  0x6b   : > { %s8703_s6 = sld [smem:[#allocation40_spill]]  ;;  %s6876_s14 = smov [#allocation18]  }
  0x6c   : > { %s454_s2 = sshll.u32 %s6876_s14, 4  ;;  %s455_s2 = int_to_ptr.vmem [resolvable:$true] %s454_s2 }
  0x6d   : > { %s6623_s11 = scalar_lea.vmem %s455_s2, 8192  ;;  %p6631_p12 = scmp.lt.s32.totalorder %s455_s2, %s455_s2 }
  0x6e   : > { %p6624_p9 = scmp.ne.s32.totalorder %s455_s2, %s6623_s11  ;;  %p6632_p0 = scmp.lt.s32.totalorder %s6623_s11, %s6623_s11 }
  0x70   : > { %p6626_p10 = pnand %p6624_p9, %p7036_p6  ;;  %p6633_p13 = por %p6632_p0, %p6631_p12 }
  0x71   : > { %6091 = dma.hbm_to_vmem [thread:$0]  (!%p7030_p5), %s8703_s6, 4096, %s429_s20, [#allocation14], %s8702_s22, %s8702_s22, %s8701_s21  }
  0x72   : > { %p6627_p11 = pneg %p6626_p10 }
  0x74   : > { %p6634_p2 = pnand %p6633_p13, %p6627_p11 }
  0x76   : > { %6637 = shalt.err (!%p6634_p2)
}
  0x77   : > { %s6877_s12 = smov 512   ;;  %s6878_s4 = smov 32  }
  0x78   : > { %s8704_s8 = sld [smem:[#allocation42_spill]]  ;;  %s6879_s21 = smov [#allocation19]  }
  0x79   : > { %s470_s22 = sshll.u32 %s6879_s21, 4  ;;  %s471_s22 = int_to_ptr.vmem [resolvable:$true] %s470_s22 }
  0x7a   : > { %s6649_s24 = scalar_lea.vmem %s471_s22, 8192  ;;  %p6657_p9 = scmp.lt.s32.totalorder %s471_s22, %s471_s22 }
  0x7b   : > { %p6650_p4 = scmp.ne.s32.totalorder %s471_s22, %s6649_s24  ;;  %p6658_p10 = scmp.lt.s32.totalorder %s6649_s24, %s6649_s24 }
  0x7d   : > { %p6652_p8 = pnand %p6650_p4, %p7036_p6  ;;  %p6659_p11 = por %p6658_p10, %p6657_p9 }
  0x7e   : > { %6097 = dma.hbm_to_vmem [thread:$0]  (!%p7030_p5), %s8704_s8, 8192, %s455_s2, [#allocation17], %s6877_s12, %s6877_s12, %s6878_s4  }
  0x7f   : > { %p6653_p7 = pneg %p6652_p8 }
  0x81   : > { %p6660_p12 = pnand %p6659_p11, %p6653_p7 }
  0x83   : > { %6663 = shalt.err (!%p6660_p12)
}
  0x84   : > { %s8705_s10 = sld [smem:[#allocation44_spill]]  ;;  %s5006_s15 = sadd.s32 4294967294, %s6864_s18  }
  0x85   : > { %s45_s23 = sadd.s32 1, %s6856_s16  ;;  %s48_s2 = sadd.s32 1, %s6860_s17 }
  0x86   : > { %p46_p6 = scmp.ge.s32.totalorder %s45_s23, 2  ;;  %s55_s11 = sadd.s32 1, %s6844_s30 }
  0x87   : > { %p62_p0 = scmp.ne.s32.totalorder %s6844_s30, %s6840_s29  ;;  %p63_p13 = scmp.eq.s32.totalorder %s6864_s18, 0 }
  0x88   : > { %s8733_s23 = smov (%p46_p6, %s45_s23), 0  ;;  %s8735_s2 = smov (!%p46_p6, %s48_s2), %s6860_s17 }
  0x89   : > { %8706 = sst [smem:[#allocation34_spill]] %s8733_s23  ;;  %p68_p2 = scmp.ne.s32.totalorder %s6840_s29, %s6836_s28 }
  0x8a   : > { %6100 = dma.hbm_to_vmem [thread:$0]  (!%p7030_p5), %s8705_s10, 8192, %s471_s22, [#allocation20], %s8697_s13, %s8697_s13, %s8696_s9  }
  0x8b   : > { %p50_p5 = scmp.ge.s32.totalorder %s8735_s2, 2  ;;  %s336_s12 = ssub.s32 %s6856_s16, %s8733_s23 }
  0x8c   : > { %p7131_p4 = por %p63_p13, %p62_p0  ;;  %p7137_p8 = por %p69_p1, %p68_p2 }
  0x8d   : > { %s8737_s2 = smov (%p50_p5, %s8735_s2), 0  ;;  %s340_s21 = sadd.s32 1, %s6832_s27 }
  0x8e   : > { %8709 = sst [smem:[#allocation35_spill]] %s8737_s2  ;;  %p350_p7 = scmp.ne.s32.totalorder %s6832_s27, %s6828_s26 }
  0x8f   : > { %s52_s28 = ssub.s32 %s6860_s17, %s8737_s2  ;;  %p351_p9 = scmp.eq.s32.totalorder %s7017_s19, 3 }
  0x90   : > { %p53_p10 = scmp.eq.s32.totalorder %s52_s28, 0  ;;  %s337_s22 = sor.u32 %s336_s12, %s52_s28 }
  0x91   : > { %p338_p11 = scmp.eq.s32.totalorder %s337_s22, 0  ;;  %p7149_p12 = por %p351_p9, %p350_p7 }
  0x92   : > { %s7154_s14 = scalar_select %p53_p10, %s6844_s30, %s55_s11  }
  0x93   : > { %s7157_s4 = scalar_select %p338_p11, %s6832_s27, %s340_s21  }
  0x94   : > { %p356_p6 = scmp.ne.s32.totalorder %s6828_s26, %s6824_s25  ;;  %p357_p0 = scmp.eq.s32.totalorder %s5006_s15, 3 }
  0x95   : > { %p6120_p13 = scmp.lt.s32.totalorder %s6864_s18, 4  ;;  %s490_s5 = sand.u32 1, %s6844_s30  }
  0x96   : > { %p7163_p2 = por %p357_p0, %p356_p6  ;;  %s5017_s7 = sshll.u32 %s490_s5, 6 }
  0x97   : > { %s5172_s8 = sshll.u32 %s6860_s17, 10  ;;  %s494_s10 = scalar_lea.vmem [#allocation4], %s5017_s7 }
  0x98   : > { %s500_s22 = scalar_lea.hbm %s8649_s0, %s5172_s8  ;;  %s501_s2 = sshll.u32 %s494_s10, 4  ;;  %s502_s2 = int_to_ptr.vmem [resolvable:$true] %s501_s2 }
  0x99   : > { %p7173_p5 = pnand %p6120_p13, %p7131_p4  ;;  %s7180_s23 = scalar_lea.hbm %s8650_s1, %s5172_s8 }
  0x9a   : > { %s491_s17 = scalar_lea.sflag [#allocation5], %s490_s5  ;;  %s6677_s12 = scalar_lea.vmem %s502_s2, 1024 }
  0x9b   : > { %p6666_p7 = pneg %p7173_p5  ;;  %p6678_p9 = scmp.ne.s32.totalorder %s502_s2, %s6677_s12 }
  0x9c   : > { %s6880_s10 = smov [#allocation4]  }
  0x9d   : > { %p6680_p10 = pnand %p6678_p9, %p6666_p7  ;;  %s6682_s3 = sshll.u32 %s6880_s10, 4  ;;  %s6683_s3 = int_to_ptr.vmem [resolvable:$false] %s6682_s3 }
  0x9e   : > { %s6684_s28 = scalar_lea.vmem %s6683_s3, 2048  ;;  %p6685_p11 = scmp.lt.s32.totalorder %s502_s2, %s6683_s3 }
  0x9f   : > { %p6681_p4 = pneg %p6680_p10  ;;  %p6686_p6 = scmp.lt.s32.totalorder %s6684_s28, %s6677_s12 }
  0xa1   : > { %p6687_p0 = por %p6686_p6, %p6685_p11 }
  0xa3   : > { %p6688_p13 = pnand %p6687_p0, %p6681_p4 }
  0xa5   : > { %6691 = shalt.err (!%p6688_p13)
}
  0xa6   : > { %6104 = dma.hbm_to_vmem [thread:$0]  (!%p7173_p5), %s500_s22, 1024, %s502_s2, %s491_s17, %s8697_s13, %s8697_s13, %s8696_s9  }
  0xa7   : > { %s515_s5 = scalar_lea.vmem [#allocation7], %s5017_s7  ;;  %s511_s15 = sand.u32 1, %s6864_s18  }
  0xa8   : > { %s522_s8 = sshll.u32 %s515_s5, 4  ;;  %s512_s21 = scalar_lea.sflag [#allocation8], %s511_s15  ;;  %s523_s8 = int_to_ptr.vmem [resolvable:$true] %s522_s8 }
  0xa9   : > { %s6705_s10 = scalar_lea.vmem %s523_s8, 1024  ;;  %s6881_s12 = smov [#allocation7]  }
  0xaa   : > { %p6706_p9 = scmp.ne.s32.totalorder %s523_s8, %s6705_s10  ;;  %s6710_s3 = sshll.u32 %s6881_s12, 4  ;;  %s6711_s3 = int_to_ptr.vmem [resolvable:$false] %s6710_s3 }
  0xab   : > { %s6712_s28 = scalar_lea.vmem %s6711_s3, 2048  ;;  %p6713_p11 = scmp.lt.s32.totalorder %s523_s8, %s6711_s3 }
  0xac   : > { %p6708_p10 = pnand %p6706_p9, %p6666_p7  ;;  %p6714_p6 = scmp.lt.s32.totalorder %s6712_s28, %s6705_s10 }
  0xae   : > { %p6709_p4 = pneg %p6708_p10  ;;  %p6715_p0 = por %p6714_p6, %p6713_p11 }
  0xb0   : > { %p6716_p13 = pnand %p6715_p0, %p6709_p4 }
  0xb2   : > { %6719 = shalt.err (!%p6716_p13)
}
  0xb3   : > { %6107 = dma.hbm_to_vmem [thread:$0]  (!%p7173_p5), %s7180_s23, 1024, %s523_s8, %s512_s21, %s8697_s13, %s8697_s13, %s8696_s9  }
  0xb4   : > { %534 = sbr.rel (%p7022_p3) target bundleno = 4860 (0x12fc), region = 72  ;;  %s536_s17 = sand.u32 (!%p7022_p3), 1, %s6840_s29  }
  0xb5   : > { %s5024_s2 = sshll.u32 (!%p7022_p3), %s536_s17, 6  ;;  %s537_s22 = scalar_lea.sflag (!%p7022_p3), [#allocation5], %s536_s17 }
  0xb6   : > { %s7205_s5 = scalar_lea.vmem (!%p7022_p3), [#allocation4], %s5024_s2 }
  0xb9   : > { %6791 = dma.done.wait (%p7137_p8), %s537_s22, 1024  }
  0xba   : > { %6793 = vsyncadd (%p7137_p8), %s537_s22, 4294966272  ;;  %s545_s11 = sand.u32 1, %s7017_s19   ;;  %s7212_s9 = scalar_lea.vmem [#allocation7], %s5024_s2 }
  0xbb   : > { %s546_s15 = scalar_lea.sflag [#allocation8], %s545_s11 }
  0xbc   : > { %6795 = dma.done.wait (%p7137_p8), %s546_s15, 1024  }
  0xbd   : > { %6797 = vsyncadd (%p7137_p8), %s546_s15, 4294966272 }
  0xbe   : > { %6799 = dma.done.wait (%p69_p1), [#allocation8], 2048  }
  0xbf   : > { %6801 = vsyncadd (%p69_p1), [#allocation8], 4294965248 }
  0xc0   : > { %6803 = dma.done.wait (%p69_p1), [#allocation11], 6144  }
  0xc1   : > { %6805 = vsyncadd (%p69_p1), [#allocation11], 4294961152 }
  0xc2   : > { %6807 = dma.done.wait (%p69_p1), [#allocation14], 6144  }
  0xc3   : > { %6809 = vsyncadd (%p69_p1), [#allocation14], 4294961152 }
  0xc4   : > { %6811 = dma.done.wait (%p69_p1), [#allocation17], 10240  }
  0xc5   : > { %6813 = vsyncadd (%p69_p1), [#allocation17], 4294957056 }
  0xc6   : > { %6815 = dma.done.wait (%p69_p1), [#allocation20], 8192  }
  0xc7   : > { %6817 = vsyncadd (%p69_p1), [#allocation20], 4294959104  ;;  %s626_s13 = sand.u32 1, %s6828_s26   ;;  %s8714_s21 = sld [smem:[#allocation46_spill]] }
  0xc8   : > { %s5034_s23 = sshll.u32 %s626_s13, 5  ;;  %s8715_s12 = sld [smem:[#allocation30_spill]] }
  0xc9   : > { %s7246_s10 = scalar_lea.vmem [#allocation21], %s5034_s23 }
  0xcd   : > { %v7244_v0 = vld [vmem:[%s8714_s21] sm:$0x3f] }
  0xce   : > { %p5035_p3 = scmp.ne.s32.totalorder %s8715_s12, 0 }
  0xcf   : > { %s6883_s19 = smov (!%p5035_p3), 64  }
  0xd0   : > { %634 = sbr.rel (%p5035_p3) target bundleno = 621 (0x26d), region = 116 }
  0xd5   : > { %v674_v1 = vld [vmem:[#allocation10 + $0xf8] sm:$0xff]  ;;  %v673_v3 = vld [vmem:[#allocation10 + $0xf0] sm:$0xff]  ;;  %v672_v5 = vld [vmem:[#allocation10 + $0xe8] sm:$0xff]  ;;  %vm852_vm0 = vcmask 523264  }
  0xd6   : > { %v924_v2 = vld [vmem:[#allocation15 + $0xf8] sm:$0xff]  ;;  %675 = vmatprep.subr.mxu0 %v674_v1  ;;  %v923_v4 = vld [vmem:[#allocation15 + $0xf0] sm:$0xff]  ;;  %v922_v6 = vld [vmem:[#allocation15 + $0xe8] sm:$0xff] }
  0xd7   : > { %925 = vmatprep.subr.mxu1 %v924_v2  ;;  %676 = vmatpush1.msra.mxu0 %v673_v3  ;;  %v671_v7 = vld [vmem:[#allocation10 + $0xe0] sm:$0xff]  ;;  %v670_v9 = vld [vmem:[#allocation10 + $0xd8] sm:$0xff]  ;;  %v669_v11 = vld [vmem:[#allocation10 + $0xd0] sm:$0xff] }
  0xd8   : > { %926 = vmatpush1.msra.mxu1 %v923_v4  ;;  %v921_v8 = vld [vmem:[#allocation15 + $0xe0] sm:$0xff]  ;;  %677 = vmatprep.subr.mxu0 %v672_v5  ;;  %v920_v10 = vld [vmem:[#allocation15 + $0xd8] sm:$0xff]  ;;  %v919_v12 = vld [vmem:[#allocation15 + $0xd0] sm:$0xff]  ;;  %v6882_v4 = vmov 0.0  }
  0xd9   : > { %927 = vmatprep.subr.mxu1 %v922_v6  ;;  %678 = vmatpush1.msra.mxu0 %v671_v7  ;;  %v668_v13 = vld [vmem:[#allocation10 + $0xc8] sm:$0xff]  ;;  %v667_v15 = vld [vmem:[#allocation10 + $0xc0] sm:$0xff]  ;;  %v666_v17 = vld [vmem:[#allocation10 + $0xb8] sm:$0xff] }
  0xda   : > { %928 = vmatpush1.msra.mxu1 %v921_v8  ;;  %v918_v14 = vld [vmem:[#allocation15 + $0xc8] sm:$0xff]  ;;  %679 = vmatprep.subr.mxu0 %v670_v9  ;;  %v917_v16 = vld [vmem:[#allocation15 + $0xc0] sm:$0xff]  ;;  %v916_v18 = vld [vmem:[#allocation15 + $0xb8] sm:$0xff] }
  0xdb   : > { %929 = vmatprep.subr.mxu1 %v920_v10  ;;  %680 = vmatpush1.msra.mxu0 %v669_v11  ;;  %v665_v19 = vld [vmem:[#allocation10 + $0xb0] sm:$0xff]  ;;  %v664_v21 = vld [vmem:[#allocation10 + $0xa8] sm:$0xff]  ;;  %v663_v23 = vld [vmem:[#allocation10 + $0xa0] sm:$0xff] }
  0xdc   : > { %930 = vmatpush1.msra.mxu1 %v919_v12  ;;  %681 = vmatprep.subr.mxu0 %v668_v13  ;;  %v915_v20 = vld [vmem:[#allocation15 + $0xb0] sm:$0xff]  ;;  %v914_v22 = vld [vmem:[#allocation15 + $0xa8] sm:$0xff]  ;;  %v913_v24 = vld [vmem:[#allocation15 + $0xa0] sm:$0xff] }
  0xdd   : > { %931 = vmatprep.subr.mxu1 %v918_v14  ;;  %682 = vmatpush1.msra.mxu0 %v667_v15  ;;  %v662_v25 = vld [vmem:[#allocation10 + $0x98] sm:$0xff]  ;;  %v661_v27 = vld [vmem:[#allocation10 + $0x90] sm:$0xff]  ;;  %v660_v29 = vld [vmem:[#allocation10 + $0x88] sm:$0xff] }
  0xde   : > { %932 = vmatpush1.msra.mxu1 %v917_v16  ;;  %683 = vmatprep.subr.mxu0 %v666_v17  ;;  %v912_v26 = vld [vmem:[#allocation15 + $0x98] sm:$0xff]  ;;  %v911_v28 = vld [vmem:[#allocation15 + $0x90] sm:$0xff]  ;;  %v910_v30 = vld [vmem:[#allocation15 + $0x88] sm:$0xff] }
  0xdf   : > { %933 = vmatprep.subr.mxu1 %v916_v18  ;;  %684 = vmatpush1.msra.mxu0 %v665_v19  ;;  %v659_v31 = vld [vmem:[#allocation10 + $0x80] sm:$0xff]  ;;  %v658_v33 = vld [vmem:[#allocation10 + $0x78] sm:$0xff]  ;;  %v657_v35 = vld [vmem:[#allocation10 + $0x70] sm:$0xff] }
  0xe0   : > { %934 = vmatpush1.msra.mxu1 %v915_v20  ;;  %685 = vmatprep.subr.mxu0 %v664_v21  ;;  %v909_v32 = vld [vmem:[#allocation15 + $0x80] sm:$0xff]  ;;  %v908_v34 = vld [vmem:[#allocation15 + $0x78] sm:$0xff]  ;;  %v907_v36 = vld [vmem:[#allocation15 + $0x70] sm:$0xff] }
  0xe1   : > { %935 = vmatprep.subr.mxu1 %v914_v22  ;;  %686 = vmatpush1.msra.mxu0 %v663_v23  ;;  %v656_v37 = vld [vmem:[#allocation10 + $0x68] sm:$0xff]  ;;  %v655_v39 = vld [vmem:[#allocation10 + $0x60] sm:$0xff]  ;;  %v654_v41 = vld [vmem:[#allocation10 + $0x58] sm:$0xff] }
  0xe2   : > { %936 = vmatpush1.msra.mxu1 %v913_v24  ;;  %687 = vmatprep.subr.mxu0 %v662_v25  ;;  %v906_v38 = vld [vmem:[#allocation15 + $0x68] sm:$0xff]  ;;  %v905_v40 = vld [vmem:[#allocation15 + $0x60] sm:$0xff]  ;;  %v904_v42 = vld [vmem:[#allocation15 + $0x58] sm:$0xff] }
  0xe3   : > { %937 = vmatprep.subr.mxu1 %v912_v26  ;;  %688 = vmatpush1.msra.mxu0 %v661_v27  ;;  %v653_v43 = vld [vmem:[#allocation10 + $0x50] sm:$0xff]  ;;  %v652_v45 = vld [vmem:[#allocation10 + $0x48] sm:$0xff]  ;;  %v651_v47 = vld [vmem:[#allocation10 + $0x40] sm:$0xff] }
  0xe4   : > { %938 = vmatpush1.msra.mxu1 %v911_v28  ;;  %689 = vmatprep.subr.mxu0 %v660_v29  ;;  %v903_v44 = vld [vmem:[#allocation15 + $0x50] sm:$0xff]  ;;  %v902_v46 = vld [vmem:[#allocation15 + $0x48] sm:$0xff]  ;;  %v901_v48 = vld [vmem:[#allocation15 + $0x40] sm:$0xff] }
  0xe5   : > { %939 = vmatprep.subr.mxu1 %v910_v30  ;;  %690 = vmatpush1.msra.mxu0 %v659_v31  ;;  %v650_v49 = vld [vmem:[#allocation10 + $0x38] sm:$0xff]  ;;  %v649_v51 = vld [vmem:[#allocation10 + $0x30] sm:$0xff]  ;;  %v648_v53 = vld [vmem:[#allocation10 + $0x28] sm:$0xff] }
  0xe6   : > { %940 = vmatpush1.msra.mxu1 %v909_v32  ;;  %691 = vmatprep.subr.mxu0 %v658_v33  ;;  %v900_v50 = vld [vmem:[#allocation15 + $0x38] sm:$0xff]  ;;  %v899_v52 = vld [vmem:[#allocation15 + $0x30] sm:$0xff]  ;;  %v898_v54 = vld [vmem:[#allocation15 + $0x28] sm:$0xff] }
  0xe7   : > { %941 = vmatprep.subr.mxu1 %v908_v34  ;;  %692 = vmatpush1.msra.mxu0 %v657_v35  ;;  %v647_v55 = vld [vmem:[#allocation10 + $0x20] sm:$0xff]  ;;  %v646_v57 = vld [vmem:[#allocation10 + $0x18] sm:$0xff]  ;;  %v645_v59 = vld [vmem:[#allocation10 + $0x10] sm:$0xff] }
  0xe8   : > { %942 = vmatpush1.msra.mxu1 %v907_v36  ;;  %693 = vmatprep.subr.mxu0 %v656_v37  ;;  %v897_v56 = vld [vmem:[#allocation15 + $0x20] sm:$0xff]  ;;  %v896_v58 = vld [vmem:[#allocation15 + $0x18] sm:$0xff]  ;;  %v895_v60 = vld [vmem:[#allocation15 + $0x10] sm:$0xff] }
  0xe9   : > { %943 = vmatprep.subr.mxu1 %v906_v38  ;;  %694 = vmatpush1.msra.mxu0 %v655_v39  ;;  %v644_v61 = vld [vmem:[#allocation10 + $0x8] sm:$0xff]  ;;  %v643_v63 = vld [vmem:[#allocation10] sm:$0xff]  ;;  %v637_v7 = vld [vmem:[%s7205_s5 + $0x10] sm:$0xff] }
  0xea   : > { %944 = vmatpush1.msra.mxu1 %v905_v40  ;;  %695 = vmatprep.subr.mxu0 %v654_v41  ;;  %v894_v62 = vld [vmem:[#allocation15 + $0x8] sm:$0xff]  ;;  %v893_v1 = vld [vmem:[#allocation15] sm:$0xff]  ;;  %v887_v8 = vld [vmem:[%s7212_s9 + $0x10] sm:$0xff] }
  0xeb   : > { %945 = vmatprep.subr.mxu1 %v904_v42  ;;  %696 = vmatpush1.msra.mxu0 %v653_v43  ;;  %v635_v2 = vld [vmem:[%s7205_s5] sm:$0xff]  ;;  %v636_v5 = vld [vmem:[%s7205_s5 + $0x8] sm:$0xff]  ;;  %v638_v9 = vld [vmem:[%s7205_s5 + $0x18] sm:$0xff] }
  0xec   : > { %946 = vmatpush1.msra.mxu1 %v903_v44  ;;  %697 = vmatprep.subr.mxu0 %v652_v45  ;;  %v885_v3 = vld [vmem:[%s7212_s9] sm:$0xff]  ;;  %v886_v6 = vld [vmem:[%s7212_s9 + $0x8] sm:$0xff]  ;;  %v888_v10 = vld [vmem:[%s7212_s9 + $0x18] sm:$0xff] }
  0xed   : > { %947 = vmatprep.subr.mxu1 %v902_v46  ;;  %698 = vmatpush1.msra.mxu0 %v651_v47  ;;  %v639_v11 = vld [vmem:[%s7205_s5 + $0x20] sm:$0xff]  ;;  %v640_v13 = vld [vmem:[%s7205_s5 + $0x28] sm:$0xff]  ;;  %v641_v15 = vld [vmem:[%s7205_s5 + $0x30] sm:$0xff] }
  0xee   : > { %948 = vmatpush1.msra.mxu1 %v901_v48  ;;  %699 = vmatprep.subr.mxu0 %v650_v49  ;;  %v889_v12 = vld [vmem:[%s7212_s9 + $0x20] sm:$0xff]  ;;  %v890_v14 = vld [vmem:[%s7212_s9 + $0x28] sm:$0xff]  ;;  %v891_v16 = vld [vmem:[%s7212_s9 + $0x30] sm:$0xff] }
  0xef   : > { %949 = vmatprep.subr.mxu1 %v900_v50  ;;  %700 = vmatpush1.msra.mxu0 %v649_v51  ;;  %v642_v17 = vld [vmem:[%s7205_s5 + $0x38] sm:$0xff] }
  0xf0   : > { %950 = vmatpush1.msra.mxu1 %v899_v52  ;;  %701 = vmatprep.subr.mxu0 %v648_v53  ;;  %v892_v18 = vld [vmem:[%s7212_s9 + $0x38] sm:$0xff] }
  0xf1   : > { %951 = vmatprep.subr.mxu1 %v898_v54  ;;  %702 = vmatpush1.msra.mxu0 %v647_v55 }
  0xf2   : > { %952 = vmatpush1.msra.mxu1 %v897_v56  ;;  %703 = vmatprep.subr.mxu0 %v646_v57 }
  0xf3   : > { %953 = vmatprep.subr.mxu1 %v896_v58  ;;  %704 = vmatpush1.msra.mxu0 %v645_v59 }
  0xf4   : > { %954 = vmatpush1.msra.mxu1 %v895_v60  ;;  %705 = vmatprep.subr.mxu0 %v644_v61 }
  0xf5   : > { %955 = vmatprep.subr.mxu1 %v894_v62  ;;  %706 = vmatpush1.msra.mxu0 %v643_v63 }
  0xf6   : > { %739 = vmatprep.mubr.f32.mxu0 %v6882_v4  ;;  %956 = vmatpush1.msra.mxu1 %v893_v1 }
  0xf7   : > { %989 = vmatprep.mubr.f32.mxu1 %v6882_v4  ;;  %740 = vmatmul.mubr.f32.vlgmr.msra.gmra.mxu0 %v635_v2 }
  0xf8   : > { %990 = vmatmul.mubr.f32.vlgmr.msra.gmra.mxu1 %v885_v3  ;;  %745 = vmatprep.mubr.f32.mxu0 %v6882_v4 }
  0xf9   : > { %995 = vmatprep.mubr.f32.mxu1 %v6882_v4 }
  0xfb   : > { %746 = vmatmul.mubr.f32.gmra.mxu0 %v636_v5 }
  0xfc   : > { %996 = vmatmul.mubr.f32.gmra.mxu1 %v886_v6  ;;  %751 = vmatprep.mubr.f32.mxu0 %v6882_v4 }
  0xfd   : > { %1001 = vmatprep.mubr.f32.mxu1 %v6882_v4 }
  0xff   : > { %752 = vmatmul.mubr.f32.gmra.mxu0 %v637_v7 }
 0x100   : > { %1002 = vmatmul.mubr.f32.gmra.mxu1 %v887_v8  ;;  %757 = vmatprep.mubr.f32.mxu0 %v6882_v4 }
 0x101   : > { %1007 = vmatprep.mubr.f32.mxu1 %v6882_v4 }
 0x103   : > { %758 = vmatmul.mubr.f32.gmra.mxu0 %v638_v9 }
 0x104   : > { %1008 = vmatmul.mubr.f32.gmra.mxu1 %v888_v10  ;;  %763 = vmatprep.mubr.f32.mxu0 %v6882_v4 }
 0x105   : > { %1013 = vmatprep.mubr.f32.mxu1 %v6882_v4 }
 0x107   : > { %764 = vmatmul.mubr.f32.gmra.mxu0 %v639_v11 }
 0x108   : > { %1014 = vmatmul.mubr.f32.gmra.mxu1 %v889_v12  ;;  %769 = vmatprep.mubr.f32.mxu0 %v6882_v4 }
 0x109   : > { %1019 = vmatprep.mubr.f32.mxu1 %v6882_v4 }
 0x10b   : > { %770 = vmatmul.mubr.f32.gmra.mxu0 %v640_v13 }
 0x10c   : > { %1020 = vmatmul.mubr.f32.gmra.mxu1 %v890_v14  ;;  %775 = vmatprep.mubr.f32.mxu0 %v6882_v4 }
 0x10d   : > { %1025 = vmatprep.mubr.f32.mxu1 %v6882_v4 }
 0x10f   : > { %776 = vmatmul.mubr.f32.gmra.mxu0 %v641_v15 }
 0x110   : > { %1026 = vmatmul.mubr.f32.gmra.mxu1 %v891_v16  ;;  %781 = vmatprep.mubr.f32.mxu0 %v6882_v4 }
 0x111   : > { %1031 = vmatprep.mubr.f32.mxu1 %v6882_v4 }
 0x113   : > { %782 = vmatmul.mubr.f32.gmra.mxu0 %v642_v17 }
 0x114   : > { %1032 = vmatmul.mubr.f32.gmra.mxu1 %v892_v18 }
 0x1b7   : > { %v741_v19 = vpop.f32.mrf.mxu0 }
 0x1b8   : > { %v991_v20 = vpop.f32.mrf.mxu1  ;;  %853 = vst.msk [vmem:[#allocation2] sm:$0xff] %vm852_vm0, %v741_v19  ;;  %796 = vrot.lane.b32.xlu0 %v741_v19, %s6883_s19 }
 0x1b9   : > { %1102 = vst.msk [vmem:[#allocation3] sm:$0xff] %vm852_vm0, %v991_v20  ;;  %v743_v21 = vpop.f32.mrf.mxu0 }
 0x1ba   : > { %v993_v22 = vpop.f32.mrf.mxu1  ;;  %869 = vst.msk [vmem:[#allocation2 + $0x80] sm:$0xff] %vm852_vm0, %v743_v21 }
 0x1bb   : > { %1118 = vst.msk [vmem:[#allocation3 + $0x80] sm:$0xff] %vm852_vm0, %v993_v22  ;;  %v747_v23 = vpop.f32.mrf.mxu0 }
 0x1bc   : > { %v997_v24 = vpop.f32.mrf.mxu1  ;;  %854 = vst.msk [vmem:[#allocation2 + $0x8] sm:$0xff] %vm852_vm0, %v747_v23  ;;  %1046 = vrot.lane.b32.xlu0 %v991_v20, %s6883_s19 }
 0x1bd   : > { %1103 = vst.msk [vmem:[#allocation3 + $0x8] sm:$0xff] %vm852_vm0, %v997_v24  ;;  %1048 = vrot.lane.b32.xlu1 %v997_v24, %s6883_s19  ;;  %v749_v25 = vpop.f32.mrf.mxu0 }
 0x1be   : > { %v999_v26 = vpop.f32.mrf.mxu1  ;;  %870 = vst.msk [vmem:[#allocation2 + $0x88] sm:$0xff] %vm852_vm0, %v749_v25 }
 0x1bf   : > { %1119 = vst.msk [vmem:[#allocation3 + $0x88] sm:$0xff] %vm852_vm0, %v999_v26  ;;  %v753_v27 = vpop.f32.mrf.mxu0 }
 0x1c0   : > { %v1003_v28 = vpop.f32.mrf.mxu1  ;;  %828 = vrot.lane.b32.xlu0 %v743_v21, %s6883_s19  ;;  %855 = vst.msk [vmem:[#allocation2 + $0x10] sm:$0xff] %vm852_vm0, %v753_v27 }
 0x1c1   : > { %830 = vrot.lane.b32.xlu1 %v749_v25, %s6883_s19  ;;  %1104 = vst.msk [vmem:[#allocation3 + $0x10] sm:$0xff] %vm852_vm0, %v1003_v28  ;;  %v755_v29 = vpop.f32.mrf.mxu0 }
 0x1c2   : > { %v1005_v30 = vpop.f32.mrf.mxu1  ;;  %871 = vst.msk [vmem:[#allocation2 + $0x90] sm:$0xff] %vm852_vm0, %v755_v29 }
 0x1c3   : > { %1120 = vst.msk [vmem:[#allocation3 + $0x90] sm:$0xff] %vm852_vm0, %v1005_v30  ;;  %v759_v31 = vpop.f32.mrf.mxu0 }
 0x1c4   : > { %v1009_v32 = vpop.f32.mrf.mxu1  ;;  %1078 = vrot.lane.b32.xlu0 %v993_v22, %s6883_s19  ;;  %856 = vst.msk [vmem:[#allocation2 + $0x18] sm:$0xff] %vm852_vm0, %v759_v31 }
 0x1c5   : > { %1080 = vrot.lane.b32.xlu1 %v999_v26, %s6883_s19  ;;  %1105 = vst.msk [vmem:[#allocation3 + $0x18] sm:$0xff] %vm852_vm0, %v1009_v32  ;;  %v761_v33 = vpop.f32.mrf.mxu0 }
 0x1c6   : > { %v1011_v34 = vpop.f32.mrf.mxu1  ;;  %872 = vst.msk [vmem:[#allocation2 + $0x98] sm:$0xff] %vm852_vm0, %v761_v33 }
 0x1c7   : > { %1121 = vst.msk [vmem:[#allocation3 + $0x98] sm:$0xff] %vm852_vm0, %v1011_v34  ;;  %v765_v35 = vpop.f32.mrf.mxu0 }
 0x1c8   : > { %v1015_v36 = vpop.f32.mrf.mxu1  ;;  %798 = vrot.lane.b32.xlu0 %v747_v23, %s6883_s19  ;;  %857 = vst.msk [vmem:[#allocation2 + $0x20] sm:$0xff] %vm852_vm0, %v765_v35 }
 0x1c9   : > { %800 = vrot.lane.b32.xlu1 %v753_v27, %s6883_s19  ;;  %1106 = vst.msk [vmem:[#allocation3 + $0x20] sm:$0xff] %vm852_vm0, %v1015_v36  ;;  %v767_v37 = vpop.f32.mrf.mxu0 }
 0x1ca   : > { %v1017_v38 = vpop.f32.mrf.mxu1  ;;  %873 = vst.msk [vmem:[#allocation2 + $0xa0] sm:$0xff] %vm852_vm0, %v767_v37 }
 0x1cb   : > { %1122 = vst.msk [vmem:[#allocation3 + $0xa0] sm:$0xff] %vm852_vm0, %v1017_v38  ;;  %v771_v39 = vpop.f32.mrf.mxu0 }
 0x1cc   : > { %v1021_v40 = vpop.f32.mrf.mxu1  ;;  %1050 = vrot.lane.b32.xlu0 %v1003_v28, %s6883_s19  ;;  %858 = vst.msk [vmem:[#allocation2 + $0x28] sm:$0xff] %vm852_vm0, %v771_v39 }
 0x1cd   : > { %802 = vrot.lane.b32.xlu1 %v759_v31, %s6883_s19  ;;  %1107 = vst.msk [vmem:[#allocation3 + $0x28] sm:$0xff] %vm852_vm0, %v1021_v40  ;;  %v773_v41 = vpop.f32.mrf.mxu0 }
 0x1ce   : > { %v1023_v42 = vpop.f32.mrf.mxu1  ;;  %874 = vst.msk [vmem:[#allocation2 + $0xa8] sm:$0xff] %vm852_vm0, %v773_v41 }
 0x1cf   : > { %1123 = vst.msk [vmem:[#allocation3 + $0xa8] sm:$0xff] %vm852_vm0, %v1023_v42  ;;  %v777_v43 = vpop.f32.mrf.mxu0 }
 0x1d0   : > { %v1027_v44 = vpop.f32.mrf.mxu1  ;;  %832 = vrot.lane.b32.xlu0 %v755_v29, %s6883_s19  ;;  %859 = vst.msk [vmem:[#allocation2 + $0x30] sm:$0xff] %vm852_vm0, %v777_v43 }
 0x1d1   : > { %1052 = vrot.lane.b32.xlu1 %v1009_v32, %s6883_s19  ;;  %1108 = vst.msk [vmem:[#allocation3 + $0x30] sm:$0xff] %vm852_vm0, %v1027_v44  ;;  %v779_v45 = vpop.f32.mrf.mxu0 }
 0x1d2   : > { %v1029_v46 = vpop.f32.mrf.mxu1  ;;  %875 = vst.msk [vmem:[#allocation2 + $0xb0] sm:$0xff] %vm852_vm0, %v779_v45 }
 0x1d3   : > { %1124 = vst.msk [vmem:[#allocation3 + $0xb0] sm:$0xff] %vm852_vm0, %v1029_v46  ;;  %v783_v47 = vpop.f32.mrf.mxu0 }
 0x1d4   : > { %v1033_v48 = vpop.f32.mrf.mxu1  ;;  %1082 = vrot.lane.b32.xlu0 %v1005_v30, %s6883_s19  ;;  %860 = vst.msk [vmem:[#allocation2 + $0x38] sm:$0xff] %vm852_vm0, %v783_v47 }
 0x1d5   : > { %834 = vrot.lane.b32.xlu1 %v761_v33, %s6883_s19  ;;  %1109 = vst.msk [vmem:[#allocation3 + $0x38] sm:$0xff] %vm852_vm0, %v1033_v48  ;;  %v785_v49 = vpop.f32.mrf.mxu0 }
 0x1d6   : > { %v1035_v50 = vpop.f32.mrf.mxu1  ;;  %876 = vst.msk [vmem:[#allocation2 + $0xb8] sm:$0xff] %vm852_vm0, %v785_v49 }
 0x1d7   : > { %1125 = vst.msk [vmem:[#allocation3 + $0xb8] sm:$0xff] %vm852_vm0, %v1035_v50 }
 0x1d8   : > { %804 = vrot.lane.b32.xlu0 %v765_v35, %s6883_s19 }
 0x1d9   : > { %1084 = vrot.lane.b32.xlu1 %v1011_v34, %s6883_s19 }
 0x1dc   : > { %1054 = vrot.lane.b32.xlu0 %v1015_v36, %s6883_s19 }
 0x1dd   : > { %806 = vrot.lane.b32.xlu1 %v771_v39, %s6883_s19 }
 0x1e0   : > { %836 = vrot.lane.b32.xlu0 %v767_v37, %s6883_s19 }
 0x1e1   : > { %1056 = vrot.lane.b32.xlu1 %v1021_v40, %s6883_s19 }
 0x1e4   : > { %1086 = vrot.lane.b32.xlu0 %v1017_v38, %s6883_s19 }
 0x1e5   : > { %838 = vrot.lane.b32.xlu1 %v773_v41, %s6883_s19 }
 0x1e8   : > { %808 = vrot.lane.b32.xlu0 %v777_v43, %s6883_s19 }
 0x1e9   : > { %1088 = vrot.lane.b32.xlu1 %v1023_v42, %s6883_s19 }
 0x1ec   : > { %1058 = vrot.lane.b32.xlu0 %v1027_v44, %s6883_s19 }
 0x1ed   : > { %810 = vrot.lane.b32.xlu1 %v783_v47, %s6883_s19 }
 0x1f0   : > { %840 = vrot.lane.b32.xlu0 %v779_v45, %s6883_s19 }
 0x1f1   : > { %1060 = vrot.lane.b32.xlu1 %v1033_v48, %s6883_s19 }
 0x1f4   : > { %1090 = vrot.lane.b32.xlu0 %v1029_v46, %s6883_s19 }
 0x1f5   : > { %842 = vrot.lane.b32.xlu1 %v785_v49, %s6883_s19 }
 0x1f9   : > { %1092 = vrot.lane.b32.xlu1 %v1035_v50, %s6883_s19 }
 0x22a   : > { %v797_v51 = vpop.permute.xlu0 %796 }
 0x22b   : > { %861 = vst.msk [vmem:[#allocation2 + $0x40] sm:$0xff] %vm852_vm0, %v797_v51 }
 0x22e   : > { %v1047_v53 = vpop.permute.xlu0 %1046 }
 0x22f   : > { %v1049_v52 = vpop.permute.xlu1 %1048  ;;  %1110 = vst.msk [vmem:[#allocation3 + $0x40] sm:$0xff] %vm852_vm0, %v1047_v53 }
 0x230   : > { %1111 = vst.msk [vmem:[#allocation3 + $0x48] sm:$0xff] %vm852_vm0, %v1049_v52 }
 0x232   : > { %v829_v54 = vpop.permute.xlu0 %828 }
 0x233   : > { %v831_v55 = vpop.permute.xlu1 %830  ;;  %877 = vst.msk [vmem:[#allocation2 + $0xc0] sm:$0xff] %vm852_vm0, %v829_v54 }
 0x234   : > { %878 = vst.msk [vmem:[#allocation2 + $0xc8] sm:$0xff] %vm852_vm0, %v831_v55 }
 0x236   : > { %v1079_v56 = vpop.permute.xlu0 %1078 }
 0x237   : > { %v1081_v57 = vpop.permute.xlu1 %1080  ;;  %1126 = vst.msk [vmem:[#allocation3 + $0xc0] sm:$0xff] %vm852_vm0, %v1079_v56 }
 0x238   : > { %1127 = vst.msk [vmem:[#allocation3 + $0xc8] sm:$0xff] %vm852_vm0, %v1081_v57 }
 0x23a   : > { %v799_v58 = vpop.permute.xlu0 %798 }
 0x23b   : > { %v801_v59 = vpop.permute.xlu1 %800  ;;  %862 = vst.msk [vmem:[#allocation2 + $0x48] sm:$0xff] %vm852_vm0, %v799_v58 }
 0x23c   : > { %863 = vst.msk [vmem:[#allocation2 + $0x50] sm:$0xff] %vm852_vm0, %v801_v59 }
 0x23e   : > { %v1051_v60 = vpop.permute.xlu0 %1050 }
 0x23f   : > { %v803_v61 = vpop.permute.xlu1 %802  ;;  %1112 = vst.msk [vmem:[#allocation3 + $0x50] sm:$0xff] %vm852_vm0, %v1051_v60 }
 0x240   : > { %864 = vst.msk [vmem:[#allocation2 + $0x58] sm:$0xff] %vm852_vm0, %v803_v61 }
 0x242   : > { %v833_v62 = vpop.permute.xlu0 %832 }
 0x243   : > { %v1053_v63 = vpop.permute.xlu1 %1052  ;;  %879 = vst.msk [vmem:[#allocation2 + $0xd0] sm:$0xff] %vm852_vm0, %v833_v62 }
 0x244   : > { %1113 = vst.msk [vmem:[#allocation3 + $0x58] sm:$0xff] %vm852_vm0, %v1053_v63 }
 0x246   : > { %v1083_v1 = vpop.permute.xlu0 %1082 }
 0x247   : > { %v835_v2 = vpop.permute.xlu1 %834  ;;  %1128 = vst.msk [vmem:[#allocation3 + $0xd0] sm:$0xff] %vm852_vm0, %v1083_v1 }
 0x248   : > { %880 = vst.msk [vmem:[#allocation2 + $0xd8] sm:$0xff] %vm852_vm0, %v835_v2 }
 0x24a   : > { %v805_v4 = vpop.permute.xlu0 %804 }
 0x24b   : > { %v1085_v3 = vpop.permute.xlu1 %1084  ;;  %865 = vst.msk [vmem:[#allocation2 + $0x60] sm:$0xff] %vm852_vm0, %v805_v4 }
 0x24c   : > { %1129 = vst.msk [vmem:[#allocation3 + $0xd8] sm:$0xff] %vm852_vm0, %v1085_v3 }
 0x24e   : > { %v1055_v5 = vpop.permute.xlu0 %1054 }
 0x24f   : > { %v807_v6 = vpop.permute.xlu1 %806  ;;  %1114 = vst.msk [vmem:[#allocation3 + $0x60] sm:$0xff] %vm852_vm0, %v1055_v5 }
 0x250   : > { %866 = vst.msk [vmem:[#allocation2 + $0x68] sm:$0xff] %vm852_vm0, %v807_v6 }
 0x252   : > { %v837_v7 = vpop.permute.xlu0 %836 }
 0x253   : > { %v1057_v8 = vpop.permute.xlu1 %1056  ;;  %881 = vst.msk [vmem:[#allocation2 + $0xe0] sm:$0xff] %vm852_vm0, %v837_v7 }
 0x254   : > { %1115 = vst.msk [vmem:[#allocation3 + $0x68] sm:$0xff] %vm852_vm0, %v1057_v8 }
 0x256   : > { %v1087_v9 = vpop.permute.xlu0 %1086 }
 0x257   : > { %v839_v10 = vpop.permute.xlu1 %838  ;;  %1130 = vst.msk [vmem:[#allocation3 + $0xe0] sm:$0xff] %vm852_vm0, %v1087_v9 }
 0x258   : > { %882 = vst.msk [vmem:[#allocation2 + $0xe8] sm:$0xff] %vm852_vm0, %v839_v10 }
 0x25a   : > { %v809_v12 = vpop.permute.xlu0 %808 }
 0x25b   : > { %v1089_v11 = vpop.permute.xlu1 %1088  ;;  %867 = vst.msk [vmem:[#allocation2 + $0x70] sm:$0xff] %vm852_vm0, %v809_v12 }
 0x25c   : > { %1131 = vst.msk [vmem:[#allocation3 + $0xe8] sm:$0xff] %vm852_vm0, %v1089_v11 }
 0x25e   : > { %v1059_v13 = vpop.permute.xlu0 %1058 }
 0x25f   : > { %v811_v14 = vpop.permute.xlu1 %810  ;;  %1116 = vst.msk [vmem:[#allocation3 + $0x70] sm:$0xff] %vm852_vm0, %v1059_v13 }
 0x260   : > { %868 = vst.msk [vmem:[#allocation2 + $0x78] sm:$0xff] %vm852_vm0, %v811_v14 }
 0x262   : > { %v841_v15 = vpop.permute.xlu0 %840 }
 0x263   : > { %v1061_v16 = vpop.permute.xlu1 %1060  ;;  %883 = vst.msk [vmem:[#allocation2 + $0xf0] sm:$0xff] %vm852_vm0, %v841_v15 }
 0x264   : > { %1117 = vst.msk [vmem:[#allocation3 + $0x78] sm:$0xff] %vm852_vm0, %v1061_v16 }
 0x266   : > { %v1091_v17 = vpop.permute.xlu0 %1090 }
 0x267   : > { %v843_v18 = vpop.permute.xlu1 %842  ;;  %1132 = vst.msk [vmem:[#allocation3 + $0xf0] sm:$0xff] %vm852_vm0, %v1091_v17 }
 0x268   : > { %884 = vst.msk [vmem:[#allocation2 + $0xf8] sm:$0xff] %vm852_vm0, %v843_v18 }
 0x26b   : > { %v1093_v19 = vpop.permute.xlu1 %1092 }
 0x26c   : > { %1133 = vst.msk [vmem:[#allocation3 + $0xf8] sm:$0xff] %vm852_vm0, %v1093_v19 }
 0x26d PF: > { %v1203_v20 = vld [vmem:[#allocation9 + $0x78] sm:$0xff]  ;;  %s8716_s3 = sld [smem:[#allocation30_spill]]  ;;  %v1202_v21 = vld [vmem:[#allocation9 + $0x70] sm:$0xff]  ;;  %v1201_v22 = vld [vmem:[#allocation9 + $0x68] sm:$0xff]  ;;  %vm1333_vm1 = vcmask 261120   ;;  %s6884_s17 = smov 96  }
 0x26e   : > { %5534 = vmatprep.subr.mxu0 %v1203_v20  ;;  %v1200_v23 = vld [vmem:[#allocation9 + $0x60] sm:$0xff]  ;;  %v1199_v25 = vld [vmem:[#allocation9 + $0x58] sm:$0xff]  ;;  %v7372_v27 = vld [vmem:[#allocation2 + $0x30] sm:$0xff]  ;;  %s6885_s2 = smov 64   ;;  %s6886_s22 = smov 32   ;;  %vm1826_vm3 = vcmask 523264  }
 0x26f   : > { %5535 = vmatpush3.msra.mxu0 %v1203_v20  ;;  %v7368_v26 = vld [vmem:[#allocation2 + $0x38] sm:$0xff]  ;;  %v1198_v28 = vld [vmem:[#allocation9 + $0x50] sm:$0xff]  ;;  %v1197_v29 = vld [vmem:[#allocation9 + $0x48] sm:$0xff]  ;;  %vm2543_vm7 = vcmask 785408   ;;  %s8717_s15 = sld [smem:[#allocation43_spill]] }
 0x270   : > { %5536 = vmatprep.subr.mxu0 %v1202_v21  ;;  %5572 = vmatprep.subr.msk.mxu1 %vm1333_vm1, %v7368_v26  ;;  %v7378_v30 = vld [vmem:[#allocation2 + $0x28] sm:$0xff]  ;;  %v1196_v31 = vld [vmem:[#allocation9 + $0x40] sm:$0xff]  ;;  %v1195_v32 = vld [vmem:[#allocation9 + $0x38] sm:$0xff]  ;;  %s8718_s20 = sld [smem:[#allocation45_spill]] }
 0x271   : > { %5537 = vmatpush3.msra.mxu0 %v1202_v21  ;;  %5573 = vmatpush3.xpose.msk.msra.mxu1 %vm1333_vm1, %v7368_v26  ;;  %v7384_v33 = vld [vmem:[#allocation2 + $0x20] sm:$0xff]  ;;  %v1194_v34 = vld [vmem:[#allocation9 + $0x30] sm:$0xff]  ;;  %v1193_v35 = vld [vmem:[#allocation9 + $0x28] sm:$0xff]  ;;  %s8719_s8 = sld [smem:[#allocation31_spill]] }
 0x272   : > { %5538 = vmatprep.subr.mxu0 %v1201_v22  ;;  %5574 = vmatprep.subr.msk.mxu1 %vm1333_vm1, %v7372_v27  ;;  %v7390_v36 = vld [vmem:[#allocation2 + $0x18] sm:$0xff]  ;;  %v1192_v37 = vld [vmem:[#allocation9 + $0x20] sm:$0xff]  ;;  %v7396_v39 = vld [vmem:[#allocation2 + $0x10] sm:$0xff] }
 0x273   : > { %s5036_s28 = sshll.u32 %s8716_s3, 5  ;;  %5539 = vmatpush3.msra.mxu0 %v1201_v22  ;;  %v1191_v38 = vld [vmem:[#allocation9 + $0x18] sm:$0xff]  ;;  %v1190_v40 = vld [vmem:[#allocation9 + $0x10] sm:$0xff]  ;;  %v1189_v41 = vld [vmem:[#allocation9 + $0x8] sm:$0xff]  ;;  %s5167_s21 = sshll.u32 %s8716_s3, 2 }
 0x274   : > { %s7365_s7 = scalar_lea.vmem %s7205_s5, %s5036_s28 [#allocation4]  ;;  %5540 = vmatprep.subr.mxu0 %v1200_v23  ;;  %v7402_v42 = vld [vmem:[#allocation2 + $0x8] sm:$0xff]  ;;  %v1188_v43 = vld [vmem:[#allocation9] sm:$0xff]  ;;  %v7419_v48 = vld [vmem:[#allocation2 + $0x78] sm:$0xff]  ;;  %s8589_s5 = scalar_lea.sflag [#allocation6], %s626_s13 }
 0x275   : > { %v1136_v24 = vld [vmem:[%s7365_s7] sm:$0xff]  ;;  %5541 = vmatpush3.msra.mxu0 %v1200_v23  ;;  %5575 = vmatpush3.xpose.msk.msra.mxu1 %vm1333_vm1, %v7372_v27  ;;  %v1137_v44 = vld [vmem:[%s7365_s7 + $0x8] sm:$0xff]  ;;  %v1138_v45 = vld [vmem:[%s7365_s7 + $0x10] sm:$0xff] }
 0x276   : > { %5566 = vmatprep.mubr.f32.mxu0 %v1136_v24  ;;  %5542 = vmatprep.subr.mxu0 %v1199_v25  ;;  %v1139_v46 = vld [vmem:[%s7365_s7 + $0x18] sm:$0xff]  ;;  %v7413_v47 = vld [vmem:[#allocation2] sm:$0xff]  ;;  %v7421_v49 = vld [vmem:[#allocation2 + $0x70] sm:$0xff] }
 0x277   : > { %5543 = vmatpush3.msra.mxu0 %v1199_v25  ;;  %5576 = vmatprep.subr.msk.mxu1 %vm1333_vm1, %v7378_v30  ;;  %v7429_v50 = vld [vmem:[#allocation2 + $0x68] sm:$0xff]  ;;  %v7431_v51 = vld [vmem:[#allocation2 + $0xb8] sm:$0xff]  ;;  %v7439_v52 = vld [vmem:[#allocation2 + $0x60] sm:$0xff]  ;;  %s5168_s12 = sshll.u32 %s8719_s8, 3 }
 0x278   : > { %5544 = vmatprep.subr.mxu0 %v1198_v28  ;;  %v7445_v53 = vld [vmem:[#allocation2 + $0x58] sm:$0xff]  ;;  %v7451_v54 = vld [vmem:[#allocation2 + $0x50] sm:$0xff]  ;;  %v7457_v55 = vld [vmem:[#allocation2 + $0x48] sm:$0xff]  ;;  %s4814_s19 = sadd.s32 %s5168_s12, %s5167_s21 }
 0x279   : > { %5545 = vmatpush3.msra.mxu0 %v1198_v28  ;;  %5577 = vmatpush3.xpose.msk.msra.mxu1 %vm1333_vm1, %v7378_v30  ;;  %v7463_v56 = vld [vmem:[#allocation2 + $0x40] sm:$0xff]  ;;  %v7471_v57 = vld [vmem:[#allocation2 + $0xf8] sm:$0xff]  ;;  %v1178_v60 = vld [vmem:[#allocation2 + $0xb0] sm:$0xff] }
 0x27a   : > { %5546 = vmatprep.subr.mxu0 %v1197_v29  ;;  %5578 = vmatprep.subr.msk.mxu1 %vm1333_vm1, %v7384_v33  ;;  %v1177_v63 = vld [vmem:[#allocation2 + $0xa8] sm:$0xff]  ;;  %v1176_v1 = vld [vmem:[#allocation2 + $0xa0] sm:$0xff]  ;;  %v1175_v2 = vld [vmem:[#allocation2 + $0x98] sm:$0xff] }
 0x27b   : > { %5547 = vmatpush3.msra.mxu0 %v1197_v29  ;;  %v1174_v3 = vld [vmem:[#allocation2 + $0x90] sm:$0xff]  ;;  %v1173_v4 = vld [vmem:[#allocation2 + $0x88] sm:$0xff]  ;;  %v1172_v5 = vld [vmem:[#allocation2 + $0x80] sm:$0xff] }
 0x27c   : > { %5548 = vmatprep.subr.mxu0 %v1196_v31  ;;  %v1186_v6 = vld [vmem:[#allocation2 + $0xf0] sm:$0xff]  ;;  %v7557_v12 = vld [vmem:[#allocation2 + $0xe8] sm:$0xff]  ;;  %v7564_v15 = vld [vmem:[#allocation2 + $0xe0] sm:$0xff] }
 0x27d   : > { %5549 = vmatpush3.msra.mxu0 %v1196_v31  ;;  %5579 = vmatpush3.xpose.msk.msra.mxu1 %vm1333_vm1, %v7384_v33  ;;  %v7572_v18 = vld [vmem:[#allocation2 + $0xd8] sm:$0xff]  ;;  %v7580_v20 = vld [vmem:[#allocation2 + $0xd0] sm:$0xff]  ;;  %v7586_v23 = vld [vmem:[#allocation2 + $0xc8] sm:$0xff] }
 0x27e   : > { %5550 = vmatprep.subr.mxu0 %v1195_v32  ;;  %5580 = vmatprep.subr.msk.mxu1 %vm1333_vm1, %v7390_v36  ;;  %v7592_v25 = vld [vmem:[#allocation2 + $0xc0] sm:$0xff] }
 0x27f   : > { %5551 = vmatpush3.msra.mxu0 %v1195_v32 }
 0x280   : > { %5552 = vmatprep.subr.mxu0 %v1194_v34 }
 0x281   : > { %5553 = vmatpush3.msra.mxu0 %v1194_v34  ;;  %5581 = vmatpush3.xpose.msk.msra.mxu1 %vm1333_vm1, %v7390_v36  ;;  %v1140_v34 = vlaneseq }
 0x282   : > { %5554 = vmatprep.subr.mxu0 %v1193_v35  ;;  %5582 = vmatprep.subr.msk.mxu1 %vm1333_vm1, %v7396_v39 }
 0x283   : > { %5555 = vmatpush3.msra.mxu0 %v1193_v35  ;;  %v7606_v35 = vshrl.u32 %v1140_v34, 7 }
 0x284   : > { %5556 = vmatprep.subr.mxu0 %v1192_v37 }
 0x285   : > { %5557 = vmatpush3.msra.mxu0 %v1192_v37  ;;  %5583 = vmatpush3.xpose.msk.msra.mxu1 %vm1333_vm1, %v7396_v39  ;;  %v1145_v37 = vstv %s5036_s28  ;;  %s5169_s28 = sshll.u32 %s4814_s19, 7 }
 0x286   : > { %5558 = vmatprep.subr.mxu0 %v1191_v38  ;;  %5584 = vmatprep.subr.msk.mxu1 %vm1333_vm1, %v7402_v42 }
 0x287   : > { %5559 = vmatpush3.msra.mxu0 %v1191_v38 }
 0x288   : > { %5560 = vmatprep.subr.mxu0 %v1190_v40 }
 0x289   : > { %5561 = vmatpush3.msra.mxu0 %v1190_v40  ;;  %5585 = vmatpush3.xpose.msk.msra.mxu1 %vm1333_vm1, %v7402_v42  ;;  %v1144_v40 = vadd.s32 24, %v7606_v35 }
 0x28a   : > { %5562 = vmatprep.subr.mxu0 %v1189_v41  ;;  %5586 = vmatprep.subr.msk.mxu1 %vm1333_vm1, %v7413_v47 }
 0x28b   : > { %5563 = vmatpush3.msra.mxu0 %v1189_v41  ;;  %v7617_v41 = vadd.s32 %v1145_v37, %v7606_v35 }
 0x28c   : > { %5564 = vmatprep.subr.mxu0 %v1188_v43 }
 0x28d   : > { %5565 = vmatpush3.msra.mxu0 %v1188_v43  ;;  %5587 = vmatpush3.xpose.msk.msra.mxu1 %vm1333_vm1, %v7413_v47  ;;  %v7622_v43 = vadd.s32 %v1145_v37, %v1144_v40 }
 0x28e   : > { %5567 = vmatmul.mubr.f32.vlgmr.msra.gmra.mxu0 %v1137_v44  ;;  %5594 = vmatprep.subr.msk.mxu0 %vm1333_vm1, %v7419_v48 }
 0x28f   : > { %5569 = vmatprep.mubr.f32.mxu0 %v1138_v45  ;;  %5595 = vmatpush3.xpose.msk.msra.mxu0 %vm1333_vm1, %v7419_v48 }
 0x290   : > { %5596 = vmatprep.subr.msk.mxu0 %vm1333_vm1, %v7421_v49  ;;  %5616 = vmatprep.subr.msk.mxu1 %vm1333_vm1, %v7431_v51 }
 0x292   : > { %5570 = vmatmul.mubr.f32.gmra.mxu0 %v1139_v46 }
 0x293   : > { %5597 = vmatpush3.xpose.msk.msra.mxu0 %vm1333_vm1, %v7421_v49 }
 0x294   : > { %5598 = vmatprep.subr.msk.mxu0 %vm1333_vm1, %v7429_v50 }
 0x297   : > { %5599 = vmatpush3.xpose.msk.msra.mxu0 %vm1333_vm1, %v7429_v50 }
 0x298   : > { %5600 = vmatprep.subr.msk.mxu0 %vm1333_vm1, %v7439_v52 }
 0x29b   : > { %5601 = vmatpush3.xpose.msk.msra.mxu0 %vm1333_vm1, %v7439_v52 }
 0x29c   : > { %5602 = vmatprep.subr.msk.mxu0 %vm1333_vm1, %v7445_v53 }
 0x29f   : > { %5603 = vmatpush3.xpose.msk.msra.mxu0 %vm1333_vm1, %v7445_v53 }
 0x2a0   : > { %5604 = vmatprep.subr.msk.mxu0 %vm1333_vm1, %v7451_v54 }
 0x2a3   : > { %5605 = vmatpush3.xpose.msk.msra.mxu0 %vm1333_vm1, %v7451_v54 }
 0x2a4   : > { %5606 = vmatprep.subr.msk.mxu0 %vm1333_vm1, %v7457_v55 }
 0x2a7   : > { %5607 = vmatpush3.xpose.msk.msra.mxu0 %vm1333_vm1, %v7457_v55 }
 0x2a8   : > { %5608 = vmatprep.subr.msk.mxu0 %vm1333_vm1, %v7463_v56 }
 0x2ab   : > { %5609 = vmatpush3.xpose.msk.msra.mxu0 %vm1333_vm1, %v7463_v56 }
 0x2ac   : > { %5638 = vmatprep.subr.msk.mxu0 %vm1333_vm1, %v7471_v57 }
 0x34e   : > { %v5568_v58 = vpop.f32.mrf.mxu0 }
 0x350   : > { %v1270_v59 = vpop.f32.mrf.mxu0 }
 0x351   : > { %1293 = vrot.lane.b32.xlu0 %v1270_v59, %s6884_s17  ;;  %5588 = vmatprep.mubr.msk.f32.mxu1 %vm1333_vm1, %v1270_v59 }
 0x352   : > { %v5571_v61 = vpop.f32.mrf.mxu0  ;;  %5589 = vmatmul.mubr.msk.f32.vlgmr.msra.gmra.mxu1 %vm1333_vm1, %v5568_v58 }
 0x353   : > { %5617 = vmatpush3.xpose.msk.msra.mxu1 %vm1333_vm1, %v7431_v51 }
 0x354   : > { %v1280_v62 = vpop.f32.mrf.mxu0  ;;  %5618 = vmatprep.subr.msk.mxu1 %vm1333_vm1, %v1178_v60 }
 0x355   : > { %1295 = vrot.lane.b32.xlu0 %v5568_v58, %s6884_s17  ;;  %1297 = vrot.lane.b32.xlu1 %v1280_v62, %s6884_s17 }
 0x356   : > { %5591 = vmatprep.mubr.msk.f32.mxu1 %vm1333_vm1, %v1280_v62 }
 0x357   : > { %5592 = vmatmul.mubr.msk.f32.gmra.mxu1 %vm1333_vm1, %v5571_v61 }
 0x358   : > { %5619 = vmatpush3.xpose.msk.msra.mxu1 %vm1333_vm1, %v1178_v60 }
 0x359   : > { %1301 = vrot.lane.b32.xlu0 %v1270_v59, %s6885_s2  ;;  %1299 = vrot.lane.b32.xlu1 %v5571_v61, %s6884_s17 }
 0x35a   : > { %5620 = vmatprep.subr.msk.mxu1 %vm1333_vm1, %v1177_v63 }
 0x35c   : > { %5621 = vmatpush3.xpose.msk.msra.mxu1 %vm1333_vm1, %v1177_v63 }
 0x35d   : > { %1305 = vrot.lane.b32.xlu0 %v1280_v62, %s6885_s2  ;;  %1303 = vrot.lane.b32.xlu1 %v5568_v58, %s6885_s2 }
 0x35e   : > { %5622 = vmatprep.subr.msk.mxu1 %vm1333_vm1, %v1176_v1 }
 0x360   : > { %5623 = vmatpush3.xpose.msk.msra.mxu1 %vm1333_vm1, %v1176_v1 }
 0x361   : > { %1309 = vrot.lane.b32.xlu0 %v1270_v59, %s6886_s22  ;;  %1307 = vrot.lane.b32.xlu1 %v5571_v61, %s6885_s2 }
 0x362   : > { %5624 = vmatprep.subr.msk.mxu1 %vm1333_vm1, %v1175_v2 }
 0x364   : > { %5625 = vmatpush3.xpose.msk.msra.mxu1 %vm1333_vm1, %v1175_v2 }
 0x365   : > { %1313 = vrot.lane.b32.xlu0 %v1280_v62, %s6886_s22  ;;  %1311 = vrot.lane.b32.xlu1 %v5568_v58, %s6886_s22 }
 0x366   : > { %5626 = vmatprep.subr.msk.mxu1 %vm1333_vm1, %v1174_v3 }
 0x368   : > { %5627 = vmatpush3.xpose.msk.msra.mxu1 %vm1333_vm1, %v1174_v3 }
 0x369   : > { %1315 = vrot.lane.b32.xlu1 %v5571_v61, %s6886_s22  ;;  %5628 = vmatprep.subr.msk.mxu1 %vm1333_vm1, %v1173_v4 }
 0x36a   : > { %2017 = vrot.lane.b32.xlu0 %v7368_v26, %s6884_s17 }
 0x36c   : > { %5629 = vmatpush3.xpose.msk.msra.mxu1 %vm1333_vm1, %v1173_v4 }
 0x36d   : > { %2015 = vrot.lane.b32.xlu1 %v7372_v27, %s6884_s17  ;;  %5630 = vmatprep.subr.msk.mxu1 %vm1333_vm1, %v1172_v5 }
 0x36e   : > { %2011 = vrot.lane.b32.xlu0 %v7384_v33, %s6884_s17 }
 0x370   : > { %5631 = vmatpush3.xpose.msk.msra.mxu1 %vm1333_vm1, %v1172_v5 }
 0x371   : > { %2013 = vrot.lane.b32.xlu1 %v7378_v30, %s6884_s17 }
 0x372   : > { %2007 = vrot.lane.b32.xlu0 %v7396_v39, %s6884_s17  ;;  %v7613_v39 = vand.u32 127, %v1140_v34 }
 0x374   : > { %vm1152_vm4 = vcmp.gt.s32.totalorder %v7613_v39, %v7617_v41  ;;  %vm1155_vm5 = vcmp.gt.s32.totalorder %v7613_v39, %v7622_v43 }
 0x375   : > { %2009 = vrot.lane.b32.xlu1 %v7390_v36, %s6884_s17  ;;  %v1142_v36 = vadd.s32 8, %v7606_v35 }
 0x376   : > { %2005 = vrot.lane.b32.xlu0 %v7402_v42, %s6884_s17  ;;  %v1143_v42 = vadd.s32 16, %v7606_v35 }
 0x377   : > { %v7611_v38 = vadd.s32 %v1145_v37, %v1142_v36 }
 0x379   : > { %2003 = vrot.lane.b32.xlu1 %v7413_v47, %s6884_s17  ;;  %vm1153_vm2 = vcmp.gt.s32.totalorder %v7613_v39, %v7611_v38 }
 0x37a   : > { %2136 = vrot.lane.b32.xlu0 %v7421_v49, %s6884_s17 }
 0x37d   : > { %2138 = vrot.lane.b32.xlu1 %v7419_v48, %s6884_s17  ;;  %v7633_v48 = vadd.s32 %v1145_v37, %v1143_v42 }
 0x37e   : > { %2259 = vrot.lane.b32.xlu0 %v7431_v51, %s6884_s17 }
 0x37f   : > { %vm1154_vm6 = vcmp.gt.s32.totalorder %v7613_v39, %v7633_v48 }
 0x381   : > { %2134 = vrot.lane.b32.xlu1 %v7429_v50, %s6884_s17 }
 0x382   : > { %2257 = vrot.lane.b32.xlu0 %v1178_v60, %s6884_s17 }
 0x385   : > { %2132 = vrot.lane.b32.xlu1 %v7439_v52, %s6884_s17 }
 0x386   : > { %2249 = vrot.lane.b32.xlu0 %v1174_v3, %s6884_s17 }
 0x389   : > { %2130 = vrot.lane.b32.xlu1 %v7445_v53, %s6884_s17 }
 0x38d   : > { %2128 = vrot.lane.b32.xlu1 %v7451_v54, %s6884_s17 }
 0x391   : > { %2126 = vrot.lane.b32.xlu1 %v7457_v55, %s6884_s17 }
 0x395   : > { %2124 = vrot.lane.b32.xlu1 %v7463_v56, %s6884_s17 }
 0x399   : > { %2255 = vrot.lane.b32.xlu1 %v1177_v63, %s6884_s17 }
 0x39d   : > { %2253 = vrot.lane.b32.xlu1 %v1176_v1, %s6884_s17 }
 0x3a1   : > { %2251 = vrot.lane.b32.xlu1 %v1175_v2, %s6884_s17 }
 0x3a5   : > { %2247 = vrot.lane.b32.xlu1 %v1173_v4, %s6884_s17 }
 0x3a9   : > { %2245 = vrot.lane.b32.xlu1 %v1172_v5, %s6884_s17 }
 0x3ad   : > { %2380 = vrot.lane.b32.xlu1 %v7471_v57, %s6884_s17 }
 0x3b1   : > { %2378 = vrot.lane.b32.xlu1 %v1186_v6, %s6884_s17 }
 0x3c3   : > { %v1294_v7 = vpop.permute.xlu0 %1293 }
 0x3c4   : > { %5610 = vmatprep.mubr.msk.f32.mxu0 %vm1333_vm1, %v1294_v7 }
 0x3c7   : > { %v1296_v8 = vpop.permute.xlu0 %1295  ;;  %v1298_v9 = vpop.permute.xlu1 %1297 }
 0x3c8   : > { %5611 = vmatmul.mubr.msk.f32.vlgmr.msra.gmra.mxu0 %vm1333_vm1, %v1296_v8 }
 0x3c9   : > { %5639 = vmatpush3.xpose.msk.msra.mxu0 %vm1333_vm1, %v7471_v57  ;;  %5613 = vmatprep.mubr.msk.f32.mxu0 %vm1333_vm1, %v1298_v9 }
 0x3ca   : > { %5640 = vmatprep.subr.msk.mxu0 %vm1333_vm1, %v1186_v6 }
 0x3cb   : > { %v1302_v10 = vpop.permute.xlu0 %1301  ;;  %v1300_v11 = vpop.permute.xlu1 %1299 }
 0x3cc   : > { %5614 = vmatmul.mubr.msk.f32.gmra.mxu0 %vm1333_vm1, %v1300_v11  ;;  %5632 = vmatprep.mubr.msk.f32.mxu1 %vm1333_vm1, %v1302_v10 }
 0x3cd   : > { %5641 = vmatpush3.xpose.msk.msra.mxu0 %vm1333_vm1, %v1186_v6 }
 0x3ce   : > { %5642 = vmatprep.subr.msk.mxu0 %vm1333_vm1, %v7557_v12 }
 0x3cf   : > { %v1306_v13 = vpop.permute.xlu0 %1305  ;;  %v1304_v14 = vpop.permute.xlu1 %1303 }
 0x3d0   : > { %5633 = vmatmul.mubr.msk.f32.vlgmr.msra.gmra.mxu1 %vm1333_vm1, %v1304_v14 }
 0x3d1   : > { %5643 = vmatpush3.xpose.msk.msra.mxu0 %vm1333_vm1, %v7557_v12  ;;  %5635 = vmatprep.mubr.msk.f32.mxu1 %vm1333_vm1, %v1306_v13 }
 0x3d2   : > { %5644 = vmatprep.subr.msk.mxu0 %vm1333_vm1, %v7564_v15 }
 0x3d3   : > { %v1310_v16 = vpop.permute.xlu0 %1309  ;;  %v1308_v17 = vpop.permute.xlu1 %1307 }
 0x3d4   : > { %5636 = vmatmul.mubr.msk.f32.gmra.mxu1 %vm1333_vm1, %v1308_v17  ;;  %5654 = vmatprep.mubr.msk.f32.mxu0 %vm1333_vm1, %v1310_v16 }
 0x3d5   : > { %5645 = vmatpush3.xpose.msk.msra.mxu0 %vm1333_vm1, %v7564_v15 }
 0x3d6   : > { %5646 = vmatprep.subr.msk.mxu0 %vm1333_vm1, %v7572_v18 }
 0x3d7   : > { %v1312_v19 = vpop.permute.xlu1 %1311  ;;  %v1314_v21 = vpop.permute.xlu0 %1313 }
 0x3d9   : > { %5647 = vmatpush3.xpose.msk.msra.mxu0 %vm1333_vm1, %v7572_v18 }
 0x3da   : > { %5648 = vmatprep.subr.msk.mxu0 %vm1333_vm1, %v7580_v20 }
 0x3db   : > { %v1316_v22 = vpop.permute.xlu1 %1315 }
 0x3dc   : > { %v2018_v24 = vpop.permute.xlu0 %2017 }
 0x3dd   : > { %5649 = vmatpush3.xpose.msk.msra.mxu0 %vm1333_vm1, %v7580_v20  ;;  %5660 = vmatprep.subr.mxu1 %v2018_v24 }
 0x3de   : > { %5650 = vmatprep.subr.msk.mxu0 %vm1333_vm1, %v7586_v23  ;;  %5661 = vmatpush3.msra.mxu1 %v2018_v24 }
 0x3df   : > { %v2016_v26 = vpop.permute.xlu1 %2015 }
 0x3e0   : > { %5662 = vmatprep.subr.mxu1 %v2016_v26  ;;  %v2012_v27 = vpop.permute.xlu0 %2011 }
 0x3e1   : > { %5651 = vmatpush3.xpose.msk.msra.mxu0 %vm1333_vm1, %v7586_v23  ;;  %5663 = vmatpush3.msra.mxu1 %v2016_v26 }
 0x3e2   : > { %5652 = vmatprep.subr.msk.mxu0 %vm1333_vm1, %v7592_v25 }
 0x3e3   : > { %v2014_v28 = vpop.permute.xlu1 %2013 }
 0x3e4   : > { %5664 = vmatprep.subr.mxu1 %v2014_v28  ;;  %v2008_v29 = vpop.permute.xlu0 %2007 }
 0x3e5   : > { %5653 = vmatpush3.xpose.msk.msra.mxu0 %vm1333_vm1, %v7592_v25  ;;  %5665 = vmatpush3.msra.mxu1 %v2014_v28 }
 0x3e6   : > { %5666 = vmatprep.subr.mxu1 %v2012_v27 }
 0x3e7   : > { %v2010_v30 = vpop.permute.xlu1 %2009  ;;  %5667 = vmatpush3.msra.mxu1 %v2012_v27 }
 0x3e8   : > { %5655 = vmatmul.mubr.msk.f32.vlgmr.msra.gmra.mxu0 %vm1333_vm1, %v1312_v19  ;;  %5668 = vmatprep.subr.mxu1 %v2010_v30  ;;  %v2006_v31 = vpop.permute.xlu0 %2005 }
 0x3e9   : > { %5657 = vmatprep.mubr.msk.f32.mxu0 %vm1333_vm1, %v1314_v21  ;;  %5669 = vmatpush3.msra.mxu1 %v2010_v30 }
 0x3ea   : > { %5670 = vmatprep.subr.mxu1 %v2008_v29 }
 0x3eb   : > { %v2004_v32 = vpop.permute.xlu1 %2003  ;;  %5671 = vmatpush3.msra.mxu1 %v2008_v29 }
 0x3ec   : > { %5658 = vmatmul.mubr.msk.f32.gmra.mxu0 %vm1333_vm1, %v1316_v22  ;;  %5672 = vmatprep.subr.mxu1 %v2006_v31 }
 0x3ed   : > { %5673 = vmatpush3.msra.mxu1 %v2006_v31 }
 0x3ee   : > { %5674 = vmatprep.subr.mxu1 %v2004_v32 }
 0x3ef   : > { %v7603_v33 = vpop.permute.xlu1 %2138  ;;  %5675 = vmatpush3.msra.mxu1 %v2004_v32 }
 0x3f0   : > { %5682 = vmatprep.subr.mxu1 %v7603_v33 }
 0x3f3   : > { %v7662_v57 = vpop.permute.xlu1 %2134 }
 0x3f7   : > { %v7664_v58 = vpop.permute.xlu1 %2132 }
 0x3fb   : > { %v7666_v59 = vpop.permute.xlu1 %2130 }
 0x3ff   : > { %v7675_v1 = vpop.permute.xlu1 %2128 }
 0x403   : > { %v7684_v6 = vpop.permute.xlu1 %2126 }
 0x407   : > { %v7717_v22 = vpop.permute.xlu1 %2124 }
 0x40b   : > { %v7730_v29 = vpop.permute.xlu1 %2255 }
 0x40f   : > { %v7732_v30 = vpop.permute.xlu1 %2253 }
 0x412   : > { %v5590_v44 = vpop.f32.mrf.mxu1 }
 0x413   : > { %v7629_v45 = vsel %vm1153_vm2, -1e+30, %v5590_v44  ;;  %v7739_v34 = vpop.permute.xlu1 %2251 }
 0x414   : > { %v1432_v46 = vpop.f32.mrf.mxu1  ;;  %v1830_v47 = vsel %vm1826_vm3, %v7629_v45, -inf }
 0x415   : > { %v7638_v49 = vsel %vm1152_vm4, -1e+30, %v1432_v46  ;;  %1831 = vmax.xlane.f32.xlu1 %v1830_v47  ;;  %v7755_v46 = vpop.permute.xlu0 %2136 }
 0x416   : > { %v1827_v50 = vsel %vm1826_vm3, %v7638_v49, -inf }
 0x417   : > { %v5593_v51 = vpop.f32.mrf.mxu1  ;;  %1828 = vmax.xlane.f32.xlu0 %v1827_v50 }
 0x418   : > { %v7647_v52 = vsel %vm1155_vm5, -1e+30, %v5593_v51  ;;  %v7764_v51 = vpop.permute.xlu1 %2247 }
 0x419   : > { %v1442_v53 = vpop.f32.mrf.mxu1  ;;  %v1836_v54 = vsel %vm1826_vm3, %v7647_v52, -inf }
 0x41a   : > { %v7656_v55 = vsel %vm1154_vm6, -1e+30, %v1442_v53  ;;  %v7768_v53 = vpop.permute.xlu0 %2259 }
 0x41b   : > { %1837 = vmax.xlane.f32.xlu0 %v1836_v54  ;;  %v1833_v56 = vsel %vm1826_vm3, %v7656_v55, -inf }
 0x41c   : > { %v7770_v54 = vpop.permute.xlu1 %2245 }
 0x41f   : > { %1834 = vmax.xlane.f32.xlu0 %v1833_v56  ;;  %v7772_v56 = vpop.permute.xlu0 %2257 }
 0x426   : > { %2376 = vrot.lane.b32.xlu1 %v7557_v12, %s6884_s17 }
 0x488   : > { %v5612_v60 = vpop.f32.mrf.mxu0 }
 0x489   : > { %v7671_v61 = vsel %vm1153_vm2, -1e+30, %v5612_v60  ;;  %v7774_v60 = vpop.permute.xlu1 %2380 }
 0x48a   : > { %v1549_v62 = vpop.f32.mrf.mxu0  ;;  %v1842_v63 = vsel %vm1826_vm3, %v7671_v61, -inf }
 0x48b   : > { %v7680_v2 = vsel %vm1152_vm4, -1e+30, %v1549_v62  ;;  %1843 = vmax.xlane.f32.xlu0 %v1842_v63  ;;  %v7776_v62 = vpop.permute.xlu0 %2249 }
 0x48c   : > { %v1839_v3 = vsel %vm1826_vm3, %v7680_v2, -inf  ;;  %v5615_v4 = vpop.f32.mrf.mxu0 }
 0x48d   : > { %1840 = vmax.xlane.f32.xlu1 %v1839_v3  ;;  %v7696_v11 = vsel %vm1155_vm5, -1e+30, %v5615_v4  ;;  %v7778_v39 = vpop.permute.xlu1 %2378 }
 0x48e   : > { %v1559_v8 = vpop.f32.mrf.mxu0  ;;  %v1848_v19 = vsel %vm1826_vm3, %v7696_v11, -inf }
 0x48f   : > { %v7708_v16 = vsel %vm1154_vm6, -1e+30, %v1559_v8 }
 0x490   : > { %v5634_v5 = vpop.f32.mrf.mxu1  ;;  %v1845_v24 = vsel %vm1826_vm3, %v7708_v16, -inf }
 0x491   : > { %v7689_v7 = vsel %vm1153_vm2, -1e+30, %v5634_v5 }
 0x492   : > { %v1666_v9 = vpop.f32.mrf.mxu1  ;;  %v1854_v10 = vsel %vm1826_vm3, %v7689_v7, -inf }
 0x493   : > { %v7701_v12 = vsel %vm1152_vm4, -1e+30, %v1666_v9  ;;  %1855 = vmax.xlane.f32.xlu0 %v1854_v10 }
 0x494   : > { %v5637_v13 = vpop.f32.mrf.mxu1  ;;  %v1851_v14 = vsel %vm1826_vm3, %v7701_v12, -inf }
 0x495   : > { %1852 = vmax.xlane.f32.xlu1 %v1851_v14  ;;  %v7715_v21 = vsel %vm1155_vm5, -1e+30, %v5637_v13 }
 0x496   : > { %v1676_v17 = vpop.f32.mrf.mxu1  ;;  %v1860_v27 = vsel %vm1826_vm3, %v7715_v21, -inf }
 0x497   : > { %1849 = vmax.xlane.f32.xlu0 %v1848_v19  ;;  %v7724_v26 = vsel %vm1154_vm6, -1e+30, %v1676_v17 }
 0x498   : > { %v1857_v28 = vsel %vm1826_vm3, %v7724_v26, -inf }
 0x499   : > { %1846 = vmax.xlane.f32.xlu1 %v1845_v24 }
 0x49b   : > { %1861 = vmax.xlane.f32.xlu0 %v1860_v27 }
 0x49d   : > { %1858 = vmax.xlane.f32.xlu1 %v1857_v28 }
 0x49e   : > { %v1832_v63 = vpop.xlane.xlu1 %1831 }
 0x49f   : > { %v1876_v3 = vsub.f32 %v7629_v45, %v1832_v63 }
 0x4a0   : > { %v1829_v48 = vpop.xlane.xlu0 %1828 }
 0x4a1   : > { %v1875_v5 = vsub.f32 %v7638_v49, %v1829_v48  ;;  %v1893_v8 = vmul.f32 1.442695, %v1876_v3 }
 0x4a2   : > { %v7804_v28 = vpop.permute.xlu1 %2376 }
 0x4a3   : > { %v1891_v9 = vmul.f32 1.442695, %v1875_v5  ;;  %6300 = vpow2.f32 %v1893_v8 }
 0x4a4   : > { %v1838_v4 = vpop.xlane.xlu0 %1837 }
 0x4a5   : > { %v1878_v10 = vsub.f32 %v7647_v52, %v1838_v4  ;;  %6302 = vpow2.f32 %v1891_v9 }
 0x4a7   : > { %v1897_v14 = vmul.f32 1.442695, %v1878_v10 }
 0x4a8   : > { %v5656_v31 = vpop.f32.mrf.mxu0  ;;  %v1835_v13 = vpop.xlane.xlu0 %1834 }
 0x4a9   : > { %v7737_v32 = vsel %vm1153_vm2, -1e+30, %v5656_v31  ;;  %6304 = vpow2.f32 %v1897_v14 }
 0x4aa   : > { %v1783_v36 = vpop.f32.mrf.mxu0  ;;  %v1866_v37 = vsel %vm1826_vm3, %v7737_v32, -inf }
 0x4ab   : > { %v7746_v40 = vsel %vm1152_vm4, -1e+30, %v1783_v36  ;;  %1867 = vmax.xlane.f32.xlu0 %v1866_v37 }
 0x4ac   : > { %v5659_v42 = vpop.f32.mrf.mxu0  ;;  %v1863_v44 = vsel %vm1826_vm3, %v7746_v40, -inf }
 0x4ad   : > { %v7753_v38 = vsel %vm1155_vm5, -1e+30, %v5659_v42  ;;  %1864 = vmax.xlane.f32.xlu1 %v1863_v44 }
 0x4ae   : > { %v1793_v47 = vpop.f32.mrf.mxu0  ;;  %v1872_v50 = vsel %vm1826_vm3, %v7753_v38, -inf }
 0x4af   : > { %v7762_v41 = vsel %vm1154_vm6, -1e+30, %v1793_v47  ;;  %1873 = vmax.xlane.f32.xlu0 %v1872_v50 }
 0x4b0   : > { %v1869_v43 = vsel %vm1826_vm3, %v7762_v41, -inf }
 0x4b1   : > { %1870 = vmax.xlane.f32.xlu1 %v1869_v43 }
 0x4c2   : > { %2374 = vrot.lane.b32.xlu1 %v7564_v15, %s6884_s17  ;;  %v1877_v15 = vsub.f32 %v7656_v55, %v1835_v13 }
 0x4c4   : > { %v1895_v17 = vmul.f32 1.442695, %v1877_v15 }
 0x4c5   : > { %2372 = vrot.lane.b32.xlu0 %v7572_v18, %s6884_s17  ;;  %v7788_v18 = vpop.eup %6300 }
 0x4c6   : > { %6306 = vpow2.f32 %v1895_v17  ;;  %v7790_v19 = vpop.eup %6302  ;;  %v1926_v45 = vsel %vm1826_vm3, %v7788_v18, 0.0 }
 0x4c7   : > { %v1923_v49 = vsel %vm1826_vm3, %v7790_v19, 0.0  ;;  %v7796_v52 = vpop.eup %6304 }
 0x4c8   : > { %v1932_v55 = vsel %vm1826_vm3, %v7796_v52, 0.0 }
 0x4d3   : > { %v7800_v24 = vpop.eup %6306 }
 0x4d4   : > { %v1929_v27 = vsel %vm1826_vm3, %v7800_v24, 0.0 }
 0x4e4   : > { %1927 = vadd.xlane.f32.xlu0 %v1926_v45 }
 0x4e6   : > { %1924 = vadd.xlane.f32.xlu1 %v1923_v49 }
 0x4ea   : > { %1933 = vadd.xlane.f32.xlu1 %v1932_v55 }
 0x4ee   : > { %1930 = vadd.xlane.f32.xlu1 %v1929_v27 }
 0x514   : > { %v1844_v31 = vpop.xlane.xlu0 %1843 }
 0x515   : > { %v1880_v36 = vsub.f32 %v7671_v61, %v1844_v31 }
 0x516   : > { %v1841_v42 = vpop.xlane.xlu1 %1840 }
 0x517   : > { %v1901_v37 = vmul.f32 1.442695, %v1880_v36  ;;  %v1879_v44 = vsub.f32 %v7680_v2, %v1841_v42 }
 0x519   : > { %6308 = vpow2.f32 %v1901_v37  ;;  %v1899_v43 = vmul.f32 1.442695, %v1879_v44 }
 0x51c   : > { %v1856_v47 = vpop.xlane.xlu0 %1855 }
 0x51d   : > { %v1884_v50 = vsub.f32 %v7689_v7, %v1856_v47 }
 0x51e   : > { %v1853_v48 = vpop.xlane.xlu1 %1852 }
 0x51f   : > { %v1909_v63 = vmul.f32 1.442695, %v1884_v50  ;;  %v1883_v3 = vsub.f32 %v7701_v12, %v1853_v48 }
 0x520   : > { %v1850_v4 = vpop.xlane.xlu0 %1849 }
 0x521   : > { %6310 = vpow2.f32 %v1909_v63  ;;  %v1907_v5 = vmul.f32 1.442695, %v1883_v3  ;;  %v1882_v8 = vsub.f32 %v7696_v11, %v1850_v4 }
 0x522   : > { %6312 = vpow2.f32 %v1899_v43  ;;  %v1847_v61 = vpop.xlane.xlu1 %1846 }
 0x523   : > { %6314 = vpow2.f32 %v1907_v5  ;;  %v1905_v9 = vmul.f32 1.442695, %v1882_v8  ;;  %v1881_v10 = vsub.f32 %v7708_v16, %v1847_v61 }
 0x524   : > { %v1862_v2 = vpop.xlane.xlu0 %1861 }
 0x525   : > { %6316 = vpow2.f32 %v1905_v9  ;;  %v1886_v7 = vsub.f32 %v7715_v21, %v1862_v2  ;;  %v1903_v14 = vmul.f32 1.442695, %v1881_v10 }
 0x526   : > { %v7813_v13 = vpop.eup %6308  ;;  %v1859_v15 = vpop.xlane.xlu1 %1858 }
 0x527   : > { %v1913_v12 = vmul.f32 1.442695, %v1886_v7  ;;  %v1885_v17 = vsub.f32 %v7724_v26, %v1859_v15  ;;  %v1938_v11 = vsel %vm1826_vm3, %v7813_v13, 0.0 }
 0x528   : > { %1939 = vadd.xlane.f32.xlu1 %v1938_v11 }
 0x529   : > { %6318 = vpow2.f32 %v1913_v12  ;;  %v1911_v45 = vmul.f32 1.442695, %v1885_v17 }
 0x52a   : > { %6320 = vpow2.f32 %v1903_v14 }
 0x52b   : > { %6322 = vpow2.f32 %v1911_v45 }
 0x52e   : > { %v7818_v16 = vpop.eup %6310 }
 0x52f   : > { %v7820_v49 = vpop.eup %6312  ;;  %v1950_v21 = vsel %vm1826_vm3, %v7818_v16, 0.0 }
 0x530   : > { %v7824_v55 = vpop.eup %6314  ;;  %1951 = vadd.xlane.f32.xlu0 %v1950_v21  ;;  %v1935_v31 = vsel %vm1826_vm3, %v7820_v49, 0.0 }
 0x531   : > { %v1947_v26 = vsel %vm1826_vm3, %v7824_v55, 0.0 }
 0x532   : > { %v7828_v27 = vpop.eup %6316  ;;  %1948 = vadd.xlane.f32.xlu1 %v1947_v26 }
 0x533   : > { %v1944_v42 = vsel %vm1826_vm3, %v7828_v27, 0.0 }
 0x534   : > { %v1868_v36 = vpop.xlane.xlu0 %1867  ;;  %1936 = vadd.xlane.f32.xlu0 %v1935_v31 }
 0x535   : > { %v1888_v37 = vsub.f32 %v7737_v32, %v1868_v36 }
 0x536   : > { %v7835_v44 = vpop.eup %6318  ;;  %1945 = vadd.xlane.f32.xlu1 %v1944_v42  ;;  %v1865_v5 = vpop.xlane.xlu1 %1864 }
 0x537   : > { %v7837_v47 = vpop.eup %6320  ;;  %v1917_v50 = vmul.f32 1.442695, %v1888_v37  ;;  %v1956_v43 = vsel %vm1826_vm3, %v7835_v44, 0.0  ;;  %v1887_v8 = vsub.f32 %v7746_v40, %v1865_v5 }
 0x538   : > { %v7841_v48 = vpop.eup %6322  ;;  %1957 = vadd.xlane.f32.xlu0 %v1956_v43  ;;  %v1941_v32 = vsel %vm1826_vm3, %v7837_v47, 0.0  ;;  %v1874_v10 = vpop.xlane.xlu0 %1873 }
 0x539   : > { %6324 = vpow2.f32 %v1917_v50  ;;  %v1953_v63 = vsel %vm1826_vm3, %v7841_v48, 0.0  ;;  %v1915_v61 = vmul.f32 1.442695, %v1887_v8 }
 0x53a   : > { %1954 = vadd.xlane.f32.xlu1 %v1953_v63  ;;  %v1871_v9 = vpop.xlane.xlu1 %1870 }
 0x53b   : > { %6326 = vpow2.f32 %v1915_v61  ;;  %v1889_v2 = vsub.f32 %v7762_v41, %v1871_v9 }
 0x53c   : > { %1942 = vadd.xlane.f32.xlu0 %v1941_v32  ;;  %v7857_v7 = vpop.permute.xlu0 %2372 }
 0x53d   : > { %v1919_v14 = vmul.f32 1.442695, %v1889_v2 }
 0x53e   : > { %v7859_v15 = vpop.permute.xlu1 %2374 }
 0x53f   : > { %6328 = vpow2.f32 %v1919_v14 }
 0x546   : > { %v7847_v3 = vpop.eup %6324 }
 0x547   : > { %v1962_v4 = vsel %vm1826_vm3, %v7847_v3, 0.0 }
 0x548   : > { %1963 = vadd.xlane.f32.xlu1 %v1962_v4  ;;  %v7861_v12 = vpop.eup %6326 }
 0x54c   : > { %v7865_v41 = vpop.eup %6328 }
 0x54d   : > { %v1965_v21 = vsel %vm1826_vm3, %v7865_v41, 0.0 }
 0x552   : > { %2368 = vrot.lane.b32.xlu0 %v7586_v23, %s6884_s17 }
 0x559   : > { %2370 = vrot.lane.b32.xlu1 %v7580_v20, %s6884_s17  ;;  %v1959_v20 = vsel %vm1826_vm3, %v7861_v12, 0.0 }
 0x56d   : > { %v1928_v23 = vpop.xlane.xlu0 %1927 }
 0x56e   : > { %6330 = vrcp.f32 %v1928_v23 }
 0x56f   : > { %v1925_v40 = vpop.xlane.xlu1 %1924 }
 0x570   : > { %6332 = vrcp.f32 %v1925_v40 }
 0x571   : > { %1960 = vadd.xlane.f32.xlu0 %v1959_v20 }
 0x573   : > { %v1934_v17 = vpop.xlane.xlu1 %1933 }
 0x574   : > { %6334 = vrcp.f32 %v1934_v17 }
 0x577   : > { %v1931_v11 = vpop.xlane.xlu1 %1930 }
 0x578   : > { %6336 = vrcp.f32 %v1931_v11  ;;  %v1332_v11 = vld [vmem:[#allocation12 + $0x78] sm:$0xff] }
 0x579   : > { %5748 = vmatprep.subr.mxu0 %v1332_v11 }
 0x57a   : > { %5749 = vmatpush3.msra.mxu0 %v1332_v11 }
 0x57b   : > { %v6331_v45 = vpop.eup %6330 }
 0x57c   : > { %v1988_v36 = vmul.f32 %v6331_v45, %v7788_v18 }
 0x57d   : > { %v6333_v26 = vpop.eup %6332  ;;  %1966 = vadd.xlane.f32.xlu1 %v1965_v21  ;;  %v1330_v21 = vld [vmem:[#allocation12 + $0x68] sm:$0xff] }
 0x57e   : > { %v1987_v31 = vmul.f32 %v6333_v26, %v7790_v19 }
 0x580   : > { %5676 = vmatprep.mubr.msk.f32.mxu1 %vm1826_vm3, %v1987_v31  ;;  %v1329_v31 = vld [vmem:[#allocation12 + $0x60] sm:$0xff] }
 0x581   : > { %5677 = vmatmul.mubr.msk.f32.vlgmr.msra.gmra.mxu1 %vm1826_vm3, %v1988_v36  ;;  %v6335_v37 = vpop.eup %6334 }
 0x582   : > { %5683 = vmatpush3.msra.mxu1 %v7603_v33  ;;  %v1990_v18 = vmul.f32 %v6335_v37, %v7796_v52  ;;  %v1890_v33 = vsub.f32 %v7753_v38, %v1874_v10  ;;  %v1328_v37 = vld [vmem:[#allocation12 + $0x58] sm:$0xff] }
 0x583   : > { %5684 = vmatprep.subr.mxu1 %v7755_v46 }
 0x584   : > { %5685 = vmatpush3.msra.mxu1 %v7755_v46 }
 0x585   : > { %v6337_v42 = vpop.eup %6336  ;;  %5686 = vmatprep.subr.mxu1 %v7662_v57 }
 0x586   : > { %5687 = vmatpush3.msra.mxu1 %v7662_v57  ;;  %v1989_v19 = vmul.f32 %v6337_v42, %v7800_v24 }
 0x587   : > { %5688 = vmatprep.subr.mxu1 %v7664_v58  ;;  %2366 = vrot.lane.b32.xlu0 %v7592_v25, %s6884_s17  ;;  %v1921_v25 = vmul.f32 1.442695, %v1890_v33 }
 0x588   : > { %5689 = vmatpush3.msra.mxu1 %v7664_v58  ;;  %5679 = vmatprep.mubr.msk.f32.mxu1 %vm1826_vm3, %v1989_v19 }
 0x589   : > { %5690 = vmatprep.subr.mxu1 %v7666_v59  ;;  %5680 = vmatmul.mubr.msk.f32.gmra.mxu1 %vm1826_vm3, %v1990_v18  ;;  %6338 = vpow2.f32 %v1921_v25  ;;  %v1327_v18 = vld [vmem:[#allocation12 + $0x50] sm:$0xff]  ;;  %v1326_v25 = vld [vmem:[#allocation12 + $0x48] sm:$0xff] }
 0x58a   : > { %5691 = vmatpush3.msra.mxu1 %v7666_v59 }
 0x58b   : > { %5692 = vmatprep.subr.mxu1 %v7675_v1 }
 0x58c   : > { %5693 = vmatpush3.msra.mxu1 %v7675_v1 }
 0x58d   : > { %5694 = vmatprep.subr.mxu1 %v7684_v6 }
 0x58e   : > { %5695 = vmatpush3.msra.mxu1 %v7684_v6 }
 0x58f   : > { %5696 = vmatprep.subr.mxu1 %v7717_v22 }
 0x590   : > { %5697 = vmatpush3.msra.mxu1 %v7717_v22 }
 0x591   : > { %5704 = vmatprep.subr.mxu1 %v7768_v53 }
 0x596   : > { %v7896_v57 = vpop.eup %6338 }
 0x597   : > { %v1968_v58 = vsel %vm1826_vm3, %v7896_v57, 0.0 }
 0x5a6   : > { %1969 = vadd.xlane.f32.xlu0 %v1968_v58  ;;  %v1325_v58 = vld [vmem:[#allocation12 + $0x40] sm:$0xff] }
 0x5b1   : > { %v1940_v59 = vpop.xlane.xlu1 %1939 }
 0x5b2   : > { %6340 = vrcp.f32 %v1940_v59  ;;  %v1324_v59 = vld [vmem:[#allocation12 + $0x38] sm:$0xff] }
 0x5b9   : > { %v1952_v1 = vpop.xlane.xlu0 %1951 }
 0x5bb   : > { %v1949_v38 = vpop.xlane.xlu1 %1948 }
 0x5bd   : > { %v1937_v46 = vpop.xlane.xlu0 %1936 }
 0x5be   : > { %6342 = vrcp.f32 %v1937_v46  ;;  %v1321_v46 = vld [vmem:[#allocation12 + $0x20] sm:$0xff] }
 0x5bf   : > { %v1946_v52 = vpop.xlane.xlu1 %1945  ;;  %6344 = vrcp.f32 %v1949_v38  ;;  %v6341_v24 = vpop.eup %6340  ;;  %v1322_v38 = vld [vmem:[#allocation12 + $0x28] sm:$0xff] }
 0x5c0   : > { %6346 = vrcp.f32 %v1946_v52  ;;  %v1992_v32 = vmul.f32 %v6341_v24, %v7813_v13  ;;  %v1319_v52 = vld [vmem:[#allocation12 + $0x10] sm:$0xff]  ;;  %v1317_v24 = vld [vmem:[#allocation12] sm:$0xff] }
 0x5c1   : > { %v1958_v6 = vpop.xlane.xlu0 %1957 }
 0x5c3   : > { %v1955_v43 = vpop.xlane.xlu1 %1954 }
 0x5c5   : > { %v1943_v22 = vpop.xlane.xlu0 %1942 }
 0x5c6   : > { %6348 = vrcp.f32 %v1943_v22  ;;  %v1318_v22 = vld [vmem:[#allocation12 + $0x8] sm:$0xff] }
 0x5c7   : > { %6350 = vrcp.f32 %v1952_v1  ;;  %v1323_v1 = vld [vmem:[#allocation12 + $0x30] sm:$0xff] }
 0x5c8   : > { %6352 = vrcp.f32 %v1955_v43 }
 0x5c9   : > { %6354 = vrcp.f32 %v1958_v6  ;;  %v1320_v6 = vld [vmem:[#allocation12 + $0x18] sm:$0xff] }
 0x5cb   : > { %v6343_v50 = vpop.eup %6342 }
 0x5cc   : > { %v1991_v63 = vmul.f32 %v6343_v50, %v7820_v49  ;;  %v6345_v4 = vpop.eup %6344 }
 0x5cd   : > { %v6347_v5 = vpop.eup %6346 }
 0x5ce   : > { %5698 = vmatprep.mubr.msk.f32.mxu1 %vm1826_vm3, %v1991_v63  ;;  %v1994_v49 = vmul.f32 %v6347_v5, %v7828_v27 }
 0x5cf   : > { %5699 = vmatmul.mubr.msk.f32.vlgmr.msra.gmra.mxu1 %vm1826_vm3, %v1992_v32 }
 0x5d0   : > { %5705 = vmatpush3.msra.mxu1 %v7768_v53  ;;  %v1995_v53 = vmul.f32 %v6345_v4, %v7824_v55 }
 0x5d1   : > { %5706 = vmatprep.subr.mxu1 %v7772_v56 }
 0x5d2   : > { %5707 = vmatpush3.msra.mxu1 %v7772_v56 }
 0x5d3   : > { %v6349_v8 = vpop.eup %6348  ;;  %5708 = vmatprep.subr.mxu1 %v7730_v29 }
 0x5d4   : > { %5709 = vmatpush3.msra.mxu1 %v7730_v29  ;;  %v1993_v13 = vmul.f32 %v6349_v8, %v7837_v47  ;;  %v6351_v29 = vpop.eup %6350 }
 0x5d5   : > { %5710 = vmatprep.subr.mxu1 %v7732_v30  ;;  %v6353_v56 = vpop.eup %6352 }
 0x5d6   : > { %5711 = vmatpush3.msra.mxu1 %v7732_v30  ;;  %5701 = vmatprep.mubr.msk.f32.mxu1 %vm1826_vm3, %v1993_v13  ;;  %v1996_v30 = vmul.f32 %v6351_v29, %v7818_v16  ;;  %v6355_v55 = vpop.eup %6354 }
 0x5d7   : > { %5712 = vmatprep.subr.mxu1 %v7739_v34  ;;  %5702 = vmatmul.mubr.msk.f32.gmra.mxu1 %vm1826_vm3, %v1994_v49 }
 0x5d8   : > { %5713 = vmatpush3.msra.mxu1 %v7739_v34  ;;  %5720 = vmatprep.mubr.msk.f32.mxu1 %vm1826_vm3, %v1995_v53  ;;  %v1997_v34 = vmul.f32 %v6353_v56, %v7841_v48 }
 0x5d9   : > { %5714 = vmatprep.subr.mxu1 %v7776_v62 }
 0x5da   : > { %5715 = vmatpush3.msra.mxu1 %v7776_v62  ;;  %v1964_v62 = vpop.xlane.xlu1 %1963 }
 0x5db   : > { %5716 = vmatprep.subr.mxu1 %v7764_v51  ;;  %6356 = vrcp.f32 %v1964_v62 }
 0x5dc   : > { %5717 = vmatpush3.msra.mxu1 %v7764_v51  ;;  %v1998_v51 = vmul.f32 %v6355_v55, %v7835_v44 }
 0x5dd   : > { %5718 = vmatprep.subr.mxu1 %v7770_v54 }
 0x5de   : > { %5719 = vmatpush3.msra.mxu1 %v7770_v54  ;;  %v2371_v54 = vpop.permute.xlu1 %2370 }
 0x5df   : > { %5721 = vmatmul.mubr.msk.f32.vlgmr.msra.gmra.mxu1 %vm1826_vm3, %v1996_v30  ;;  %5726 = vmatprep.subr.mxu1 %v7774_v60 }
 0x5e0   : > { %5723 = vmatprep.mubr.msk.f32.mxu1 %vm1826_vm3, %v1997_v34  ;;  %5727 = vmatpush3.msra.mxu1 %v7774_v60  ;;  %v2369_v60 = vpop.permute.xlu0 %2368 }
 0x5e1   : > { %5728 = vmatprep.subr.mxu1 %v7778_v39 }
 0x5e2   : > { %5729 = vmatpush3.msra.mxu1 %v7778_v39 }
 0x5e3   : > { %5724 = vmatmul.mubr.msk.f32.gmra.mxu1 %vm1826_vm3, %v1998_v51  ;;  %5730 = vmatprep.subr.mxu1 %v7804_v28 }
 0x5e4   : > { %5731 = vmatpush3.msra.mxu1 %v7804_v28 }
 0x5e5   : > { %5732 = vmatprep.subr.mxu1 %v7859_v15 }
 0x5e6   : > { %5733 = vmatpush3.msra.mxu1 %v7859_v15 }
 0x5e7   : > { %5734 = vmatprep.subr.mxu1 %v7857_v7 }
 0x5e8   : > { %5735 = vmatpush3.msra.mxu1 %v7857_v7  ;;  %v6357_v27 = vpop.eup %6356 }
 0x5e9   : > { %5736 = vmatprep.subr.mxu1 %v2371_v54  ;;  %v2000_v48 = vmul.f32 %v6357_v27, %v7847_v3 }
 0x5ea   : > { %5737 = vmatpush3.msra.mxu1 %v2371_v54 }
 0x5eb   : > { %5738 = vmatprep.subr.mxu1 %v2369_v60 }
 0x5ec   : > { %5739 = vmatpush3.msra.mxu1 %v2369_v60 }
 0x5fa   : > { %v1961_v39 = vpop.xlane.xlu0 %1960 }
 0x5fb   : > { %6358 = vrcp.f32 %v1961_v39 }
 0x5fe   : > { %v2367_v16 = vpop.permute.xlu0 %2366 }
 0x5ff   : > { %5740 = vmatprep.subr.mxu1 %v2367_v16 }
 0x600   : > { %5741 = vmatpush3.msra.mxu1 %v2367_v16 }
 0x606   : > { %v1967_v28 = vpop.xlane.xlu1 %1966 }
 0x607   : > { %6360 = vrcp.f32 %v1967_v28 }
 0x608   : > { %v6359_v44 = vpop.eup %6358 }
 0x609   : > { %v1999_v47 = vmul.f32 %v6359_v44, %v7861_v12 }
 0x60b   : > { %5742 = vmatprep.mubr.msk.f32.mxu1 %vm1826_vm3, %v1999_v47 }
 0x60c   : > { %5743 = vmatmul.mubr.msk.f32.vlgmr.msra.gmra.mxu1 %vm1826_vm3, %v2000_v48 }
 0x614   : > { %v6361_v61 = vpop.eup %6360 }
 0x615   : > { %v2001_v9 = vmul.f32 %v6361_v61, %v7865_v41  ;;  %v1331_v41 = vld [vmem:[#allocation12 + $0x70] sm:$0xff] }
 0x616   : > { %5750 = vmatprep.subr.mxu0 %v1331_v41 }
 0x617   : > { %5745 = vmatprep.mubr.msk.f32.mxu1 %vm1826_vm3, %v2001_v9  ;;  %5751 = vmatpush3.msra.mxu0 %v1331_v41 }
 0x618   : > { %5752 = vmatprep.subr.mxu0 %v1330_v21 }
 0x619   : > { %5753 = vmatpush3.msra.mxu0 %v1330_v21 }
 0x61a   : > { %5754 = vmatprep.subr.mxu0 %v1329_v31 }
 0x61b   : > { %5755 = vmatpush3.msra.mxu0 %v1329_v31 }
 0x61c   : > { %5756 = vmatprep.subr.mxu0 %v1328_v37 }
 0x61d   : > { %5757 = vmatpush3.msra.mxu0 %v1328_v37 }
 0x61e   : > { %5758 = vmatprep.subr.mxu0 %v1327_v18 }
 0x61f   : > { %5759 = vmatpush3.msra.mxu0 %v1327_v18  ;;  %v2745_v18 = vld [vmem:[#allocation13 + $0x78] sm:$0xff] }
 0x620   : > { %5760 = vmatprep.subr.mxu0 %v1326_v25  ;;  %5786 = vmatprep.subr.mxu1 %v2745_v18 }
 0x621   : > { %5761 = vmatpush3.msra.mxu0 %v1326_v25  ;;  %5787 = vmatpush3.msra.mxu1 %v2745_v18  ;;  %v2743_v25 = vld [vmem:[#allocation13 + $0x68] sm:$0xff] }
 0x622   : > { %5762 = vmatprep.subr.mxu0 %v1325_v58 }
 0x623   : > { %5763 = vmatpush3.msra.mxu0 %v1325_v58 }
 0x624   : > { %5764 = vmatprep.subr.mxu0 %v1324_v59 }
 0x625   : > { %5765 = vmatpush3.msra.mxu0 %v1324_v59 }
 0x626   : > { %5766 = vmatprep.subr.mxu0 %v1323_v1 }
 0x627   : > { %5767 = vmatpush3.msra.mxu0 %v1323_v1 }
 0x628   : > { %5768 = vmatprep.subr.mxu0 %v1322_v38 }
 0x629   : > { %5769 = vmatpush3.msra.mxu0 %v1322_v38 }
 0x62a   : > { %5770 = vmatprep.subr.mxu0 %v1321_v46 }
 0x62b   : > { %5771 = vmatpush3.msra.mxu0 %v1321_v46 }
 0x62c   : > { %5772 = vmatprep.subr.mxu0 %v1320_v6 }
 0x62d   : > { %5773 = vmatpush3.msra.mxu0 %v1320_v6 }
 0x62e   : > { %5774 = vmatprep.subr.mxu0 %v1319_v52 }
 0x62f   : > { %v1970_v10 = vpop.xlane.xlu0 %1969  ;;  %5775 = vmatpush3.msra.mxu0 %v1319_v52 }
 0x630   : > { %6362 = vrcp.f32 %v1970_v10  ;;  %5776 = vmatprep.subr.mxu0 %v1318_v22 }
 0x631   : > { %5777 = vmatpush3.msra.mxu0 %v1318_v22  ;;  %v2742_v22 = vld [vmem:[#allocation13 + $0x60] sm:$0xff] }
 0x632   : > { %5778 = vmatprep.subr.mxu0 %v1317_v24 }
 0x633   : > { %5779 = vmatpush3.msra.mxu0 %v1317_v24  ;;  %v2741_v24 = vld [vmem:[#allocation13 + $0x58] sm:$0xff] }
 0x63d   : > { %v6363_v2 = vpop.eup %6362 }
 0x63e   : > { %v2002_v7 = vmul.f32 %v6363_v2, %v7896_v57 }
 0x640   : > { %5746 = vmatmul.mubr.msk.f32.gmra.mxu1 %vm1826_vm3, %v2002_v7 }
 0x641   : > { %v7949_v14 = vpop.f32.mrf.mxu1 }
 0x643   : > { %v7951_v15 = vpop.f32.mrf.mxu1 }
 0x649   : > { %v7953_v3 = vpop.f32.mrf.mxu1 }
 0x64b   : > { %v7955_v12 = vpop.f32.mrf.mxu1 }
 0x68f   : > { %v5700_v23 = vpop.f32.mrf.mxu1 }
 0x691   : > { %v2226_v40 = vpop.f32.mrf.mxu1 }
 0x692   : > { %v6240_v20 = vpack.i.bf16 %v5700_v23, %v2226_v40 }
 0x694   : > { %6241 = vrot.lane.b32.xlu0 %v6240_v20, %s6886_s22 }
 0x697   : > { %v7958_v17 = vpop.f32.mrf.mxu1 }
 0x699   : > { %v2236_v45 = vpop.f32.mrf.mxu1 }
 0x69a   : > { %v6255_v32 = vpack.i.bf16 %v7958_v17, %v2236_v45  ;;  %v6453_v45 = vld [vmem:[%s7365_s7] sm:$0xff] }
 0x69f   : > { %v5722_v26 = vpop.f32.mrf.mxu1 }
 0x6a1   : > { %v2347_v36 = vpop.f32.mrf.mxu1 }
 0x6a2   : > { %v6245_v42 = vpack.i.bf16 %v5722_v26, %v2347_v36  ;;  %v6454_v36 = vld [vmem:[%s7365_s7 + $0x10] sm:$0xff] }
 0x6a3   : > { %v5725_v19 = vpop.f32.mrf.mxu1 }
 0x6a4   : > { %6246 = vrot.lane.b32.xlu1 %v6245_v42, %s6885_s2  ;;  %v6455_v42 = vld [vmem:[%s7365_s7 + $0x18] sm:$0xff] }
 0x6a5   : > { %v2357_v33 = vpop.f32.mrf.mxu1 }
 0x6a6   : > { %v6260_v57 = vpack.i.bf16 %v5725_v19, %v2357_v33  ;;  %v2744_v33 = vld [vmem:[#allocation13 + $0x70] sm:$0xff] }
 0x6a7   : > { %5788 = vmatprep.subr.mxu1 %v2744_v33 }
 0x6a8   : > { %6261 = vrot.lane.b32.xlu0 %v6260_v57, %s6885_s2  ;;  %5789 = vmatpush3.msra.mxu1 %v2744_v33 }
 0x6a9   : > { %5790 = vmatprep.subr.mxu1 %v2743_v25 }
 0x6aa   : > { %5791 = vmatpush3.msra.mxu1 %v2743_v25 }
 0x6ab   : > { %5792 = vmatprep.subr.mxu1 %v2742_v22 }
 0x6ac   : > { %5793 = vmatpush3.msra.mxu1 %v2742_v22  ;;  %v8074_v22 = vld [vmem:[#allocation3 + $0x70] sm:$0xff] }
 0x6ad   : > { %5794 = vmatprep.subr.mxu1 %v2741_v24 }
 0x6ae   : > { %5795 = vmatpush3.msra.mxu1 %v2741_v24  ;;  %v8082_v24 = vld [vmem:[#allocation3 + $0x68] sm:$0xff] }
 0x6cc   : > { %v5744_v50 = vpop.f32.mrf.mxu1 }
 0x6ce   : > { %v2468_v43 = vpop.f32.mrf.mxu1 }
 0x6cf   : > { %v6250_v63 = vpack.i.bf16 %v5744_v50, %v2468_v43  ;;  %v2740_v50 = vld [vmem:[#allocation13 + $0x50] sm:$0xff]  ;;  %v2739_v43 = vld [vmem:[#allocation13 + $0x48] sm:$0xff] }
 0x6d0   : > { %5796 = vmatprep.subr.mxu1 %v2740_v50 }
 0x6d1   : > { %6251 = vrot.lane.b32.xlu1 %v6250_v63, %s6884_s17  ;;  %5797 = vmatpush3.msra.mxu1 %v2740_v50  ;;  %v2738_v63 = vld [vmem:[#allocation13 + $0x40] sm:$0xff] }
 0x6d2   : > { %5798 = vmatprep.subr.mxu1 %v2739_v43  ;;  %v8088_v50 = vld [vmem:[#allocation3 + $0x60] sm:$0xff] }
 0x6d3   : > { %5799 = vmatpush3.msra.mxu1 %v2739_v43  ;;  %v8094_v43 = vld [vmem:[#allocation3 + $0x58] sm:$0xff] }
 0x6d4   : > { %5800 = vmatprep.subr.mxu1 %v2738_v63 }
 0x6d5   : > { %6256 = vrot.lane.b32.xlu1 %v6255_v32, %s6886_s22  ;;  %v2737_v32 = vld [vmem:[#allocation13 + $0x38] sm:$0xff]  ;;  %5801 = vmatpush3.msra.mxu1 %v2738_v63  ;;  %v2708_v63 = vld [vmem:[#allocation3 + $0x50] sm:$0xff] }
 0x6d6   : > { %5802 = vmatprep.subr.mxu1 %v2737_v32 }
 0x6d7   : > { %5803 = vmatpush3.msra.mxu1 %v2737_v32  ;;  %v2707_v32 = vld [vmem:[#allocation3 + $0x48] sm:$0xff] }
 0x700   : > { %v5747_v4 = vpop.f32.mrf.mxu1 }
 0x702   : > { %v2478_v5 = vpop.f32.mrf.mxu1 }
 0x703   : > { %v6265_v8 = vpack.i.bf16 %v5747_v4, %v2478_v5  ;;  %v2736_v4 = vld [vmem:[#allocation13 + $0x30] sm:$0xff]  ;;  %v2735_v5 = vld [vmem:[#allocation13 + $0x28] sm:$0xff] }
 0x704   : > { %5804 = vmatprep.subr.mxu1 %v2736_v4 }
 0x705   : > { %6266 = vrot.lane.b32.xlu1 %v6265_v8, %s6884_s17  ;;  %5805 = vmatpush3.msra.mxu1 %v2736_v4  ;;  %v2734_v8 = vld [vmem:[#allocation13 + $0x20] sm:$0xff] }
 0x706   : > { %v6242_v13 = vpop.permute.xlu0 %6241  ;;  %5806 = vmatprep.subr.mxu1 %v2735_v5  ;;  %v8105_v4 = vld [vmem:[#allocation3 + $0x40] sm:$0xff] }
 0x707   : > { %v6244_v53 = vunpack.i.h.bf16 %v6242_v13  ;;  %v6243_v29 = vunpack.i.l.bf16 %v6242_v13  ;;  %5807 = vmatpush3.msra.mxu1 %v2735_v5  ;;  %v2733_v13 = vld [vmem:[#allocation13 + $0x18] sm:$0xff] }
 0x708   : > { %5808 = vmatprep.subr.mxu1 %v2734_v8  ;;  %v8112_v5 = vld [vmem:[#allocation3 + $0xb8] sm:$0xff] }
 0x709   : > { %v2536_v34 = vsel %vm1333_vm1, %v7949_v14, %v6244_v53  ;;  %v2535_v54 = vsel %vm1333_vm1, %v7951_v15, %v6243_v29  ;;  %5809 = vmatpush3.msra.mxu1 %v2734_v8  ;;  %v2731_v53 = vld [vmem:[#allocation13 + $0x8] sm:$0xff]  ;;  %v2730_v29 = vld [vmem:[#allocation13] sm:$0xff]  ;;  %v8114_v8 = vld [vmem:[#allocation3 + $0xf8] sm:$0xff] }
 0x70a   : > { %5810 = vmatprep.subr.mxu1 %v2733_v13 }
 0x70b   : > { %5811 = vmatpush3.msra.mxu1 %v2733_v13 }
 0x716   : > { %v6247_v49 = vpop.permute.xlu1 %6246 }
 0x717   : > { %v6249_v56 = vunpack.i.h.bf16 %v6247_v49  ;;  %v6248_v30 = vunpack.i.l.bf16 %v6247_v49  ;;  %v2732_v49 = vld [vmem:[#allocation13 + $0x10] sm:$0xff] }
 0x718   : > { %5812 = vmatprep.subr.mxu1 %v2732_v49 }
 0x719   : > { %v2539_v60 = vsel %vm1826_vm3, %v2535_v54, %v6248_v30  ;;  %v2540_v39 = vsel %vm1826_vm3, %v2536_v34, %v6249_v56  ;;  %5813 = vmatpush3.msra.mxu1 %v2732_v49 }
 0x71a   : > { %v6262_v48 = vpop.permute.xlu0 %6261  ;;  %5814 = vmatprep.subr.mxu1 %v2731_v53 }
 0x71b   : > { %v6264_v10 = vunpack.i.h.bf16 %v6262_v48  ;;  %v6263_v2 = vunpack.i.l.bf16 %v6262_v48  ;;  %5815 = vmatpush3.msra.mxu1 %v2731_v53  ;;  %v8036_v48 = vld [vmem:[#allocation3 + $0x8] sm:$0xff]  ;;  %v2720_v53 = vld [vmem:[#allocation3 + $0xb0] sm:$0xff] }
 0x71c   : > { %5816 = vmatprep.subr.mxu1 %v2730_v29 }
 0x71d   : > { %5817 = vmatpush3.msra.mxu1 %v2730_v29  ;;  %v2719_v29 = vld [vmem:[#allocation3 + $0xa8] sm:$0xff] }
 0x743   : > { %v6252_v55 = vpop.permute.xlu1 %6251 }
 0x744   : > { %v6254_v51 = vunpack.i.h.bf16 %v6252_v55  ;;  %v6253_v62 = vunpack.i.l.bf16 %v6252_v55 }
 0x746   : > { %v2544_v16 = vsel %vm2543_vm7, %v2539_v60, %v6253_v62  ;;  %v2545_v28 = vsel %vm2543_vm7, %v2540_v39, %v6254_v51  ;;  %v8002_v39 = vld [vmem:[#allocation3 + $0x38] sm:$0xff] }
 0x747   : > { %5780 = vmatprep.mubr.f32.mxu0 %v2544_v16  ;;  %v6257_v27 = vpop.permute.xlu1 %6256  ;;  %v8004_v16 = vld [vmem:[#allocation3 + $0x30] sm:$0xff]  ;;  %5824 = vmatprep.subr.msk.mxu0 %vm1333_vm1, %v8002_v39 }
 0x748   : > { %5781 = vmatmul.mubr.f32.vlgmr.msra.gmra.mxu0 %v2545_v28  ;;  %v6259_v44 = vunpack.i.h.bf16 %v6257_v27  ;;  %v6258_v47 = vunpack.i.l.bf16 %v6257_v27  ;;  %v8012_v28 = vld [vmem:[#allocation3 + $0x28] sm:$0xff]  ;;  %v8018_v27 = vld [vmem:[#allocation3 + $0x20] sm:$0xff] }
 0x749   : > { %5825 = vmatpush3.xpose.msk.msra.mxu0 %vm1333_vm1, %v8002_v39 }
 0x74a   : > { %v2537_v61 = vsel %vm1333_vm1, %v7955_v12, %v6258_v47  ;;  %v2538_v9 = vsel %vm1333_vm1, %v7953_v3, %v6259_v44  ;;  %v6452_v3 = vld [vmem:[%s7365_s7 + $0x8] sm:$0xff]  ;;  %5826 = vmatprep.subr.msk.mxu0 %vm1333_vm1, %v8004_v16  ;;  %v8024_v44 = vld [vmem:[#allocation3 + $0x18] sm:$0xff]  ;;  %v8030_v47 = vld [vmem:[#allocation3 + $0x10] sm:$0xff]  ;;  %s4817_s7 = sshll.u32 %s7246_s10, 4  ;;  %s8584_s7 = int_to_ptr.vmem [resolvable:$true] %s4817_s7 }
 0x74b   : > { %v2541_v23 = vsel %vm1826_vm3, %v2537_v61, %v6263_v2  ;;  %v2542_v40 = vsel %vm1826_vm3, %v2538_v9, %v6264_v10  ;;  %s6720_s11 = scalar_lea.vmem %s8584_s7, 512 }
 0x74c   : > { %p6721_p1 = scmp.ne.s32.totalorder %s8584_s7, %s6720_s11 }
 0x74d   : > { %5827 = vmatpush3.xpose.msk.msra.mxu0 %vm1333_vm1, %v8004_v16 }
 0x74e   : > { %5828 = vmatprep.subr.msk.mxu0 %vm1333_vm1, %v8012_v28  ;;  %p6722_p8 = pnand %p6721_p1, %p7149_p12 }
 0x750   : > { %p6723_p5 = pneg %p6722_p8 }
 0x751   : > { %5829 = vmatpush3.xpose.msk.msra.mxu0 %vm1333_vm1, %v8012_v28 }
 0x752   : > { %5830 = vmatprep.subr.msk.mxu0 %vm1333_vm1, %v8018_v27 }
 0x755   : > { %5831 = vmatpush3.xpose.msk.msra.mxu0 %vm1333_vm1, %v8018_v27 }
 0x756   : > { %5832 = vmatprep.subr.msk.mxu0 %vm1333_vm1, %v8024_v44 }
 0x759   : > { %5833 = vmatpush3.xpose.msk.msra.mxu0 %vm1333_vm1, %v8024_v44 }
 0x75a   : > { %5834 = vmatprep.subr.msk.mxu0 %vm1333_vm1, %v8030_v47 }
 0x75d   : > { %5835 = vmatpush3.xpose.msk.msra.mxu0 %vm1333_vm1, %v8030_v47 }
 0x75e   : > { %5836 = vmatprep.subr.msk.mxu0 %vm1333_vm1, %v8036_v48 }
 0x761   : > { %5837 = vmatpush3.xpose.msk.msra.mxu0 %vm1333_vm1, %v8036_v48 }
 0x777   : > { %v6267_v7 = vpop.permute.xlu1 %6266 }
 0x778   : > { %v6269_v14 = vunpack.i.h.bf16 %v6267_v7  ;;  %v6268_v15 = vunpack.i.l.bf16 %v6267_v7 }
 0x77a   : > { %v2546_v20 = vsel %vm2543_vm7, %v2541_v23, %v6268_v15  ;;  %v2547_v17 = vsel %vm2543_vm7, %v2542_v40, %v6269_v14  ;;  %v2684_v15 = vsub.s32 0, %v7606_v35 }
 0x77b   : > { %5783 = vmatprep.mubr.f32.mxu0 %v2546_v20  ;;  %v2692_v20 = vsub.s32 1, %v7606_v35 }
 0x77c   : > { %5784 = vmatmul.mubr.f32.gmra.mxu0 %v2547_v17  ;;  %v2685_v40 = vrot.slane %v7244_v0, %v2684_v15 }
 0x808   : > { %v5782_v12 = vpop.f32.mrf.mxu0 }
 0x809   : > { %v2634_v11 = vadd.f32 %v6452_v3, %v5782_v12 }
 0x80a   : > { %v2614_v41 = vpop.f32.mrf.mxu0 }
 0x80b   : > { %v2633_v21 = vadd.f32 %v6453_v45, %v2614_v41  ;;  %2639 = vadd.xlane.f32.xlu1 %v2634_v11 }
 0x80d   : > { %2637 = vadd.xlane.f32.xlu0 %v2633_v21 }
 0x83c   : > { %v5785_v26 = vpop.f32.mrf.mxu0 }
 0x83d   : > { %v7989_v19 = vadd.f32 %v6455_v42, %v5785_v26 }
 0x83e   : > { %v2624_v31 = vpop.f32.mrf.mxu0 }
 0x83f   : > { %v7985_v37 = vadd.f32 %v6454_v36, %v2624_v31 }
 0x841   : > { %2641 = vadd.xlane.f32.xlu0 %v7985_v37 }
 0x845   : > { %2643 = vadd.xlane.f32.xlu0 %v7989_v19 }
 0x894   : > { %v2640_v57 = vpop.xlane.xlu1 %2639 }
 0x895   : > { %v2647_v58 = vmul.f32 0.0078125, %v2640_v57 }
 0x896   : > { %v2638_v59 = vpop.xlane.xlu0 %2637 }
 0x897   : > { %v2646_v1 = vmul.f32 0.0078125, %v2638_v59  ;;  %v7992_v38 = vsub.f32 %v2634_v11, %v2647_v58  ;;  %v2693_v11 = vrot.slane %v7244_v0, %v2692_v20 }
 0x899   : > { %v2655_v46 = vmul.f32 %v7992_v38, %v7992_v38  ;;  %v7996_v6 = vsub.f32 %v2633_v21, %v2646_v1 }
 0x89b   : > { %2660 = vadd.xlane.f32.xlu1 %v2655_v46  ;;  %v2654_v52 = vmul.f32 %v7996_v6, %v7996_v6 }
 0x89d   : > { %2658 = vadd.xlane.f32.xlu0 %v2654_v52  ;;  %v8072_v52 = vld [vmem:[#allocation3 + $0x78] sm:$0xff] }
 0x89e   : > { %5846 = vmatprep.subr.msk.mxu1 %vm1333_vm1, %v8072_v52 }
 0x8ca   : > { %v2642_v56 = vpop.xlane.xlu0 %2641 }
 0x8cb   : > { %v2648_v30 = vmul.f32 0.0078125, %v2642_v56  ;;  %v2718_v56 = vld [vmem:[#allocation3 + $0xa0] sm:$0xff] }
 0x8cd   : > { %v2652_v55 = vsub.f32 %v7985_v37, %v2648_v30  ;;  %v2717_v30 = vld [vmem:[#allocation3 + $0x98] sm:$0xff] }
 0x8ce   : > { %v2644_v34 = vpop.xlane.xlu0 %2643 }
 0x8cf   : > { %v2649_v51 = vmul.f32 0.0078125, %v2644_v34  ;;  %v2656_v62 = vmul.f32 %v2652_v55, %v2652_v55  ;;  %v8138_v34 = vld [vmem:[#allocation3 + $0x88] sm:$0xff] }
 0x8d1   : > { %v2653_v54 = vsub.f32 %v7989_v19, %v2649_v51  ;;  %2662 = vadd.xlane.f32.xlu0 %v2656_v62  ;;  %v8144_v51 = vld [vmem:[#allocation3 + $0x80] sm:$0xff] }
 0x8d3   : > { %v2657_v60 = vmul.f32 %v2653_v54, %v2653_v54 }
 0x8d5   : > { %2664 = vadd.xlane.f32.xlu1 %v2657_v60 }
 0x924   : > { %v2661_v61 = vpop.xlane.xlu1 %2660 }
 0x925   : > { %v2667_v9 = vmul.f32 0.0078125, %v2661_v61  ;;  %v8219_v61 = vld [vmem:[#allocation3 + $0xc8] sm:$0xff] }
 0x926   : > { %v2659_v10 = vpop.xlane.xlu0 %2658 }
 0x927   : > { %v2671_v2 = vadd.f32 1e-05, %v2667_v9  ;;  %v2666_v7 = vmul.f32 0.0078125, %v2659_v10  ;;  %v8226_v9 = vld [vmem:[#allocation3 + $0xc0] sm:$0xff] }
 0x929   : > { %6364 = vrsqrt.f32 %v2671_v2  ;;  %v2670_v14 = vadd.f32 1e-05, %v2666_v7 }
 0x92b   : > { %6366 = vrsqrt.f32 %v2670_v14 }
 0x936   : > { %v6365_v23 = vpop.eup %6364 }
 0x937   : > { %v2679_v17 = vmul.f32 %v6365_v23, %v7992_v38 }
 0x938   : > { %v6367_v12 = vpop.eup %6366 }
 0x939   : > { %v2678_v3 = vmul.f32 %v6367_v12, %v7996_v6  ;;  %v2687_v41 = vmul.f32 %v2685_v40, %v2679_v17  ;;  %v8066_v6 = vld [vmem:[#allocation3] sm:$0xff] }
 0x93a   : > { %5838 = vmatprep.subr.msk.mxu0 %vm1333_vm1, %v8066_v6 }
 0x93b   : > { %v2686_v45 = vmul.f32 %v2685_v40, %v2678_v3  ;;  %v8056_v26 = vadd.f32 %v2693_v11, %v2687_v41  ;;  %5839 = vmatpush3.xpose.msk.msra.mxu0 %vm1333_vm1, %v8066_v6 }
 0x93c   : > { %5868 = vmatprep.subr.msk.mxu0 %vm1333_vm1, %v8112_v5 }
 0x93d   : > { %v8054_v21 = vadd.f32 %v2693_v11, %v2686_v45 }
 0x93f   : > { %5818 = vmatprep.mubr.f32.mxu1 %v8054_v21 }
 0x940   : > { %5819 = vmatmul.mubr.f32.vlgmr.msra.gmra.mxu1 %v8056_v26 }
 0x941   : > { %5847 = vmatpush3.xpose.msk.msra.mxu1 %vm1333_vm1, %v8072_v52 }
 0x942   : > { %5848 = vmatprep.subr.msk.mxu1 %vm1333_vm1, %v8074_v22 }
 0x945   : > { %5849 = vmatpush3.xpose.msk.msra.mxu1 %vm1333_vm1, %v8074_v22 }
 0x946   : > { %5850 = vmatprep.subr.msk.mxu1 %vm1333_vm1, %v8082_v24 }
 0x949   : > { %5851 = vmatpush3.xpose.msk.msra.mxu1 %vm1333_vm1, %v8082_v24 }
 0x94a   : > { %5852 = vmatprep.subr.msk.mxu1 %vm1333_vm1, %v8088_v50 }
 0x94d   : > { %5853 = vmatpush3.xpose.msk.msra.mxu1 %vm1333_vm1, %v8088_v50 }
 0x94e   : > { %5854 = vmatprep.subr.msk.mxu1 %vm1333_vm1, %v8094_v43 }
 0x951   : > { %5855 = vmatpush3.xpose.msk.msra.mxu1 %vm1333_vm1, %v8094_v43 }
 0x952   : > { %5856 = vmatprep.subr.msk.mxu1 %vm1333_vm1, %v2708_v63 }
 0x955   : > { %5857 = vmatpush3.xpose.msk.msra.mxu1 %vm1333_vm1, %v2708_v63 }
 0x956   : > { %5858 = vmatprep.subr.msk.mxu1 %vm1333_vm1, %v2707_v32 }
 0x959   : > { %5859 = vmatpush3.xpose.msk.msra.mxu1 %vm1333_vm1, %v2707_v32 }
 0x95a   : > { %v2663_v31 = vpop.xlane.xlu0 %2662  ;;  %5860 = vmatprep.subr.msk.mxu1 %vm1333_vm1, %v8105_v4 }
 0x95b   : > { %v2668_v36 = vmul.f32 0.0078125, %v2663_v31 }
 0x95d   : > { %v2672_v37 = vadd.f32 1e-05, %v2668_v36  ;;  %5861 = vmatpush3.xpose.msk.msra.mxu1 %vm1333_vm1, %v8105_v4 }
 0x95e   : > { %v2665_v42 = vpop.xlane.xlu1 %2664  ;;  %5890 = vmatprep.subr.msk.mxu1 %vm1333_vm1, %v8114_v8 }
 0x95f   : > { %6368 = vrsqrt.f32 %v2672_v37  ;;  %v2669_v19 = vmul.f32 0.0078125, %v2665_v42 }
 0x961   : > { %v2673_v18 = vadd.f32 1e-05, %v2669_v19 }
 0x963   : > { %6370 = vrsqrt.f32 %v2673_v18 }
 0x96c   : > { %v6369_v33 = vpop.eup %6368 }
 0x96d   : > { %v2680_v25 = vmul.f32 %v6369_v33, %v2652_v55  ;;  %v2716_v55 = vld [vmem:[#allocation3 + $0x90] sm:$0xff] }
 0x96f   : > { %v2688_v57 = vmul.f32 %v2685_v40, %v2680_v25 }
 0x970   : > { %v6371_v58 = vpop.eup %6370 }
 0x971   : > { %v8060_v59 = vadd.f32 %v2693_v11, %v2688_v57  ;;  %v2681_v1 = vmul.f32 %v6371_v58, %v2653_v54 }
 0x973   : > { %5821 = vmatprep.mubr.f32.mxu1 %v8060_v59  ;;  %v2689_v38 = vmul.f32 %v2685_v40, %v2681_v1 }
 0x975   : > { %v8063_v46 = vadd.f32 %v2693_v11, %v2689_v38 }
 0x977   : > { %5822 = vmatmul.mubr.f32.gmra.mxu1 %v8063_v46 }
 0xa00   : > { %v5820_v13 = vpop.f32.mrf.mxu1 }
 0xa01   : > { %2837 = vrot.lane.b32.xlu1 %v5820_v13, %s6884_s17 }
 0xa02   : > { %v2812_v49 = vpop.f32.mrf.mxu1 }
 0xa03   : > { %2835 = vrot.lane.b32.xlu0 %v2812_v49, %s6884_s17  ;;  %5840 = vmatprep.mubr.msk.f32.mxu0 %vm1333_vm1, %v2812_v49 }
 0xa04   : > { %5841 = vmatmul.mubr.msk.f32.vlgmr.msra.gmra.mxu0 %vm1333_vm1, %v5820_v13 }
 0xa05   : > { %5869 = vmatpush3.xpose.msk.msra.mxu0 %vm1333_vm1, %v8112_v5 }
 0xa06   : > { %5870 = vmatprep.subr.msk.mxu0 %vm1333_vm1, %v2720_v53 }
 0xa07   : > { %2843 = vrot.lane.b32.xlu0 %v2812_v49, %s6885_s2 }
 0xa09   : > { %5871 = vmatpush3.xpose.msk.msra.mxu0 %vm1333_vm1, %v2720_v53 }
 0xa0a   : > { %5872 = vmatprep.subr.msk.mxu0 %vm1333_vm1, %v2719_v29 }
 0xa0b   : > { %2851 = vrot.lane.b32.xlu0 %v2812_v49, %s6886_s22 }
 0xa0d   : > { %5873 = vmatpush3.xpose.msk.msra.mxu0 %vm1333_vm1, %v2719_v29 }
 0xa0e   : > { %5874 = vmatprep.subr.msk.mxu0 %vm1333_vm1, %v2718_v56 }
 0xa11   : > { %5875 = vmatpush3.xpose.msk.msra.mxu0 %vm1333_vm1, %v2718_v56 }
 0xa12   : > { %5876 = vmatprep.subr.msk.mxu0 %vm1333_vm1, %v2717_v30 }
 0xa15   : > { %5877 = vmatpush3.xpose.msk.msra.mxu0 %vm1333_vm1, %v2717_v30 }
 0xa16   : > { %5878 = vmatprep.subr.msk.mxu0 %vm1333_vm1, %v2716_v55 }
 0xa19   : > { %5879 = vmatpush3.xpose.msk.msra.mxu0 %vm1333_vm1, %v2716_v55 }
 0xa1a   : > { %5880 = vmatprep.subr.msk.mxu0 %vm1333_vm1, %v8138_v34 }
 0xa1d   : > { %5881 = vmatpush3.xpose.msk.msra.mxu0 %vm1333_vm1, %v8138_v34 }
 0xa1e   : > { %5882 = vmatprep.subr.msk.mxu0 %vm1333_vm1, %v8144_v51 }
 0xa21   : > { %5883 = vmatpush3.xpose.msk.msra.mxu0 %vm1333_vm1, %v8144_v51 }
 0xa37   : > { %v5823_v62 = vpop.f32.mrf.mxu1 }
 0xa38   : > { %2841 = vrot.lane.b32.xlu1 %v5823_v62, %s6884_s17 }
 0xa39   : > { %v2822_v54 = vpop.f32.mrf.mxu1 }
 0xa3a   : > { %2847 = vrot.lane.b32.xlu0 %v2822_v54, %s6885_s2  ;;  %5843 = vmatprep.mubr.msk.f32.mxu0 %vm1333_vm1, %v2822_v54 }
 0xa3b   : > { %5844 = vmatmul.mubr.msk.f32.gmra.mxu0 %vm1333_vm1, %v5823_v62 }
 0xa3c   : > { %2839 = vrot.lane.b32.xlu1 %v2822_v54, %s6884_s17 }
 0xa3e   : > { %2855 = vrot.lane.b32.xlu0 %v2822_v54, %s6886_s22 }
 0xa40   : > { %2845 = vrot.lane.b32.xlu1 %v5820_v13, %s6885_s2 }
 0xa42   : > { %3654 = vrot.lane.b32.xlu0 %v8072_v52, %s6884_s17 }
 0xa44   : > { %2853 = vrot.lane.b32.xlu1 %v5820_v13, %s6886_s22 }
 0xa46   : > { %3652 = vrot.lane.b32.xlu0 %v8074_v22, %s6884_s17 }
 0xa48   : > { %2849 = vrot.lane.b32.xlu1 %v5823_v62, %s6885_s2 }
 0xa4a   : > { %3650 = vrot.lane.b32.xlu0 %v8082_v24, %s6884_s17 }
 0xa4c   : > { %2857 = vrot.lane.b32.xlu1 %v5823_v62, %s6886_s22 }
 0xa4e   : > { %3523 = vrot.lane.b32.xlu0 %v8030_v47, %s6884_s17  ;;  %v2725_v47 = vld [vmem:[#allocation3 + $0xd8] sm:$0xff] }
 0xa50   : > { %3533 = vrot.lane.b32.xlu1 %v8002_v39, %s6884_s17 }
 0xa52   : > { %3644 = vrot.lane.b32.xlu0 %v2708_v63, %s6884_s17 }
 0xa54   : > { %3531 = vrot.lane.b32.xlu1 %v8004_v16, %s6884_s17  ;;  %v2728_v16 = vld [vmem:[#allocation3 + $0xf0] sm:$0xff] }
 0xa56   : > { %3642 = vrot.lane.b32.xlu0 %v2707_v32, %s6884_s17 }
 0xa58   : > { %3529 = vrot.lane.b32.xlu1 %v8012_v28, %s6884_s17 }
 0xa5a   : > { %3773 = vrot.lane.b32.xlu0 %v2720_v53, %s6884_s17 }
 0xa5c   : > { %3527 = vrot.lane.b32.xlu1 %v8018_v27, %s6884_s17  ;;  %v2727_v27 = vld [vmem:[#allocation3 + $0xe8] sm:$0xff] }
 0xa5e   : > { %3771 = vrot.lane.b32.xlu0 %v2719_v29, %s6884_s17 }
 0xa60   : > { %3648 = vrot.lane.b32.xlu1 %v8088_v50, %s6884_s17 }
 0xa62   : > { %3769 = vrot.lane.b32.xlu0 %v2718_v56, %s6884_s17 }
 0xa64   : > { %3525 = vrot.lane.b32.xlu1 %v8024_v44, %s6884_s17  ;;  %v2726_v44 = vld [vmem:[#allocation3 + $0xe0] sm:$0xff] }
 0xa66   : > { %3767 = vrot.lane.b32.xlu0 %v2717_v30, %s6884_s17 }
 0xa68   : > { %3646 = vrot.lane.b32.xlu1 %v8094_v43, %s6884_s17 }
 0xa6a   : > { %3765 = vrot.lane.b32.xlu0 %v2716_v55, %s6884_s17 }
 0xa6c   : > { %3521 = vrot.lane.b32.xlu1 %v8036_v48, %s6884_s17  ;;  %v8213_v48 = vld [vmem:[#allocation3 + $0xd0] sm:$0xff] }
 0xa70   : > { %3519 = vrot.lane.b32.xlu1 %v8066_v6, %s6884_s17 }
 0xa73   : > { %v2838_v39 = vpop.permute.xlu1 %2837 }
 0xa74   : > { %3640 = vrot.lane.b32.xlu1 %v8105_v4, %s6884_s17 }
 0xa75   : > { %v2836_v60 = vpop.permute.xlu0 %2835 }
 0xa76   : > { %5862 = vmatprep.mubr.msk.f32.mxu1 %vm1333_vm1, %v2836_v60 }
 0xa77   : > { %5863 = vmatmul.mubr.msk.f32.vlgmr.msra.gmra.mxu1 %vm1333_vm1, %v2838_v39 }
 0xa78   : > { %3775 = vrot.lane.b32.xlu1 %v8112_v5, %s6884_s17  ;;  %5891 = vmatpush3.xpose.msk.msra.mxu1 %vm1333_vm1, %v8114_v8 }
 0xa79   : > { %v2844_v28 = vpop.permute.xlu0 %2843  ;;  %5892 = vmatprep.subr.msk.mxu1 %vm1333_vm1, %v2728_v16 }
 0xa7a   : > { %5884 = vmatprep.mubr.msk.f32.mxu0 %vm1333_vm1, %v2844_v28 }
 0xa7c   : > { %3896 = vrot.lane.b32.xlu1 %v8114_v8, %s6884_s17  ;;  %5893 = vmatpush3.xpose.msk.msra.mxu1 %vm1333_vm1, %v2728_v16 }
 0xa7d   : > { %5894 = vmatprep.subr.msk.mxu1 %vm1333_vm1, %v2727_v27  ;;  %v2852_v10 = vpop.permute.xlu0 %2851 }
 0xa80   : > { %3894 = vrot.lane.b32.xlu1 %v2728_v16, %s6884_s17  ;;  %5895 = vmatpush3.xpose.msk.msra.mxu1 %vm1333_vm1, %v2727_v27 }
 0xa81   : > { %5896 = vmatprep.subr.msk.mxu1 %vm1333_vm1, %v2726_v44 }
 0xa84   : > { %3892 = vrot.lane.b32.xlu1 %v2727_v27, %s6884_s17  ;;  %5897 = vmatpush3.xpose.msk.msra.mxu1 %vm1333_vm1, %v2726_v44 }
 0xa85   : > { %5898 = vmatprep.subr.msk.mxu1 %vm1333_vm1, %v2725_v47 }
 0xa88   : > { %3890 = vrot.lane.b32.xlu1 %v2726_v44, %s6884_s17  ;;  %5899 = vmatpush3.xpose.msk.msra.mxu1 %vm1333_vm1, %v2725_v47 }
 0xa89   : > { %5900 = vmatprep.subr.msk.mxu1 %vm1333_vm1, %v8213_v48 }
 0xa8c   : > { %3888 = vrot.lane.b32.xlu1 %v2725_v47, %s6884_s17  ;;  %5901 = vmatpush3.xpose.msk.msra.mxu1 %vm1333_vm1, %v8213_v48 }
 0xa8d   : > { %5902 = vmatprep.subr.msk.mxu1 %vm1333_vm1, %v8219_v61 }
 0xa90   : > { %5903 = vmatpush3.xpose.msk.msra.mxu1 %vm1333_vm1, %v8219_v61 }
 0xa91   : > { %5904 = vmatprep.subr.msk.mxu1 %vm1333_vm1, %v8226_v9 }
 0xa94   : > { %5905 = vmatpush3.xpose.msk.msra.mxu1 %vm1333_vm1, %v8226_v9 }
 0xaaa   : > { %v2842_v2 = vpop.permute.xlu1 %2841 }
 0xaac   : > { %v2848_v7 = vpop.permute.xlu0 %2847 }
 0xaae   : > { %v2840_v14 = vpop.permute.xlu1 %2839 }
 0xaaf   : > { %5865 = vmatprep.mubr.msk.f32.mxu1 %vm1333_vm1, %v2840_v14 }
 0xab0   : > { %5866 = vmatmul.mubr.msk.f32.gmra.mxu1 %vm1333_vm1, %v2842_v2  ;;  %v2856_v23 = vpop.permute.xlu0 %2855 }
 0xab1   : > { %5906 = vmatprep.mubr.msk.f32.mxu1 %vm1333_vm1, %v2852_v10 }
 0xab2   : > { %v2846_v40 = vpop.permute.xlu1 %2845 }
 0xab3   : > { %5885 = vmatmul.mubr.msk.f32.vlgmr.msra.gmra.mxu0 %vm1333_vm1, %v2846_v40 }
 0xab4   : > { %5887 = vmatprep.mubr.msk.f32.mxu0 %vm1333_vm1, %v2848_v7  ;;  %v3655_v17 = vpop.permute.xlu0 %3654 }
 0xab5   : > { %5934 = vmatprep.subr.mxu1 %v3655_v17 }
 0xab6   : > { %v2854_v12 = vpop.permute.xlu1 %2853 }
 0xab7   : > { %5907 = vmatmul.mubr.msk.f32.vlgmr.msra.gmra.mxu1 %vm1333_vm1, %v2854_v12 }
 0xab8   : > { %5909 = vmatprep.mubr.msk.f32.mxu1 %vm1333_vm1, %v2856_v23  ;;  %v3653_v3 = vpop.permute.xlu0 %3652  ;;  %5935 = vmatpush3.msra.mxu1 %v3655_v17 }
 0xab9   : > { %5936 = vmatprep.subr.mxu1 %v3653_v3 }
 0xaba   : > { %v2850_v11 = vpop.permute.xlu1 %2849  ;;  %5937 = vmatpush3.msra.mxu1 %v3653_v3 }
 0xabb   : > { %5888 = vmatmul.mubr.msk.f32.gmra.mxu0 %vm1333_vm1, %v2850_v11 }
 0xabc   : > { %v3651_v41 = vpop.permute.xlu0 %3650 }
 0xabd   : > { %5938 = vmatprep.subr.mxu1 %v3651_v41 }
 0xabe   : > { %v2858_v45 = vpop.permute.xlu1 %2857  ;;  %5939 = vmatpush3.msra.mxu1 %v3651_v41 }
 0xabf   : > { %5910 = vmatmul.mubr.msk.f32.gmra.mxu1 %vm1333_vm1, %v2858_v45 }
 0xac0   : > { %v3524_v58 = vpop.permute.xlu0 %3523 }
 0xac2   : > { %v3534_v31 = vpop.permute.xlu1 %3533 }
 0xac3   : > { %5912 = vmatprep.subr.mxu0 %v3534_v31 }
 0xac4   : > { %v8243_v36 = vpop.f32.mrf.mxu0  ;;  %5913 = vmatpush3.msra.mxu0 %v3534_v31  ;;  %v3645_v38 = vpop.permute.xlu0 %3644 }
 0xac5   : > { %v3346_v37 = vsel %vm1826_vm3, %v8243_v36, -inf }
 0xac6   : > { %v8247_v42 = vpop.f32.mrf.mxu0  ;;  %3347 = vmax.xlane.f32.xlu1 %v3346_v37  ;;  %v3532_v19 = vpop.permute.xlu1 %3531 }
 0xac7   : > { %v3343_v18 = vsel %vm1826_vm3, %v8247_v42, -inf  ;;  %5914 = vmatprep.subr.mxu0 %v3532_v19 }
 0xac8   : > { %3344 = vmax.xlane.f32.xlu0 %v3343_v18  ;;  %5915 = vmatpush3.msra.mxu0 %v3532_v19  ;;  %v3643_v22 = vpop.permute.xlu0 %3642 }
 0xaca   : > { %v3530_v33 = vpop.permute.xlu1 %3529 }
 0xacb   : > { %5916 = vmatprep.subr.mxu0 %v3530_v33 }
 0xacc   : > { %5917 = vmatpush3.msra.mxu0 %v3530_v33  ;;  %v8302_v23 = vpop.permute.xlu0 %3773 }
 0xace   : > { %v3528_v25 = vpop.permute.xlu1 %3527 }
 0xacf   : > { %5918 = vmatprep.subr.mxu0 %v3528_v25 }
 0xad0   : > { %5919 = vmatpush3.msra.mxu0 %v3528_v25  ;;  %v8310_v3 = vpop.permute.xlu0 %3771 }
 0xad2   : > { %v3649_v57 = vpop.permute.xlu1 %3648 }
 0xad3   : > { %5940 = vmatprep.subr.mxu1 %v3649_v57 }
 0xad4   : > { %5941 = vmatpush3.msra.mxu1 %v3649_v57  ;;  %v8312_v11 = vpop.permute.xlu0 %3769 }
 0xad6   : > { %v3526_v1 = vpop.permute.xlu1 %3525 }
 0xad7   : > { %5920 = vmatprep.subr.mxu0 %v3526_v1 }
 0xad8   : > { %5921 = vmatpush3.msra.mxu0 %v3526_v1  ;;  %v8316_v41 = vpop.permute.xlu0 %3767 }
 0xad9   : > { %5922 = vmatprep.subr.mxu0 %v3524_v58 }
 0xada   : > { %v3647_v6 = vpop.permute.xlu1 %3646  ;;  %5923 = vmatpush3.msra.mxu0 %v3524_v58 }
 0xadb   : > { %5942 = vmatprep.subr.mxu1 %v3647_v6 }
 0xadc   : > { %5943 = vmatpush3.msra.mxu1 %v3647_v6  ;;  %v8318_v45 = vpop.permute.xlu0 %3765 }
 0xadd   : > { %5944 = vmatprep.subr.mxu1 %v3645_v38 }
 0xade   : > { %v3522_v52 = vpop.permute.xlu1 %3521  ;;  %5945 = vmatpush3.msra.mxu1 %v3645_v38 }
 0xadf   : > { %5924 = vmatprep.subr.mxu0 %v3522_v52  ;;  %5946 = vmatprep.subr.mxu1 %v3643_v22 }
 0xae0   : > { %5925 = vmatpush3.msra.mxu0 %v3522_v52  ;;  %5947 = vmatpush3.msra.mxu1 %v3643_v22 }
 0xae2   : > { %v3520_v24 = vpop.permute.xlu1 %3519 }
 0xae3   : > { %5926 = vmatprep.subr.mxu0 %v3520_v24 }
 0xae4   : > { %5927 = vmatpush3.msra.mxu0 %v3520_v24 }
 0xae6   : > { %v3641_v50 = vpop.permute.xlu1 %3640 }
 0xae7   : > { %5948 = vmatprep.subr.mxu1 %v3641_v50 }
 0xae8   : > { %5949 = vmatpush3.msra.mxu1 %v3641_v50 }
 0xaea   : > { %v8251_v43 = vpop.permute.xlu1 %3775 }
 0xaeb   : > { %5956 = vmatprep.subr.mxu0 %v8251_v43 }
 0xaee   : > { %v8254_v63 = vpop.permute.xlu1 %3896 }
 0xaef   : > { %5978 = vmatprep.subr.mxu1 %v8254_v63 }
 0xafb   : > { %v8257_v32 = vpop.f32.mrf.mxu0 }
 0xafc   : > { %v3352_v4 = vsel %vm1826_vm3, %v8257_v32, -inf }
 0xafd   : > { %3353 = vmax.xlane.f32.xlu1 %v3352_v4  ;;  %v2983_v5 = vpop.f32.mrf.mxu0 }
 0xafe   : > { %v3349_v8 = vsel %vm1826_vm3, %v2983_v5, -inf }
 0xaff   : > { %3350 = vmax.xlane.f32.xlu0 %v3349_v8 }
 0xb37   : > { %v8262_v13 = vpop.f32.mrf.mxu1 }
 0xb38   : > { %v3358_v49 = vsel %vm1826_vm3, %v8262_v13, -inf }
 0xb39   : > { %3359 = vmax.xlane.f32.xlu0 %v3358_v49  ;;  %v8266_v53 = vpop.f32.mrf.mxu1 }
 0xb3a   : > { %v3355_v29 = vsel %vm1826_vm3, %v8266_v53, -inf }
 0xb3d   : > { %3356 = vmax.xlane.f32.xlu0 %v3355_v29 }
 0xb51   : > { %v3345_v31 = vpop.xlane.xlu0 %3344 }
 0xb52   : > { %v3391_v37 = vsub.f32 %v8247_v42, %v3345_v31 }
 0xb54   : > { %v3407_v18 = vmul.f32 1.442695, %v3391_v37 }
 0xb56   : > { %6372 = vpow2.f32 %v3407_v18 }
 0xb63   : > { %v8327_v58 = vpop.eup %6372 }
 0xb70   : > { %v8270_v56 = vpop.f32.mrf.mxu1 }
 0xb71   : > { %v3364_v39 = vsel %vm1826_vm3, %v8270_v56, -inf }
 0xb72   : > { %v8280_v60 = vpop.f32.mrf.mxu1 }
 0xb73   : > { %v8272_v30 = vpop.f32.mrf.mxu0  ;;  %v3361_v28 = vsel %vm1826_vm3, %v8280_v60, -inf }
 0xb74   : > { %v3370_v55 = vsel %vm1826_vm3, %v8272_v30, -inf }
 0xb75   : > { %3371 = vmax.xlane.f32.xlu1 %v3370_v55  ;;  %v8276_v62 = vpop.f32.mrf.mxu0 }
 0xb76   : > { %v3367_v54 = vsel %vm1826_vm3, %v8276_v62, -inf }
 0xb77   : > { %3368 = vmax.xlane.f32.xlu0 %v3367_v54  ;;  %v8284_v16 = vpop.f32.mrf.mxu1 }
 0xb78   : > { %v3382_v14 = vsel %vm1826_vm3, %v8284_v16, -inf }
 0xb79   : > { %3365 = vmax.xlane.f32.xlu1 %v3364_v39  ;;  %v8292_v47 = vpop.f32.mrf.mxu1 }
 0xb7a   : > { %v3379_v40 = vsel %vm1826_vm3, %v8292_v47, -inf }
 0xb7b   : > { %3362 = vmax.xlane.f32.xlu0 %v3361_v28  ;;  %v8288_v27 = vpop.f32.mrf.mxu0 }
 0xb7c   : > { %v3376_v44 = vsel %vm1826_vm3, %v8288_v27, -inf }
 0xb7d   : > { %3377 = vmax.xlane.f32.xlu1 %v3376_v44  ;;  %v8294_v10 = vpop.f32.mrf.mxu0 }
 0xb7e   : > { %v3373_v2 = vsel %vm1826_vm3, %v8294_v10, -inf }
 0xb7f   : > { %3374 = vmax.xlane.f32.xlu0 %v3373_v2  ;;  %v8298_v7 = vpop.f32.mrf.mxu1 }
 0xb80   : > { %v3388_v57 = vsel %vm1826_vm3, %v8298_v7, -inf }
 0xb81   : > { %3383 = vmax.xlane.f32.xlu1 %v3382_v14  ;;  %v8306_v17 = vpop.f32.mrf.mxu1 }
 0xb82   : > { %v3385_v12 = vsel %vm1826_vm3, %v8306_v17, -inf }
 0xb83   : > { %3380 = vmax.xlane.f32.xlu0 %v3379_v40 }
 0xb87   : > { %3386 = vmax.xlane.f32.xlu0 %v3385_v12 }
 0xb88   : > { %v3351_v19 = vpop.xlane.xlu0 %3350 }
 0xb89   : > { %v3393_v33 = vsub.f32 %v2983_v5, %v3351_v19 }
 0xb8b   : > { %v3411_v25 = vmul.f32 1.442695, %v3393_v33 }
 0xb8d   : > { %6374 = vpow2.f32 %v3411_v25 }
 0xb92   : > { %3886 = vrot.lane.b32.xlu1 %v8213_v48, %s6884_s17  ;;  %v8325_v48 = vpop.permute.xlu1 %3894 }
 0xb96   : > { %v8333_v42 = vpop.permute.xlu1 %3892 }
 0xb9a   : > { %v8331_v1 = vpop.eup %6374  ;;  %v8337_v6 = vpop.permute.xlu1 %3890 }
 0xb9b   : > { %v3445_v38 = vsel %vm1826_vm3, %v8331_v1, 0.0 }
 0xb9d   : > { %3763 = vrot.lane.b32.xlu0 %v8138_v34, %s6884_s17  ;;  %v3439_v34 = vsel %vm1826_vm3, %v8327_v58, 0.0 }
 0xb9e   : > { %v8341_v52 = vpop.permute.xlu1 %3888 }
 0xba2   : > { %v3348_v22 = vpop.xlane.xlu1 %3347 }
 0xba3   : > { %v3392_v24 = vsub.f32 %v8243_v36, %v3348_v22 }
 0xba5   : > { %v3409_v4 = vmul.f32 1.442695, %v3392_v24 }
 0xba6   : > { %v3354_v50 = vpop.xlane.xlu1 %3353 }
 0xba7   : > { %v3394_v5 = vsub.f32 %v8257_v32, %v3354_v50  ;;  %6376 = vpow2.f32 %v3409_v4 }
 0xba9   : > { %v3413_v49 = vmul.f32 1.442695, %v3394_v5 }
 0xbab   : > { %6378 = vpow2.f32 %v3413_v49 }
 0xbb4   : > { %v8346_v54 = vpop.eup %6376 }
 0xbb6   : > { %3389 = vmax.xlane.f32.xlu1 %v3388_v57 }
 0xbb8   : > { %v8350_v39 = vpop.eup %6378 }
 0xbb9   : > { %v3448_v36 = vsel %vm1826_vm3, %v8350_v39, 0.0 }
 0xbbc   : > { %3440 = vadd.xlane.f32.xlu0 %v3439_v34 }
 0xbc0   : > { %3446 = vadd.xlane.f32.xlu0 %v3445_v38 }
 0xbc2   : > { %v3360_v8 = vpop.xlane.xlu0 %3359 }
 0xbc3   : > { %v3396_v29 = vsub.f32 %v8262_v13, %v3360_v8 }
 0xbc5   : > { %v3417_v55 = vmul.f32 1.442695, %v3396_v29 }
 0xbc6   : > { %v3357_v28 = vpop.xlane.xlu0 %3356 }
 0xbc7   : > { %3884 = vrot.lane.b32.xlu1 %v8219_v61, %s6884_s17  ;;  %6380 = vpow2.f32 %v3417_v55  ;;  %v3442_v61 = vsel %vm1826_vm3, %v8346_v54, 0.0  ;;  %v3395_v44 = vsub.f32 %v8266_v53, %v3357_v28 }
 0xbc9   : > { %v3415_v40 = vmul.f32 1.442695, %v3395_v44 }
 0xbd4   : > { %v8354_v32 = vpop.eup %6380 }
 0xbd5   : > { %v3454_v13 = vsel %vm1826_vm3, %v8354_v32, 0.0 }
 0xbeb   : > { %3443 = vadd.xlane.f32.xlu1 %v3442_v61 }
 0xbef   : > { %3449 = vadd.xlane.f32.xlu1 %v3448_v36 }
 0xbf3   : > { %3455 = vadd.xlane.f32.xlu1 %v3454_v13 }
 0xbfe   : > { %v3372_v2 = vpop.xlane.xlu1 %3371 }
 0xbff   : > { %v3400_v14 = vsub.f32 %v8272_v30, %v3372_v2 }
 0xc00   : > { %v3369_v12 = vpop.xlane.xlu0 %3368 }
 0xc01   : > { %v3425_v31 = vmul.f32 1.442695, %v3400_v14  ;;  %v3399_v37 = vsub.f32 %v8276_v62, %v3369_v12 }
 0xc02   : > { %v3366_v19 = vpop.xlane.xlu1 %3365 }
 0xc03   : > { %6382 = vpow2.f32 %v3425_v31  ;;  %v3423_v18 = vmul.f32 1.442695, %v3399_v37  ;;  %v3398_v33 = vsub.f32 %v8270_v56, %v3366_v19 }
 0xc04   : > { %6384 = vpow2.f32 %v3415_v40  ;;  %v3363_v25 = vpop.xlane.xlu0 %3362 }
 0xc05   : > { %6386 = vpow2.f32 %v3423_v18  ;;  %v3421_v57 = vmul.f32 1.442695, %v3398_v33  ;;  %v3397_v38 = vsub.f32 %v8280_v60, %v3363_v25 }
 0xc06   : > { %v3378_v34 = vpop.xlane.xlu1 %3377 }
 0xc07   : > { %v3402_v53 = vsub.f32 %v8288_v27, %v3378_v34  ;;  %6388 = vpow2.f32 %v3421_v57  ;;  %v3419_v4 = vmul.f32 1.442695, %v3397_v38 }
 0xc08   : > { %v3375_v30 = vpop.xlane.xlu0 %3374 }
 0xc09   : > { %v3429_v22 = vmul.f32 1.442695, %v3402_v53  ;;  %v3401_v24 = vsub.f32 %v8294_v10, %v3375_v30 }
 0xc0a   : > { %v3384_v62 = vpop.xlane.xlu1 %3383 }
 0xc0b   : > { %v3427_v50 = vmul.f32 1.442695, %v3401_v24  ;;  %6390 = vpow2.f32 %v3429_v22  ;;  %v3404_v56 = vsub.f32 %v8284_v16, %v3384_v62 }
 0xc0c   : > { %v3381_v5 = vpop.xlane.xlu0 %3380 }
 0xc0d   : > { %6392 = vpow2.f32 %v3427_v50  ;;  %v3403_v8 = vsub.f32 %v8292_v47, %v3381_v5  ;;  %v3433_v27 = vmul.f32 1.442695, %v3404_v56 }
 0xc0e   : > { %6394 = vpow2.f32 %v3419_v4  ;;  %v8405_v33 = vpop.permute.xlu1 %3886 }
 0xc0f   : > { %v3431_v49 = vmul.f32 1.442695, %v3403_v8 }
 0xc10   : > { %v8367_v29 = vpop.eup %6382  ;;  %v3387_v18 = vpop.xlane.xlu0 %3386 }
 0xc11   : > { %v8369_v60 = vpop.eup %6384  ;;  %6396 = vpow2.f32 %v3431_v49  ;;  %v3466_v10 = vsel %vm1826_vm3, %v8367_v29, 0.0  ;;  %v3405_v25 = vsub.f32 %v8306_v17, %v3387_v18 }
 0xc12   : > { %v8373_v55 = vpop.eup %6386  ;;  %3467 = vadd.xlane.f32.xlu0 %v3466_v10  ;;  %6398 = vpow2.f32 %v3433_v27  ;;  %v3451_v16 = vsel %vm1826_vm3, %v8369_v60, 0.0 }
 0xc13   : > { %v3463_v61 = vsel %vm1826_vm3, %v8373_v55, 0.0  ;;  %v3435_v38 = vmul.f32 1.442695, %v3405_v25 }
 0xc14   : > { %3464 = vadd.xlane.f32.xlu1 %v3463_v61  ;;  %v8379_v47 = vpop.eup %6388  ;;  %v3764_v34 = vpop.permute.xlu0 %3763 }
 0xc15   : > { %v3460_v13 = vsel %vm1826_vm3, %v8379_v47, 0.0 }
 0xc16   : > { %3452 = vadd.xlane.f32.xlu0 %v3451_v16 }
 0xc18   : > { %v8381_v36 = vpop.eup %6390 }
 0xc19   : > { %v3472_v14 = vsel %vm1826_vm3, %v8381_v36, 0.0 }
 0xc1a   : > { %v8385_v28 = vpop.eup %6392  ;;  %3461 = vadd.xlane.f32.xlu0 %v3460_v13 }
 0xc1b   : > { %v3469_v44 = vsel %vm1826_vm3, %v8385_v28, 0.0  ;;  %v8389_v2 = vpop.eup %6394 }
 0xc1c   : > { %3470 = vadd.xlane.f32.xlu1 %v3469_v44  ;;  %v3457_v31 = vsel %vm1826_vm3, %v8389_v2, 0.0 }
 0xc1e   : > { %v8393_v40 = vpop.eup %6396  ;;  %3473 = vadd.xlane.f32.xlu0 %v3472_v14 }
 0xc1f   : > { %v3475_v12 = vsel %vm1826_vm3, %v8393_v40, 0.0  ;;  %v8399_v37 = vpop.eup %6398 }
 0xc20   : > { %3476 = vadd.xlane.f32.xlu1 %v3475_v12  ;;  %v3478_v19 = vsel %vm1826_vm3, %v8399_v37, 0.0 }
 0xc22   : > { %3458 = vadd.xlane.f32.xlu0 %v3457_v31 }
 0xc26   : > { %3479 = vadd.xlane.f32.xlu0 %v3478_v19 }
 0xc31   : > { %3882 = vrot.lane.b32.xlu1 %v8226_v9, %s6884_s17 }
 0xc3f   : > { %v3390_v57 = vpop.xlane.xlu1 %3389 }
 0xc40   : > { %v3406_v53 = vsub.f32 %v8298_v7, %v3390_v57 }
 0xc42   : > { %v3437_v30 = vmul.f32 1.442695, %v3406_v53 }
 0xc43   : > { %v8421_v4 = vpop.permute.xlu1 %3884 }
 0xc44   : > { %6400 = vpow2.f32 %v3437_v30 }
 0xc45   : > { %6402 = vpow2.f32 %v3435_v38  ;;  %v3441_v22 = vpop.xlane.xlu0 %3440 }
 0xc46   : > { %6404 = vrcp.f32 %v3441_v22 }
 0xc49   : > { %v3447_v5 = vpop.xlane.xlu0 %3446 }
 0xc4a   : > { %6406 = vrcp.f32 %v3447_v5  ;;  %v2870_v5 = vld [vmem:[#allocation16 + $0x58] sm:$0xff] }
 0xc51   : > { %v8409_v24 = vpop.eup %6400 }
 0xc52   : > { %v8411_v62 = vpop.eup %6402  ;;  %v3484_v9 = vsel %vm1826_vm3, %v8409_v24, 0.0 }
 0xc53   : > { %v6405_v50 = vpop.eup %6404  ;;  %3485 = vadd.xlane.f32.xlu0 %v3484_v9  ;;  %v3481_v7 = vsel %vm1826_vm3, %v8411_v62, 0.0 }
 0xc54   : > { %v3503_v17 = vmul.f32 %v6405_v50, %v8327_v58 }
 0xc56   : > { %5928 = vmatprep.mubr.msk.f32.mxu0 %vm1826_vm3, %v3503_v17  ;;  %v2874_v17 = vld [vmem:[#allocation16 + $0x78] sm:$0xff] }
 0xc57   : > { %3482 = vadd.xlane.f32.xlu0 %v3481_v7  ;;  %v6407_v49 = vpop.eup %6406  ;;  %v2873_v7 = vld [vmem:[#allocation16 + $0x70] sm:$0xff] }
 0xc58   : > { %v3505_v10 = vmul.f32 %v6407_v49, %v8331_v1 }
 0xc6d   : > { %3761 = vrot.lane.b32.xlu0 %v8144_v51, %s6884_s17 }
 0xc74   : > { %v3444_v56 = vpop.xlane.xlu1 %3443 }
 0xc75   : > { %6408 = vrcp.f32 %v3444_v56 }
 0xc78   : > { %v3450_v8 = vpop.xlane.xlu1 %3449 }
 0xc79   : > { %6410 = vrcp.f32 %v3450_v8  ;;  %v2869_v8 = vld [vmem:[#allocation16 + $0x50] sm:$0xff] }
 0xc82   : > { %v6409_v27 = vpop.eup %6408 }
 0xc83   : > { %v3504_v58 = vmul.f32 %v6409_v27, %v8346_v54  ;;  %v2868_v27 = vld [vmem:[#allocation16 + $0x48] sm:$0xff] }
 0xc85   : > { %5929 = vmatmul.mubr.msk.f32.vlgmr.msra.gmra.mxu0 %vm1826_vm3, %v3504_v58 }
 0xc86   : > { %v6411_v61 = vpop.eup %6410  ;;  %5957 = vmatpush3.msra.mxu0 %v8251_v43  ;;  %5931 = vmatprep.mubr.msk.f32.mxu0 %vm1826_vm3, %v3505_v10  ;;  %v3456_v43 = vpop.xlane.xlu1 %3455  ;;  %v2867_v10 = vld [vmem:[#allocation16 + $0x40] sm:$0xff] }
 0xc87   : > { %5958 = vmatprep.subr.mxu0 %v8302_v23  ;;  %v3506_v51 = vmul.f32 %v6411_v61, %v8350_v39  ;;  %v2866_v61 = vld [vmem:[#allocation16 + $0x38] sm:$0xff] }
 0xc88   : > { %5959 = vmatpush3.msra.mxu0 %v8302_v23 }
 0xc89   : > { %5960 = vmatprep.subr.mxu0 %v8310_v3  ;;  %5932 = vmatmul.mubr.msk.f32.gmra.mxu0 %vm1826_vm3, %v3506_v51  ;;  %v2865_v51 = vld [vmem:[#allocation16 + $0x30] sm:$0xff] }
 0xc8a   : > { %5961 = vmatpush3.msra.mxu0 %v8310_v3 }
 0xc8b   : > { %5962 = vmatprep.subr.mxu0 %v8312_v11 }
 0xc8c   : > { %5963 = vmatpush3.msra.mxu0 %v8312_v11 }
 0xc8d   : > { %5964 = vmatprep.subr.mxu0 %v8316_v41 }
 0xc8e   : > { %5965 = vmatpush3.msra.mxu0 %v8316_v41 }
 0xc8f   : > { %5966 = vmatprep.subr.mxu0 %v8318_v45 }
 0xc90   : > { %5967 = vmatpush3.msra.mxu0 %v8318_v45 }
 0xc91   : > { %5968 = vmatprep.subr.mxu0 %v3764_v34 }
 0xc92   : > { %5969 = vmatpush3.msra.mxu0 %v3764_v34 }
 0xc9b   : > { %v3468_v23 = vpop.xlane.xlu0 %3467 }
 0xc9d   : > { %v3465_v1 = vpop.xlane.xlu1 %3464 }
 0xc9e   : > { %6412 = vrcp.f32 %v3465_v1  ;;  %v2862_v1 = vld [vmem:[#allocation16 + $0x18] sm:$0xff] }
 0xc9f   : > { %6414 = vrcp.f32 %v3456_v43  ;;  %v3453_v3 = vpop.xlane.xlu0 %3452  ;;  %v2864_v43 = vld [vmem:[#allocation16 + $0x28] sm:$0xff] }
 0xca0   : > { %6416 = vrcp.f32 %v3453_v3  ;;  %v2861_v3 = vld [vmem:[#allocation16 + $0x10] sm:$0xff] }
 0xca3   : > { %v3462_v54 = vpop.xlane.xlu0 %3461 }
 0xca4   : > { %6418 = vrcp.f32 %v3462_v54 }
 0xca5   : > { %v3471_v39 = vpop.xlane.xlu1 %3470 }
 0xca7   : > { %v3474_v11 = vpop.xlane.xlu0 %3473 }
 0xca9   : > { %v3477_v16 = vpop.xlane.xlu1 %3476 }
 0xcaa   : > { %6420 = vrcp.f32 %v3477_v16  ;;  %v2860_v16 = vld [vmem:[#allocation16 + $0x8] sm:$0xff] }
 0xcab   : > { %v6413_v13 = vpop.eup %6412  ;;  %v3459_v41 = vpop.xlane.xlu0 %3458 }
 0xcac   : > { %v6415_v44 = vpop.eup %6414  ;;  %6422 = vrcp.f32 %v3459_v41  ;;  %v3511_v45 = vmul.f32 %v6413_v13, %v8373_v55  ;;  %v2859_v13 = vld [vmem:[#allocation16] sm:$0xff] }
 0xcad   : > { %v6417_v14 = vpop.eup %6416  ;;  %v3508_v31 = vmul.f32 %v6415_v44, %v8354_v32 }
 0xcae   : > { %5972 = vmatprep.mubr.msk.f32.mxu0 %vm1826_vm3, %v3511_v45  ;;  %v3507_v12 = vmul.f32 %v6417_v14, %v8369_v60 }
 0xcaf   : > { %v3480_v19 = vpop.xlane.xlu0 %3479 }
 0xcb0   : > { %6424 = vrcp.f32 %v3480_v19  ;;  %5950 = vmatprep.mubr.msk.f32.mxu1 %vm1826_vm3, %v3507_v12 }
 0xcb1   : > { %5951 = vmatmul.mubr.msk.f32.vlgmr.msra.gmra.mxu1 %vm1826_vm3, %v3508_v31  ;;  %v6419_v55 = vpop.eup %6418  ;;  %6426 = vrcp.f32 %v3468_v23  ;;  %v2863_v23 = vld [vmem:[#allocation16 + $0x20] sm:$0xff] }
 0xcb2   : > { %5979 = vmatpush3.msra.mxu1 %v8254_v63  ;;  %6428 = vrcp.f32 %v3471_v39 }
 0xcb3   : > { %5980 = vmatprep.subr.mxu1 %v8325_v48  ;;  %6430 = vrcp.f32 %v3474_v11 }
 0xcb4   : > { %5981 = vmatpush3.msra.mxu1 %v8325_v48  ;;  %v3510_v48 = vmul.f32 %v6419_v55, %v8379_v47 }
 0xcb5   : > { %5982 = vmatprep.subr.mxu1 %v8333_v42 }
 0xcb6   : > { %5983 = vmatpush3.msra.mxu1 %v8333_v42  ;;  %v3883_v42 = vpop.permute.xlu1 %3882 }
 0xcb7   : > { %5984 = vmatprep.subr.mxu1 %v8337_v6  ;;  %v6421_v32 = vpop.eup %6420 }
 0xcb8   : > { %5985 = vmatpush3.msra.mxu1 %v8337_v6  ;;  %v3515_v18 = vmul.f32 %v6421_v32, %v8393_v40 }
 0xcb9   : > { %v6423_v60 = vpop.eup %6422  ;;  %5986 = vmatprep.subr.mxu1 %v8341_v52 }
 0xcba   : > { %5987 = vmatpush3.msra.mxu1 %v8341_v52  ;;  %v3509_v63 = vmul.f32 %v6423_v60, %v8389_v2 }
 0xcbb   : > { %5988 = vmatprep.subr.mxu1 %v8405_v33 }
 0xcbc   : > { %5989 = vmatpush3.msra.mxu1 %v8405_v33  ;;  %5953 = vmatprep.mubr.msk.f32.mxu1 %vm1826_vm3, %v3509_v63 }
 0xcbd   : > { %v6425_v25 = vpop.eup %6424  ;;  %5990 = vmatprep.subr.mxu1 %v8421_v4  ;;  %5954 = vmatmul.mubr.msk.f32.gmra.mxu1 %vm1826_vm3, %v3510_v48 }
 0xcbe   : > { %v3516_v6 = vmul.f32 %v6425_v25, %v8399_v37  ;;  %5991 = vmatpush3.msra.mxu1 %v8421_v4  ;;  %5994 = vmatprep.mubr.msk.f32.mxu1 %vm1826_vm3, %v3515_v18  ;;  %v6427_v2 = vpop.eup %6426 }
 0xcbf   : > { %5992 = vmatprep.subr.mxu1 %v3883_v42  ;;  %v6429_v40 = vpop.eup %6428  ;;  %v3512_v37 = vmul.f32 %v6427_v2, %v8367_v29 }
 0xcc0   : > { %5993 = vmatpush3.msra.mxu1 %v3883_v42  ;;  %v6431_v57 = vpop.eup %6430  ;;  %v3513_v34 = vmul.f32 %v6429_v40, %v8385_v28 }
 0xcc1   : > { %5995 = vmatmul.mubr.msk.f32.vlgmr.msra.gmra.mxu1 %vm1826_vm3, %v3516_v6  ;;  %v3514_v53 = vmul.f32 %v6431_v57, %v8381_v36  ;;  %v2872_v36 = vld [vmem:[#allocation16 + $0x68] sm:$0xff] }
 0xcdc   : > { %v3486_v52 = vpop.xlane.xlu0 %3485 }
 0xcdd   : > { %6432 = vrcp.f32 %v3486_v52 }
 0xce0   : > { %v3483_v47 = vpop.xlane.xlu0 %3482 }
 0xce1   : > { %6434 = vrcp.f32 %v3483_v47 }
 0xce4   : > { %v3762_v33 = vpop.permute.xlu0 %3761 }
 0xce5   : > { %5970 = vmatprep.subr.mxu0 %v3762_v33 }
 0xce6   : > { %5971 = vmatpush3.msra.mxu0 %v3762_v33 }
 0xce7   : > { %5973 = vmatmul.mubr.msk.f32.vlgmr.msra.gmra.mxu0 %vm1826_vm3, %v3512_v37  ;;  %6000 = vmatprep.subr.mxu0 %v2874_v17 }
 0xce8   : > { %5975 = vmatprep.mubr.msk.f32.mxu0 %vm1826_vm3, %v3513_v34  ;;  %6001 = vmatpush3.msra.mxu0 %v2874_v17 }
 0xce9   : > { %6002 = vmatprep.subr.mxu0 %v2873_v7 }
 0xcea   : > { %v6433_v38 = vpop.eup %6432  ;;  %6003 = vmatpush3.msra.mxu0 %v2873_v7 }
 0xceb   : > { %5976 = vmatmul.mubr.msk.f32.gmra.mxu0 %vm1826_vm3, %v3514_v53  ;;  %v3518_v9 = vmul.f32 %v6433_v38, %v8409_v24  ;;  %6004 = vmatprep.subr.mxu0 %v2872_v36 }
 0xcec   : > { %6005 = vmatpush3.msra.mxu0 %v2872_v36 }
 0xcee   : > { %v6435_v30 = vpop.eup %6434 }
 0xcef   : > { %v3517_v22 = vmul.f32 %v6435_v30, %v8411_v62  ;;  %v2871_v62 = vld [vmem:[#allocation16 + $0x60] sm:$0xff] }
 0xcf0   : > { %6006 = vmatprep.subr.mxu0 %v2871_v62 }
 0xcf1   : > { %5997 = vmatprep.mubr.msk.f32.mxu1 %vm1826_vm3, %v3517_v22  ;;  %6007 = vmatpush3.msra.mxu0 %v2871_v62 }
 0xcf2   : > { %5998 = vmatmul.mubr.msk.f32.gmra.mxu1 %vm1826_vm3, %v3518_v9  ;;  %6008 = vmatprep.subr.mxu0 %v2870_v5 }
 0xcf3   : > { %6009 = vmatpush3.msra.mxu0 %v2870_v5 }
 0xcf4   : > { %6010 = vmatprep.subr.mxu0 %v2869_v8 }
 0xcf5   : > { %6011 = vmatpush3.msra.mxu0 %v2869_v8 }
 0xcf6   : > { %6012 = vmatprep.subr.mxu0 %v2868_v27 }
 0xcf7   : > { %6013 = vmatpush3.msra.mxu0 %v2868_v27 }
 0xcf8   : > { %6014 = vmatprep.subr.mxu0 %v2867_v10 }
 0xcf9   : > { %6015 = vmatpush3.msra.mxu0 %v2867_v10 }
 0xcfa   : > { %6016 = vmatprep.subr.mxu0 %v2866_v61 }
 0xcfb   : > { %6017 = vmatpush3.msra.mxu0 %v2866_v61 }
 0xcfc   : > { %6018 = vmatprep.subr.mxu0 %v2865_v51 }
 0xcfd   : > { %6019 = vmatpush3.msra.mxu0 %v2865_v51 }
 0xcfe   : > { %6020 = vmatprep.subr.mxu0 %v2864_v43 }
 0xcff   : > { %6021 = vmatpush3.msra.mxu0 %v2864_v43 }
 0xd00   : > { %6022 = vmatprep.subr.mxu0 %v2863_v23 }
 0xd01   : > { %6023 = vmatpush3.msra.mxu0 %v2863_v23 }
 0xd02   : > { %6024 = vmatprep.subr.mxu0 %v2862_v1 }
 0xd03   : > { %6025 = vmatpush3.msra.mxu0 %v2862_v1  ;;  %v4273_v1 = vld [vmem:[#allocation18 + $0x1e8] sm:$0xff] }
 0xd04   : > { %6026 = vmatprep.subr.mxu0 %v2861_v3  ;;  %4298 = vmatprep.subr.mxu1 %v4273_v1  ;;  %v4229_v1 = vld [vmem:[#allocation18 + $0x88] sm:$0xff] }
 0xd05   : > { %6027 = vmatpush3.msra.mxu0 %v2861_v3  ;;  %v4275_v3 = vld [vmem:[#allocation18 + $0x1f8] sm:$0xff] }
 0xd06   : > { %6028 = vmatprep.subr.mxu0 %v2860_v16 }
 0xd07   : > { %6029 = vmatpush3.msra.mxu0 %v2860_v16  ;;  %v4270_v16 = vld [vmem:[#allocation18 + $0x1d0] sm:$0xff] }
 0xd08   : > { %6030 = vmatprep.subr.mxu0 %v2859_v13 }
 0xd09   : > { %6031 = vmatpush3.msra.mxu0 %v2859_v13  ;;  %v4265_v13 = vld [vmem:[#allocation18 + $0x1a8] sm:$0xff] }
 0xd0a   : > { %4387 = vmatprep.subr.mxu0 %v4275_v3  ;;  %v4231_v3 = vld [vmem:[#allocation18 + $0x98] sm:$0xff] }
 0xd45   : > { %v5930_v54 = vpop.f32.mrf.mxu0 }
 0xd47   : > { %v3621_v39 = vpop.f32.mrf.mxu0 }
 0xd49   : > { %v5933_v11 = vpop.f32.mrf.mxu0 }
 0xd4b   : > { %v3631_v41 = vpop.f32.mrf.mxu0 }
 0xd71   : > { %v5952_v29 = vpop.f32.mrf.mxu1 }
 0xd73   : > { %v3742_v28 = vpop.f32.mrf.mxu1 }
 0xd74   : > { %v6270_v50 = vpack.i.bf16 %v5952_v29, %v3742_v28 }
 0xd76   : > { %6271 = vrot.lane.b32.xlu0 %v6270_v50, %s6886_s22 }
 0xd7d   : > { %v5955_v4 = vpop.f32.mrf.mxu1 }
 0xd7f   : > { %v3752_v24 = vpop.f32.mrf.mxu1 }
 0xd80   : > { %v6285_v19 = vpack.i.bf16 %v5955_v4, %v3752_v24 }
 0xd81   : > { %v5996_v56 = vpop.f32.mrf.mxu1 }
 0xd83   : > { %v3984_v49 = vpop.f32.mrf.mxu1 }
 0xd84   : > { %v6280_v58 = vpack.i.bf16 %v5996_v56, %v3984_v49 }
 0xd86   : > { %6281 = vrot.lane.b32.xlu0 %v6280_v58, %s6884_s17 }
 0xda7   : > { %v5974_v44 = vpop.f32.mrf.mxu0 }
 0xda9   : > { %v3863_v45 = vpop.f32.mrf.mxu0 }
 0xdaa   : > { %v6275_v14 = vpack.i.bf16 %v5974_v44, %v3863_v45  ;;  %v4266_v44 = vld [vmem:[#allocation18 + $0x1b0] sm:$0xff] }
 0xdab   : > { %v5977_v12 = vpop.f32.mrf.mxu0 }
 0xdac   : > { %6276 = vrot.lane.b32.xlu1 %v6275_v14, %s6885_s2 }
 0xdad   : > { %v3873_v31 = vpop.f32.mrf.mxu0 }
 0xdae   : > { %v6290_v55 = vpack.i.bf16 %v5977_v12, %v3873_v31 }
 0xdb0   : > { %6286 = vrot.lane.b32.xlu1 %v6285_v19, %s6886_s22  ;;  %6291 = vrot.lane.b32.xlu0 %v6290_v55, %s6885_s2  ;;  %s8720_s22 = sld [smem:[#allocation47_spill]] }
 0xdb2   : > { %v5999_v32 = vpop.f32.mrf.mxu1 }
 0xdb4   : > { %v3994_v60 = vpop.f32.mrf.mxu1 }
 0xdb5   : > { %v6295_v63 = vpack.i.bf16 %v5999_v32, %v3994_v60 }
 0xdb6   : > { %s8582_s3 = scalar_lea.hbm %s8720_s22, %s5169_s28 }
 0xdb7   : > { %6296 = vrot.lane.b32.xlu1 %v6295_v63, %s6884_s17 }
 0xde8   : > { %v6272_v48 = vpop.permute.xlu0 %6271 }
 0xde9   : > { %v6274_v42 = vunpack.i.h.bf16 %v6272_v48  ;;  %v6273_v18 = vunpack.i.l.bf16 %v6272_v48 }
 0xdeb   : > { %v4052_v2 = vsel %vm1333_vm1, %v5930_v54, %v6274_v42  ;;  %v4051_v37 = vsel %vm1333_vm1, %v3621_v39, %v6273_v18  ;;  %v4272_v54 = vld [vmem:[#allocation18 + $0x1e0] sm:$0xff]  ;;  %v4274_v39 = vld [vmem:[#allocation18 + $0x1f0] sm:$0xff] }
 0xdec   : > { %4299 = vmatpush1.msra.mxu1 %v4272_v54  ;;  %v4228_v54 = vld [vmem:[#allocation18 + $0x80] sm:$0xff] }
 0xdf8   : > { %v6282_v25 = vpop.permute.xlu0 %6281 }
 0xdf9   : > { %v6284_v40 = vunpack.i.h.bf16 %v6282_v25  ;;  %v6283_v33 = vunpack.i.l.bf16 %v6282_v25 }
 0xe1e   : > { %v6277_v6 = vpop.permute.xlu1 %6276 }
 0xe1f   : > { %v6279_v52 = vunpack.i.h.bf16 %v6277_v6  ;;  %v6278_v47 = vunpack.i.l.bf16 %v6277_v6  ;;  %v4261_v6 = vld [vmem:[#allocation18 + $0x188] sm:$0xff] }
 0xe21   : > { %v4056_v57 = vsel %vm1826_vm3, %v4052_v2, %v6279_v52  ;;  %v4055_v34 = vsel %vm1826_vm3, %v4051_v37, %v6278_v47  ;;  %v4263_v52 = vld [vmem:[#allocation18 + $0x198] sm:$0xff]  ;;  %v4260_v2 = vld [vmem:[#allocation18 + $0x180] sm:$0xff] }
 0xe22   : > { %v6287_v53 = vpop.permute.xlu1 %6286  ;;  %v4059_v38 = vsel %vm2543_vm7, %v4055_v34, %v6283_v33  ;;  %v4060_v30 = vsel %vm2543_vm7, %v4056_v57, %v6284_v40  ;;  %v6292_v29 = vpop.permute.xlu0 %6291  ;;  %v4262_v40 = vld [vmem:[#allocation18 + $0x190] sm:$0xff]  ;;  %v4257_v33 = vld [vmem:[#allocation18 + $0x168] sm:$0xff]  ;;  %v4259_v37 = vld [vmem:[#allocation18 + $0x178] sm:$0xff] }
 0xe23   : > { %6032 = vmatprep.mubr.f32.mxu0 %v4059_v38  ;;  %v6289_v22 = vunpack.i.h.bf16 %v6287_v53  ;;  %v6288_v9 = vunpack.i.l.bf16 %v6287_v53  ;;  %v6294_v28 = vunpack.i.h.bf16 %v6292_v29  ;;  %v6293_v50 = vunpack.i.l.bf16 %v6292_v29  ;;  %v4256_v34 = vld [vmem:[#allocation18 + $0x160] sm:$0xff]  ;;  %v4258_v53 = vld [vmem:[#allocation18 + $0x170] sm:$0xff]  ;;  %v4253_v38 = vld [vmem:[#allocation18 + $0x148] sm:$0xff] }
 0xe24   : > { %6033 = vmatmul.mubr.f32.vlgmr.msra.gmra.mxu0 %v4060_v30  ;;  %v4255_v30 = vld [vmem:[#allocation18 + $0x158] sm:$0xff]  ;;  %v4249_v29 = vld [vmem:[#allocation18 + $0x128] sm:$0xff] }
 0xe25   : > { %v4053_v17 = vsel %vm1333_vm1, %v3631_v41, %v6288_v9  ;;  %v4054_v7 = vsel %vm1333_vm1, %v5933_v11, %v6289_v22  ;;  %v4271_v11 = vld [vmem:[#allocation18 + $0x1d8] sm:$0xff]  ;;  %4388 = vmatpush1.msra.mxu0 %v4274_v39  ;;  %v4264_v41 = vld [vmem:[#allocation18 + $0x1a0] sm:$0xff]  ;;  %v4254_v9 = vld [vmem:[#allocation18 + $0x150] sm:$0xff] }
 0xe26   : > { %v4057_v24 = vsel %vm1826_vm3, %v4053_v17, %v6293_v50  ;;  %v4058_v5 = vsel %vm1826_vm3, %v4054_v7, %v6294_v28  ;;  %4389 = vmatprep.subr.mxu0 %v4271_v11  ;;  %v4252_v22 = vld [vmem:[#allocation18 + $0x140] sm:$0xff]  ;;  %v4251_v28 = vld [vmem:[#allocation18 + $0x138] sm:$0xff]  ;;  %v4250_v17 = vld [vmem:[#allocation18 + $0x130] sm:$0xff] }
 0xe27   : > { %4390 = vmatpush1.msra.mxu0 %v4270_v16  ;;  %v4248_v50 = vld [vmem:[#allocation18 + $0x120] sm:$0xff]  ;;  %v4245_v7 = vld [vmem:[#allocation18 + $0x108] sm:$0xff]  ;;  %v4230_v39 = vld [vmem:[#allocation18 + $0x90] sm:$0xff] }
 0xe28   : > { %v4227_v11 = vld [vmem:[#allocation18 + $0x78] sm:$0xff]  ;;  %v4226_v16 = vld [vmem:[#allocation18 + $0x70] sm:$0xff] }
 0xe29   : > { %v6297_v36 = vpop.permute.xlu1 %6296 }
 0xe2a   : > { %v6299_v4 = vunpack.i.h.bf16 %v6297_v36  ;;  %v6298_v62 = vunpack.i.l.bf16 %v6297_v36  ;;  %v4247_v36 = vld [vmem:[#allocation18 + $0x118] sm:$0xff] }
 0xe2c   : > { %v4061_v56 = vsel %vm2543_vm7, %v4057_v24, %v6298_v62  ;;  %v4062_v8 = vsel %vm2543_vm7, %v4058_v5, %v6299_v4  ;;  %v4244_v4 = vld [vmem:[#allocation18 + $0x100] sm:$0xff]  ;;  %v4246_v62 = vld [vmem:[#allocation18 + $0x110] sm:$0xff]  ;;  %v4241_v24 = vld [vmem:[#allocation18 + $0xe8] sm:$0xff] }
 0xe2d   : > { %6035 = vmatprep.mubr.f32.mxu0 %v4061_v56  ;;  %v4243_v5 = vld [vmem:[#allocation18 + $0xf8] sm:$0xff]  ;;  %v4240_v56 = vld [vmem:[#allocation18 + $0xe0] sm:$0xff] }
 0xe2e   : > { %6036 = vmatmul.mubr.f32.gmra.mxu0 %v4062_v8  ;;  %v4242_v8 = vld [vmem:[#allocation18 + $0xf0] sm:$0xff] }
 0xee4   : > { %v6034_v49 = vpop.f32.mrf.mxu0 }
 0xee5   : > { %v4149_v27 = vadd.f32 %v6034_v49, %v8056_v26  ;;  %v4269_v26 = vld [vmem:[#allocation18 + $0x1c8] sm:$0xff] }
 0xee6   : > { %v4129_v58 = vpop.f32.mrf.mxu0  ;;  %4300 = vmatprep.subr.mxu1 %v4269_v26  ;;  %v4237_v49 = vld [vmem:[#allocation18 + $0xc8] sm:$0xff] }
 0xee7   : > { %v4148_v10 = vadd.f32 %v4129_v58, %v8054_v21  ;;  %4154 = vadd.xlane.f32.xlu1 %v4149_v27  ;;  %v4268_v21 = vld [vmem:[#allocation18 + $0x1c0] sm:$0xff]  ;;  %v4225_v26 = vld [vmem:[#allocation18 + $0x68] sm:$0xff] }
 0xee8   : > { %4301 = vmatpush1.msra.mxu1 %v4268_v21  ;;  %v4236_v58 = vld [vmem:[#allocation18 + $0xc0] sm:$0xff] }
 0xee9   : > { %4152 = vadd.xlane.f32.xlu0 %v4148_v10  ;;  %4302 = vmatprep.subr.mxu1 %v4265_v13  ;;  %v4224_v21 = vld [vmem:[#allocation18 + $0x60] sm:$0xff]  ;;  %v4221_v13 = vld [vmem:[#allocation18 + $0x48] sm:$0xff] }
 0xeea   : > { %4303 = vmatpush1.msra.mxu1 %v4264_v41  ;;  %v4220_v41 = vld [vmem:[#allocation18 + $0x40] sm:$0xff] }
 0xeeb   : > { %4304 = vmatprep.subr.mxu1 %v4261_v6 }
 0xeec   : > { %4305 = vmatpush1.msra.mxu1 %v4260_v2 }
 0xeed   : > { %4306 = vmatprep.subr.mxu1 %v4257_v33 }
 0xeee   : > { %v6037_v61 = vpop.f32.mrf.mxu0  ;;  %4307 = vmatpush1.msra.mxu1 %v4256_v34 }
 0xeef   : > { %v4151_v23 = vadd.f32 %v6037_v61, %v8063_v46  ;;  %4308 = vmatprep.subr.mxu1 %v4253_v38  ;;  %v4233_v61 = vld [vmem:[#allocation18 + $0xa8] sm:$0xff] }
 0xef0   : > { %v4139_v51 = vpop.f32.mrf.mxu0  ;;  %4309 = vmatpush1.msra.mxu1 %v4252_v22  ;;  %v4198_v22 = vsub.s32 2, %v7606_v35 }
 0xef1   : > { %v4150_v43 = vadd.f32 %v4139_v51, %v8060_v59  ;;  %v4267_v59 = vld [vmem:[#allocation18 + $0x1b8] sm:$0xff]  ;;  %4310 = vmatprep.subr.mxu1 %v4249_v29 }
 0xef2   : > { %4391 = vmatprep.subr.mxu0 %v4267_v59  ;;  %4311 = vmatpush1.msra.mxu1 %v4248_v50  ;;  %v4235_v51 = vld [vmem:[#allocation18 + $0xb8] sm:$0xff] }
 0xef3   : > { %4156 = vadd.xlane.f32.xlu0 %v4150_v43  ;;  %4392 = vmatpush1.msra.mxu0 %v4266_v44  ;;  %v4223_v59 = vld [vmem:[#allocation18 + $0x58] sm:$0xff]  ;;  %v4222_v44 = vld [vmem:[#allocation18 + $0x50] sm:$0xff] }
 0xef4   : > { %4393 = vmatprep.subr.mxu0 %v4263_v52  ;;  %4312 = vmatprep.subr.mxu1 %v4245_v7  ;;  %v4199_v7 = vrot.slane %v7244_v0, %v4198_v22 }
 0xef5   : > { %4394 = vmatpush1.msra.mxu0 %v4262_v40  ;;  %4313 = vmatpush1.msra.mxu1 %v4244_v4 }
 0xef6   : > { %4395 = vmatprep.subr.mxu0 %v4259_v37  ;;  %4314 = vmatprep.subr.mxu1 %v4241_v24 }
 0xef7   : > { %4158 = vadd.xlane.f32.xlu0 %v4151_v23  ;;  %4396 = vmatpush1.msra.mxu0 %v4258_v53 }
 0xef8   : > { %4397 = vmatprep.subr.mxu0 %v4255_v30  ;;  %4315 = vmatpush1.msra.mxu1 %v4240_v56  ;;  %v4507_v56 = vld [vmem:[#allocation19 + $0x78] sm:$0xff] }
 0xef9   : > { %4398 = vmatpush1.msra.mxu0 %v4254_v9  ;;  %4316 = vmatprep.subr.mxu1 %v4237_v49  ;;  %v4554_v49 = vld [vmem:[#allocation19 + $0x1f0] sm:$0xff] }
 0xefa   : > { %4399 = vmatprep.subr.mxu0 %v4251_v28  ;;  %4317 = vmatpush1.msra.mxu1 %v4236_v58  ;;  %v4206_v28 = vsub.s32 3, %v7606_v35  ;;  %v4506_v58 = vld [vmem:[#allocation19 + $0x70] sm:$0xff] }
 0xefb   : > { %4400 = vmatpush1.msra.mxu0 %v4250_v17  ;;  %4318 = vmatprep.subr.mxu1 %v4233_v61 }
 0xefc   : > { %4401 = vmatprep.subr.mxu0 %v4247_v36 }
 0xefd   : > { %4402 = vmatpush1.msra.mxu0 %v4246_v62  ;;  %v4207_v62 = vrot.slane %v7244_v0, %v4206_v28 }
 0xefe   : > { %4403 = vmatprep.subr.mxu0 %v4243_v5 }
 0xeff   : > { %4404 = vmatpush1.msra.mxu0 %v4242_v8  ;;  %v4539_v8 = vld [vmem:[#allocation19 + $0x178] sm:$0xff] }
 0xf70   : > { %v4155_v46 = vpop.xlane.xlu1 %4154 }
 0xf71   : > { %v4161_v45 = vmul.f32 0.0078125, %v4155_v46  ;;  %v4217_v46 = vld [vmem:[#allocation18 + $0x28] sm:$0xff] }
 0xf72   : > { %v4153_v14 = vpop.xlane.xlu0 %4152 }
 0xf73   : > { %v8499_v12 = vsub.f32 %v4149_v27, %v4161_v45  ;;  %v4160_v31 = vmul.f32 0.0078125, %v4153_v14  ;;  %v4239_v27 = vld [vmem:[#allocation18 + $0xd8] sm:$0xff]  ;;  %v4216_v14 = vld [vmem:[#allocation18 + $0x20] sm:$0xff] }
 0xf74   : > { %4405 = vmatprep.subr.mxu0 %v4239_v27  ;;  %v4219_v45 = vld [vmem:[#allocation18 + $0x38] sm:$0xff] }
 0xf75   : > { %v8501_v19 = vsub.f32 %v4148_v10, %v4160_v31  ;;  %v4169_v55 = vmul.f32 %v8499_v12, %v8499_v12  ;;  %v4238_v10 = vld [vmem:[#allocation18 + $0xd0] sm:$0xff] }
 0xf76   : > { %4406 = vmatpush1.msra.mxu0 %v4238_v10  ;;  %v4218_v31 = vld [vmem:[#allocation18 + $0x30] sm:$0xff] }
 0xf77   : > { %4174 = vadd.xlane.f32.xlu1 %v4169_v55  ;;  %v4168_v32 = vmul.f32 %v8501_v19, %v8501_v19  ;;  %4407 = vmatprep.subr.mxu0 %v4235_v51  ;;  %v4213_v55 = vld [vmem:[#allocation18 + $0x8] sm:$0xff]  ;;  %v4538_v10 = vld [vmem:[#allocation19 + $0x170] sm:$0xff] }
 0xf78   : > { %v4521_v51 = vld [vmem:[#allocation19 + $0xe8] sm:$0xff] }
 0xf79   : > { %4172 = vadd.xlane.f32.xlu0 %v4168_v32  ;;  %v4215_v32 = vld [vmem:[#allocation18 + $0x18] sm:$0xff] }
 0xf7c   : > { %v4157_v60 = vpop.xlane.xlu0 %4156 }
 0xf7d   : > { %v4162_v63 = vmul.f32 0.0078125, %v4157_v60  ;;  %v4212_v60 = vld [vmem:[#allocation18] sm:$0xff] }
 0xf7f   : > { %v8507_v48 = vsub.f32 %v4150_v43, %v4162_v63  ;;  %v4232_v43 = vld [vmem:[#allocation18 + $0xa0] sm:$0xff]  ;;  %v4214_v63 = vld [vmem:[#allocation18 + $0x10] sm:$0xff] }
 0xf80   : > { %v4159_v42 = vpop.xlane.xlu0 %4158  ;;  %4319 = vmatpush1.msra.mxu1 %v4232_v43  ;;  %v4553_v43 = vld [vmem:[#allocation19 + $0x1e8] sm:$0xff] }
 0xf81   : > { %v4163_v18 = vmul.f32 0.0078125, %v4159_v42  ;;  %v4170_v25 = vmul.f32 %v8507_v48, %v8507_v48  ;;  %4320 = vmatprep.subr.mxu1 %v4229_v1  ;;  %v6887_v42 = vmov 0.0   ;;  %v4537_v1 = vld [vmem:[#allocation19 + $0x168] sm:$0xff] }
 0xf82   : > { %4321 = vmatpush1.msra.mxu1 %v4228_v54  ;;  %4362 = vmatprep.mubr.f32.mxu1 %v6887_v42  ;;  %v4520_v54 = vld [vmem:[#allocation19 + $0xe0] sm:$0xff] }
 0xf83   : > { %v8511_v47 = vsub.f32 %v4151_v23, %v4163_v18  ;;  %4176 = vadd.xlane.f32.xlu0 %v4170_v25  ;;  %v4234_v23 = vld [vmem:[#allocation18 + $0xb0] sm:$0xff]  ;;  %4322 = vmatprep.subr.mxu1 %v4225_v26  ;;  %v4523_v18 = vld [vmem:[#allocation19 + $0xf8] sm:$0xff] }
 0xf84   : > { %4408 = vmatpush1.msra.mxu0 %v4234_v23  ;;  %4323 = vmatpush1.msra.mxu1 %v4224_v21  ;;  %v4555_v25 = vld [vmem:[#allocation19 + $0x1f8] sm:$0xff]  ;;  %v4505_v23 = vld [vmem:[#allocation19 + $0x68] sm:$0xff]  ;;  %v4504_v21 = vld [vmem:[#allocation19 + $0x60] sm:$0xff] }
 0xf85   : > { %v4171_v57 = vmul.f32 %v8511_v47, %v8511_v47  ;;  %4409 = vmatprep.subr.mxu0 %v4231_v3  ;;  %4324 = vmatprep.subr.mxu1 %v4221_v13 }
 0xf86   : > { %4410 = vmatpush1.msra.mxu0 %v4230_v39  ;;  %4325 = vmatpush1.msra.mxu1 %v4220_v41  ;;  %v4552_v39 = vld [vmem:[#allocation19 + $0x1e0] sm:$0xff]  ;;  %v4551_v41 = vld [vmem:[#allocation19 + $0x1d8] sm:$0xff] }
 0xf87   : > { %4178 = vadd.xlane.f32.xlu1 %v4171_v57  ;;  %4411 = vmatprep.subr.mxu0 %v4227_v11 }
 0xf88   : > { %4412 = vmatpush1.msra.mxu0 %v4226_v16  ;;  %4326 = vmatprep.subr.mxu1 %v4217_v46  ;;  %v4536_v16 = vld [vmem:[#allocation19 + $0x160] sm:$0xff]  ;;  %v4535_v46 = vld [vmem:[#allocation19 + $0x158] sm:$0xff] }
 0xf89   : > { %4413 = vmatprep.subr.mxu0 %v4223_v59  ;;  %4327 = vmatpush1.msra.mxu1 %v4216_v14  ;;  %v4519_v59 = vld [vmem:[#allocation19 + $0xd8] sm:$0xff]  ;;  %v4550_v14 = vld [vmem:[#allocation19 + $0x1d0] sm:$0xff] }
 0xf8a   : > { %4414 = vmatpush1.msra.mxu0 %v4222_v44  ;;  %4328 = vmatprep.subr.mxu1 %v4213_v55  ;;  %v4534_v55 = vld [vmem:[#allocation19 + $0x150] sm:$0xff] }
 0xf8b   : > { %4415 = vmatprep.subr.mxu0 %v4219_v45  ;;  %4329 = vmatpush1.msra.mxu1 %v4212_v60  ;;  %v4518_v45 = vld [vmem:[#allocation19 + $0xd0] sm:$0xff]  ;;  %v4549_v60 = vld [vmem:[#allocation19 + $0x1c8] sm:$0xff] }
 0xf8c   : > { %4416 = vmatpush1.msra.mxu0 %v4218_v31  ;;  %4451 = vmatprep.mubr.f32.mxu0 %v6887_v42  ;;  %v4502_v31 = vld [vmem:[#allocation19 + $0x50] sm:$0xff] }
 0xf8d   : > { %4417 = vmatprep.subr.mxu0 %v4215_v32  ;;  %5446 = vmatprep.subr.mxu1 %v4523_v18  ;;  %v4517_v32 = vld [vmem:[#allocation19 + $0xc8] sm:$0xff]  ;;  %v4516_v18 = vld [vmem:[#allocation19 + $0xc0] sm:$0xff] }
 0xf8e   : > { %4418 = vmatpush1.msra.mxu0 %v4214_v63  ;;  %v4501_v63 = vld [vmem:[#allocation19 + $0x48] sm:$0xff] }
 0xf8f   : > { %5490 = vmatprep.subr.mxu0 %v4555_v25  ;;  %v4548_v25 = vld [vmem:[#allocation19 + $0x1c0] sm:$0xff] }
0x1000   : > { %v4175_v6 = vpop.xlane.xlu1 %4174 }
0x1001   : > { %v4181_v52 = vmul.f32 0.0078125, %v4175_v6  ;;  %v4500_v6 = vld [vmem:[#allocation19 + $0x40] sm:$0xff] }
0x1002   : > { %v4173_v2 = vpop.xlane.xlu0 %4172 }
0x1003   : > { %v4185_v40 = vadd.f32 1e-05, %v4181_v52  ;;  %v4180_v33 = vmul.f32 0.0078125, %v4173_v2  ;;  %v4532_v52 = vld [vmem:[#allocation19 + $0x140] sm:$0xff]  ;;  %v4515_v2 = vld [vmem:[#allocation19 + $0xb8] sm:$0xff] }
0x1005   : > { %6436 = vrsqrt.f32 %v4185_v40  ;;  %v4184_v37 = vadd.f32 1e-05, %v4180_v33  ;;  %v4547_v40 = vld [vmem:[#allocation19 + $0x1b8] sm:$0xff] }
0x1006   : > { %v4499_v33 = vld [vmem:[#allocation19 + $0x38] sm:$0xff] }
0x1007   : > { %6438 = vrsqrt.f32 %v4184_v37  ;;  %v4531_v37 = vld [vmem:[#allocation19 + $0x138] sm:$0xff] }
0x100c   : > { %v4177_v57 = vpop.xlane.xlu0 %4176 }
0x100d   : > { %v4182_v34 = vmul.f32 0.0078125, %v4177_v57  ;;  %v4514_v57 = vld [vmem:[#allocation19 + $0xb0] sm:$0xff] }
0x100f   : > { %v4186_v53 = vadd.f32 1e-05, %v4182_v34  ;;  %v4546_v34 = vld [vmem:[#allocation19 + $0x1b0] sm:$0xff] }
0x1010   : > { %v4179_v38 = vpop.xlane.xlu1 %4178 }
0x1011   : > { %6440 = vrsqrt.f32 %v4186_v53  ;;  %v4183_v30 = vmul.f32 0.0078125, %v4179_v38  ;;  %v4498_v53 = vld [vmem:[#allocation19 + $0x30] sm:$0xff] }
0x1012   : > { %v6437_v9 = vpop.eup %6436  ;;  %v4530_v38 = vld [vmem:[#allocation19 + $0x130] sm:$0xff] }
0x1013   : > { %v4187_v29 = vadd.f32 1e-05, %v4183_v30  ;;  %v4193_v36 = vmul.f32 %v6437_v9, %v8499_v12  ;;  %v4513_v30 = vld [vmem:[#allocation19 + $0xa8] sm:$0xff] }
0x1014   : > { %v6439_v50 = vpop.eup %6438  ;;  %v4545_v9 = vld [vmem:[#allocation19 + $0x1a8] sm:$0xff] }
0x1015   : > { %v4192_v17 = vmul.f32 %v6439_v50, %v8501_v19  ;;  %6442 = vrsqrt.f32 %v4187_v29  ;;  %v4201_v5 = vmul.f32 %v4199_v7, %v4193_v36  ;;  %v4522_v19 = vld [vmem:[#allocation19 + $0xf0] sm:$0xff]  ;;  %v4497_v29 = vld [vmem:[#allocation19 + $0x28] sm:$0xff]  ;;  %v4496_v36 = vld [vmem:[#allocation19 + $0x20] sm:$0xff] }
0x1016   : > { %v4529_v50 = vld [vmem:[#allocation19 + $0x128] sm:$0xff] }
0x1017   : > { %v4200_v4 = vmul.f32 %v4199_v7, %v4192_v17  ;;  %v8533_v12 = vadd.f32 %v4207_v62, %v4201_v5  ;;  %v4512_v17 = vld [vmem:[#allocation19 + $0xa0] sm:$0xff]  ;;  %v4543_v5 = vld [vmem:[#allocation19 + $0x198] sm:$0xff] }
0x1019   : > { %v8527_v24 = vadd.f32 %v4207_v62, %v4200_v4  ;;  %v4528_v4 = vld [vmem:[#allocation19 + $0x120] sm:$0xff] }
0x101b   : > { %4363 = vmatmul.mubr.f32.vlgmr.msra.gmra.mxu1 %v8527_v24  ;;  %4452 = vmatmul.mubr.f32.vlgmr.msra.gmra.mxu0 %v8527_v24 }
0x101c   : > { %4368 = vmatprep.mubr.f32.mxu1 %v6887_v42  ;;  %4457 = vmatprep.mubr.f32.mxu0 %v6887_v42 }
0x101d   : > { %5447 = vmatpush3.msra.mxu1 %v4507_v56  ;;  %5491 = vmatpush3.msra.mxu0 %v4539_v8  ;;  %v4495_v56 = vld [vmem:[#allocation19 + $0x18] sm:$0xff] }
0x101e   : > { %v6441_v27 = vpop.eup %6440  ;;  %5448 = vmatprep.subr.mxu1 %v4522_v19  ;;  %5492 = vmatprep.subr.mxu0 %v4554_v49  ;;  %v4527_v8 = vld [vmem:[#allocation19 + $0x118] sm:$0xff]  ;;  %v4510_v19 = vld [vmem:[#allocation19 + $0x90] sm:$0xff] }
0x101f   : > { %4369 = vmatmul.mubr.f32.gmra.mxu1 %v8533_v12  ;;  %4458 = vmatmul.mubr.f32.gmra.mxu0 %v8533_v12  ;;  %v4194_v61 = vmul.f32 %v6441_v27, %v8507_v48  ;;  %v4542_v49 = vld [vmem:[#allocation19 + $0x190] sm:$0xff] }
0x1020   : > { %4374 = vmatprep.mubr.f32.mxu1 %v6887_v42  ;;  %4463 = vmatprep.mubr.f32.mxu0 %v6887_v42  ;;  %v4494_v27 = vld [vmem:[#allocation19 + $0x10] sm:$0xff] }
0x1021   : > { %v4202_v3 = vmul.f32 %v4199_v7, %v4194_v61  ;;  %5449 = vmatpush3.msra.mxu1 %v4506_v58  ;;  %5493 = vmatpush3.msra.mxu0 %v4538_v10  ;;  %v4526_v58 = vld [vmem:[#allocation19 + $0x110] sm:$0xff]  ;;  %v4509_v10 = vld [vmem:[#allocation19 + $0x88] sm:$0xff] }
0x1022   : > { %v6443_v26 = vpop.eup %6442  ;;  %5450 = vmatprep.subr.mxu1 %v4521_v51  ;;  %5494 = vmatprep.subr.mxu0 %v4553_v43  ;;  %v4541_v61 = vld [vmem:[#allocation19 + $0x188] sm:$0xff] }
0x1023   : > { %v8540_v11 = vadd.f32 %v4207_v62, %v4202_v3  ;;  %v4195_v48 = vmul.f32 %v6443_v26, %v8511_v47  ;;  %5451 = vmatpush3.msra.mxu1 %v4505_v23  ;;  %5495 = vmatpush3.msra.mxu0 %v4537_v1  ;;  %v4503_v47 = vld [vmem:[#allocation19 + $0x58] sm:$0xff]  ;;  %v4493_v51 = vld [vmem:[#allocation19 + $0x8] sm:$0xff]  ;;  %v4508_v23 = vld [vmem:[#allocation19 + $0x80] sm:$0xff] }
0x1024   : > { %5452 = vmatprep.subr.mxu1 %v4520_v54  ;;  %5496 = vmatprep.subr.mxu0 %v4552_v39  ;;  %v4525_v43 = vld [vmem:[#allocation19 + $0x108] sm:$0xff]  ;;  %v4540_v1 = vld [vmem:[#allocation19 + $0x180] sm:$0xff] }
0x1025   : > { %4375 = vmatmul.mubr.f32.gmra.mxu1 %v8540_v11  ;;  %4464 = vmatmul.mubr.f32.gmra.mxu0 %v8540_v11  ;;  %v4203_v13 = vmul.f32 %v4199_v7, %v4195_v48  ;;  %v4544_v7 = vld [vmem:[#allocation19 + $0x1a0] sm:$0xff] }
0x1026   : > { %4380 = vmatprep.mubr.f32.mxu1 %v6887_v42  ;;  %4469 = vmatprep.mubr.f32.mxu0 %v6887_v42  ;;  %v4533_v42 = vld [vmem:[#allocation19 + $0x148] sm:$0xff]  ;;  %v4492_v3 = vld [vmem:[#allocation19] sm:$0xff] }
0x1027   : > { %v8547_v44 = vadd.f32 %v4207_v62, %v4203_v13  ;;  %5453 = vmatpush3.msra.mxu1 %v4504_v21  ;;  %5497 = vmatpush3.msra.mxu0 %v4536_v16  ;;  %v4511_v62 = vld [vmem:[#allocation19 + $0x98] sm:$0xff]  ;;  %v4524_v54 = vld [vmem:[#allocation19 + $0x100] sm:$0xff] }
0x1028   : > { %5454 = vmatprep.subr.mxu1 %v4519_v59  ;;  %5498 = vmatprep.subr.mxu0 %v4551_v41  ;;  %v4276_v39 = vld [vmem:[%s8717_s15] sm:$0xf]  ;;  %s6888_s15 = smov [#allocation21]  }
0x1029   : > { %4381 = vmatmul.mubr.f32.gmra.mxu1 %v8547_v44  ;;  %4470 = vmatmul.mubr.f32.gmra.mxu0 %v8547_v44  ;;  %v4281_v26 = vrot.slane %v4276_v39, %v2684_v15  ;;  %v4289_v48 = vrot.slane %v4276_v39, %v4198_v22  ;;  %v4285_v21 = vrot.slane %v4276_v39, %v2692_v20  ;;  %s6724_s9 = sshll.u32 %s6888_s15, 4  ;;  %s6725_s9 = int_to_ptr.vmem [resolvable:$false] %s6724_s9 }
0x102a   : > { %5455 = vmatpush3.msra.mxu1 %v4503_v47  ;;  %5499 = vmatpush3.msra.mxu0 %v4535_v46  ;;  %v4293_v16 = vrot.slane %v4276_v39, %v4206_v28  ;;  %s6726_s23 = scalar_lea.vmem %s6725_s9, 1024  ;;  %p6727_p7 = scmp.lt.s32.totalorder %s8584_s7, %s6725_s9 }
0x102b   : > { %5456 = vmatprep.subr.mxu1 %v4518_v45  ;;  %5500 = vmatprep.subr.mxu0 %v4550_v14  ;;  %p6728_p9 = scmp.lt.s32.totalorder %s6726_s23, %s6720_s11 }
0x102c   : > { %5457 = vmatpush3.msra.mxu1 %v4502_v31  ;;  %5501 = vmatpush3.msra.mxu0 %v4534_v55 }
0x102d   : > { %5458 = vmatprep.subr.mxu1 %v4517_v32  ;;  %5502 = vmatprep.subr.mxu0 %v4549_v60  ;;  %p6729_p10 = por %p6728_p9, %p6727_p7 }
0x102e   : > { %5459 = vmatpush3.msra.mxu1 %v4501_v63  ;;  %5503 = vmatpush3.msra.mxu0 %v4533_v42 }
0x102f   : > { %5460 = vmatprep.subr.mxu1 %v4516_v18  ;;  %5504 = vmatprep.subr.mxu0 %v4548_v25  ;;  %p6730_p4 = pnand %p6729_p10, %p6723_p5 }
0x1030   : > { %5461 = vmatpush3.msra.mxu1 %v4500_v6  ;;  %5505 = vmatpush3.msra.mxu0 %v4532_v52 }
0x1031   : > { %5462 = vmatprep.subr.mxu1 %v4515_v2  ;;  %5506 = vmatprep.subr.mxu0 %v4547_v40 }
0x1032   : > { %5463 = vmatpush3.msra.mxu1 %v4499_v33  ;;  %5507 = vmatpush3.msra.mxu0 %v4531_v37 }
0x1033   : > { %5464 = vmatprep.subr.mxu1 %v4514_v57  ;;  %5508 = vmatprep.subr.mxu0 %v4546_v34 }
0x1034   : > { %5465 = vmatpush3.msra.mxu1 %v4498_v53  ;;  %5509 = vmatpush3.msra.mxu0 %v4530_v38 }
0x1035   : > { %5466 = vmatprep.subr.mxu1 %v4513_v30  ;;  %5510 = vmatprep.subr.mxu0 %v4545_v9 }
0x1036   : > { %5467 = vmatpush3.msra.mxu1 %v4497_v29  ;;  %5511 = vmatpush3.msra.mxu0 %v4529_v50 }
0x1037   : > { %5468 = vmatprep.subr.mxu1 %v4512_v17  ;;  %5512 = vmatprep.subr.mxu0 %v4544_v7 }
0x1038   : > { %5469 = vmatpush3.msra.mxu1 %v4496_v36  ;;  %5513 = vmatpush3.msra.mxu0 %v4528_v4 }
0x1039   : > { %5470 = vmatprep.subr.mxu1 %v4511_v62  ;;  %5514 = vmatprep.subr.mxu0 %v4543_v5 }
0x103a   : > { %5471 = vmatpush3.msra.mxu1 %v4495_v56  ;;  %5515 = vmatpush3.msra.mxu0 %v4527_v8 }
0x103b   : > { %5472 = vmatprep.subr.mxu1 %v4510_v19  ;;  %5516 = vmatprep.subr.mxu0 %v4542_v49 }
0x103c   : > { %5473 = vmatpush3.msra.mxu1 %v4494_v27  ;;  %5517 = vmatpush3.msra.mxu0 %v4526_v58 }
0x103d   : > { %5474 = vmatprep.subr.mxu1 %v4509_v10  ;;  %5518 = vmatprep.subr.mxu0 %v4541_v61 }
0x103e   : > { %5475 = vmatpush3.msra.mxu1 %v4493_v51  ;;  %5519 = vmatpush3.msra.mxu0 %v4525_v43 }
0x103f   : > { %5476 = vmatprep.subr.mxu1 %v4508_v23  ;;  %5520 = vmatprep.subr.mxu0 %v4540_v1  ;;  %v5165_v1 = vld [vmem:[%s8718_s20] ss:$0 sm:$0xff] }
0x1040   : > { %5477 = vmatpush3.msra.mxu1 %v4492_v3  ;;  %5521 = vmatpush3.msra.mxu0 %v4524_v54 }
0x10db   : > { %v4364_v13 = vpop.f32.mrf.mxu1  ;;  %v4453_v59 = vpop.f32.mrf.mxu0 }
0x10dc   : > { %v4365_v41 = vadd.f32 %v4364_v13, %v4281_v26  ;;  %v4454_v47 = vadd.f32 %v4453_v59, %v4289_v48 }
0x10dd   : > { %v4366_v46 = vpop.f32.mrf.mxu1  ;;  %v4455_v45 = vpop.f32.mrf.mxu0 }
0x10de   : > { %v4367_v14 = vadd.f32 %v4366_v46, %v4285_v21  ;;  %v4456_v31 = vadd.f32 %v4455_v45, %v4293_v16  ;;  %v4476_v63 = vmax.f32 %v4365_v41, 0.0  ;;  %v4478_v22 = vmax.f32 %v4454_v47, 0.0 }
0x10df   : > { %v4370_v55 = vpop.f32.mrf.mxu1  ;;  %v4459_v32 = vpop.f32.mrf.mxu0 }
0x10e0   : > { %v4477_v15 = vmax.f32 %v4367_v14, 0.0  ;;  %v4479_v60 = vmax.f32 %v4456_v31, 0.0  ;;  %v4371_v42 = vadd.f32 %v4370_v55, %v4281_v26  ;;  %v4460_v18 = vadd.f32 %v4459_v32, %v4289_v48 }
0x10e1   : > { %v4372_v20 = vpop.f32.mrf.mxu1  ;;  %v4461_v25 = vpop.f32.mrf.mxu0 }
0x10e2   : > { %v4373_v6 = vadd.f32 %v4372_v20, %v4285_v21  ;;  %v4462_v28 = vadd.f32 %v4461_v25, %v4293_v16  ;;  %4627 = vmatprep.mubr.f32.mxu1 %v4477_v15  ;;  %4712 = vmatprep.mubr.f32.mxu0 %v4479_v60  ;;  %v4480_v40 = vmax.f32 %v4371_v42, 0.0  ;;  %v4482_v33 = vmax.f32 %v4460_v18, 0.0 }
0x10e3   : > { %4628 = vmatmul.mubr.f32.vlgmr.msra.gmra.mxu1 %v4476_v63  ;;  %4713 = vmatmul.mubr.f32.vlgmr.msra.gmra.mxu0 %v4478_v22 }
0x10e4   : > { %v4481_v52 = vmax.f32 %v4373_v6, 0.0  ;;  %v4483_v2 = vmax.f32 %v4462_v28, 0.0 }
0x10e5   : > { %v4376_v37 = vpop.f32.mrf.mxu1  ;;  %v4465_v57 = vpop.f32.mrf.mxu0 }
0x10e6   : > { %4632 = vmatprep.mubr.f32.mxu1 %v4481_v52  ;;  %4717 = vmatprep.mubr.f32.mxu0 %v4483_v2  ;;  %v4377_v34 = vadd.f32 %v4376_v37, %v4281_v26  ;;  %v4466_v53 = vadd.f32 %v4465_v57, %v4289_v48 }
0x10e7   : > { %v4378_v38 = vpop.f32.mrf.mxu1  ;;  %v4467_v30 = vpop.f32.mrf.mxu0  ;;  %4633 = vmatmul.mubr.f32.gmra.mxu1 %v4480_v40  ;;  %4718 = vmatmul.mubr.f32.gmra.mxu0 %v4482_v33 }
0x10e8   : > { %v4379_v9 = vadd.f32 %v4378_v38, %v4285_v21  ;;  %v4468_v29 = vadd.f32 %v4467_v30, %v4293_v16  ;;  %v4484_v4 = vmax.f32 %v4377_v34, 0.0  ;;  %v4486_v62 = vmax.f32 %v4466_v53, 0.0 }
0x10e9   : > { %v4382_v50 = vpop.f32.mrf.mxu1  ;;  %v4471_v17 = vpop.f32.mrf.mxu0 }
0x10ea   : > { %v4485_v7 = vmax.f32 %v4379_v9, 0.0  ;;  %v4487_v36 = vmax.f32 %v4468_v29, 0.0  ;;  %v4383_v5 = vadd.f32 %v4382_v50, %v4281_v26  ;;  %v4472_v56 = vadd.f32 %v4471_v17, %v4289_v48 }
0x10eb   : > { %v4384_v8 = vpop.f32.mrf.mxu1  ;;  %v4473_v19 = vpop.f32.mrf.mxu0 }
0x10ec   : > { %v4385_v49 = vadd.f32 %v4384_v8, %v4285_v21  ;;  %v4474_v27 = vadd.f32 %v4473_v19, %v4293_v16  ;;  %4637 = vmatprep.mubr.f32.mxu1 %v4485_v7  ;;  %4722 = vmatprep.mubr.f32.mxu0 %v4487_v36  ;;  %v4488_v61 = vmax.f32 %v4383_v5, 0.0  ;;  %v4490_v51 = vmax.f32 %v4472_v56, 0.0 }
0x10ed   : > { %4638 = vmatmul.mubr.f32.gmra.mxu1 %v4484_v4  ;;  %4723 = vmatmul.mubr.f32.gmra.mxu0 %v4486_v62 }
0x10ee   : > { %v4489_v58 = vmax.f32 %v4385_v49, 0.0  ;;  %v4491_v10 = vmax.f32 %v4474_v27, 0.0 }
0x10f0   : > { %4642 = vmatprep.mubr.f32.mxu1 %v4489_v58  ;;  %4727 = vmatprep.mubr.f32.mxu0 %v4491_v10 }
0x10f1   : > { %4643 = vmatmul.mubr.f32.gmra.mxu1 %v4488_v61  ;;  %4728 = vmatmul.mubr.f32.gmra.mxu0 %v4490_v51  ;;  %v4783_v51 = vsub.s32 4, %v7606_v35 }
0x11a3   : > { %v5478_v43 = vpop.f32.mrf.mxu1  ;;  %v5522_v23 = vpop.f32.mrf.mxu0 }
0x11a5   : > { %v5479_v3 = vpop.f32.mrf.mxu1  ;;  %v5523_v54 = vpop.f32.mrf.mxu0 }
0x11a6   : > { %v5480_v39 = vadd.f32 %v5479_v3, %v5478_v43  ;;  %v5524_v16 = vadd.f32 %v5523_v54, %v5522_v23  ;;  %v4784_v54 = vrot.slane %v7244_v0, %v4783_v51 }
0x11a7   : > { %v5481_v26 = vpop.f32.mrf.mxu1  ;;  %v5525_v48 = vpop.f32.mrf.mxu0 }
0x11a8   : > { %v4630_v21 = vadd.f32 %v5480_v39, %v5165_v1 }
0x11a9   : > { %v5482_v13 = vpop.f32.mrf.mxu1  ;;  %v5526_v59 = vpop.f32.mrf.mxu0 }
0x11aa   : > { %v4715_v41 = vadd.f32 %v5524_v16, %v4630_v21  ;;  %v5483_v47 = vadd.f32 %v5482_v13, %v5481_v26  ;;  %v5527_v45 = vadd.f32 %v5526_v59, %v5525_v48 }
0x11ac   : > { %v4635_v46 = vadd.f32 %v5483_v47, %v5165_v1  ;;  %v4733_v14 = vadd.f32 %v4715_v41, %v8527_v24 }
0x11ad   : > { %v5484_v31 = vpop.f32.mrf.mxu1  ;;  %v5528_v55 = vpop.f32.mrf.mxu0 }
0x11ae   : > { %v4720_v32 = vadd.f32 %v5527_v45, %v4635_v46  ;;  %4737 = vadd.xlane.f32.xlu0 %v4733_v14 }
0x11af   : > { %v5485_v15 = vpop.f32.mrf.mxu1  ;;  %v5529_v60 = vpop.f32.mrf.mxu0 }
0x11b0   : > { %v5486_v63 = vadd.f32 %v5485_v15, %v5484_v31  ;;  %v4734_v22 = vadd.f32 %v4720_v32, %v8533_v12  ;;  %v5530_v25 = vadd.f32 %v5529_v60, %v5528_v55 }
0x11b1   : > { %v5487_v42 = vpop.f32.mrf.mxu1  ;;  %v5531_v18 = vpop.f32.mrf.mxu0 }
0x11b2   : > { %v4640_v20 = vadd.f32 %v5486_v63, %v5165_v1  ;;  %4739 = vadd.xlane.f32.xlu1 %v4734_v22 }
0x11b3   : > { %v5488_v6 = vpop.f32.mrf.mxu1  ;;  %v5532_v28 = vpop.f32.mrf.mxu0 }
0x11b4   : > { %v4725_v52 = vadd.f32 %v5530_v25, %v4640_v20  ;;  %v5489_v2 = vadd.f32 %v5488_v6, %v5487_v42  ;;  %v5533_v24 = vadd.f32 %v5532_v28, %v5531_v18 }
0x11b6   : > { %v4645_v40 = vadd.f32 %v5489_v2, %v5165_v1  ;;  %v4735_v33 = vadd.f32 %v4725_v52, %v8540_v11  ;;  %v4791_v1 = vsub.s32 5, %v7606_v35 }
0x11b8   : > { %v4730_v37 = vadd.f32 %v5533_v24, %v4645_v40  ;;  %4741 = vadd.xlane.f32.xlu0 %v4735_v33  ;;  %v4792_v48 = vrot.slane %v7244_v0, %v4791_v1 }
0x11ba   : > { %v4736_v57 = vadd.f32 %v4730_v37, %v8547_v44 }
0x11bc   : > { %4743 = vadd.xlane.f32.xlu1 %v4736_v57 }
0x1237   : > { %v4738_v34 = vpop.xlane.xlu0 %4737 }
0x1238   : > { %v4745_v12 = vmul.f32 0.0078125, %v4738_v34 }
0x123a   : > { %v4749_v53 = vsub.f32 %v4733_v14, %v4745_v12 }
0x123b   : > { %v4740_v38 = vpop.xlane.xlu1 %4739 }
0x123c   : > { %v4746_v30 = vmul.f32 0.0078125, %v4740_v38  ;;  %v4753_v9 = vmul.f32 %v4749_v53, %v4749_v53 }
0x123e   : > { %v4750_v29 = vsub.f32 %v4734_v22, %v4746_v30  ;;  %4757 = vadd.xlane.f32.xlu0 %v4753_v9 }
0x1240   : > { %v4754_v50 = vmul.f32 %v4750_v29, %v4750_v29 }
0x1241   : > { %v4742_v17 = vpop.xlane.xlu0 %4741 }
0x1242   : > { %v4747_v7 = vmul.f32 0.0078125, %v4742_v17  ;;  %4759 = vadd.xlane.f32.xlu1 %v4754_v50 }
0x1244   : > { %v4751_v36 = vsub.f32 %v4735_v33, %v4747_v7 }
0x1245   : > { %v4744_v4 = vpop.xlane.xlu1 %4743 }
0x1246   : > { %v4748_v11 = vmul.f32 0.0078125, %v4744_v4  ;;  %v4755_v62 = vmul.f32 %v4751_v36, %v4751_v36 }
0x1248   : > { %v4752_v5 = vsub.f32 %v4736_v57, %v4748_v11  ;;  %4761 = vadd.xlane.f32.xlu0 %v4755_v62 }
0x124a   : > { %v4756_v44 = vmul.f32 %v4752_v5, %v4752_v5 }
0x124c   : > { %4763 = vadd.xlane.f32.xlu1 %v4756_v44 }
0x12c7   : > { %v4758_v56 = vpop.xlane.xlu0 %4757 }
0x12c8   : > { %v4765_v8 = vmul.f32 0.0078125, %v4758_v56 }
0x12ca   : > { %v4769_v19 = vadd.f32 1e-05, %v4765_v8 }
0x12cb   : > { %v4760_v49 = vpop.xlane.xlu1 %4759 }
0x12cc   : > { %6444 = vrsqrt.f32 %v4769_v19  ;;  %v4766_v27 = vmul.f32 0.0078125, %v4760_v49 }
0x12ce   : > { %v4770_v58 = vadd.f32 1e-05, %v4766_v27 }
0x12d0   : > { %6446 = vrsqrt.f32 %v4770_v58 }
0x12d1   : > { %v4762_v10 = vpop.xlane.xlu0 %4761 }
0x12d2   : > { %v4767_v61 = vmul.f32 0.0078125, %v4762_v10 }
0x12d4   : > { %v4771_v43 = vadd.f32 1e-05, %v4767_v61 }
0x12d5   : > { %v4764_v23 = vpop.xlane.xlu1 %4763 }
0x12d6   : > { %6448 = vrsqrt.f32 %v4771_v43  ;;  %v4768_v3 = vmul.f32 0.0078125, %v4764_v23 }
0x12d8   : > { %v4772_v39 = vadd.f32 1e-05, %v4768_v3 }
0x12d9   : > { %v6445_v26 = vpop.eup %6444 }
0x12da   : > { %v4777_v21 = vmul.f32 %v6445_v26, %v4749_v53  ;;  %6450 = vrsqrt.f32 %v4772_v39 }
0x12dc   : > { %v4785_v16 = vmul.f32 %v4784_v54, %v4777_v21 }
0x12dd   : > { %v6447_v13 = vpop.eup %6446 }
0x12de   : > { %v4793_v59 = vadd.f32 %v4792_v48, %v4785_v16  ;;  %v4778_v41 = vmul.f32 %v6447_v13, %v4750_v29 }
0x12e0   : > { %4797 = vst [vmem:[%s7246_s10] sm:$0xff] %v4793_v59  ;;  %v4786_v35 = vmul.f32 %v4784_v54, %v4778_v41 }
0x12e2   : > { %v4794_v47 = vadd.f32 %v4792_v48, %v4786_v35 }
0x12e3   : > { %v6449_v46 = vpop.eup %6448 }
0x12e4   : > { %4798 = vst [vmem:[%s7246_s10 + $0x8] sm:$0xff] %v4794_v47  ;;  %v4779_v45 = vmul.f32 %v6449_v46, %v4751_v36 }
0x12e6   : > { %v4787_v0 = vmul.f32 %v4784_v54, %v4779_v45 }
0x12e7   : > { %v6451_v14 = vpop.eup %6450 }
0x12e8   : > { %v4795_v31 = vadd.f32 %v4792_v48, %v4787_v0  ;;  %v4780_v55 = vmul.f32 %v6451_v14, %v4752_v5 }
0x12ea   : > { %4799 = vst [vmem:[%s7246_s10 + $0x10] sm:$0xff] %v4795_v31  ;;  %v4788_v32 = vmul.f32 %v4784_v54, %v4780_v55 }
0x12ec   : > { %v4796_v15 = vadd.f32 %v4792_v48, %v4788_v32 }
0x12ee   : > { %4800 = vst [vmem:[%s7246_s10 + $0x18] sm:$0xff] %v4796_v15 }
0x12ef   : > { %6733 = shalt.err (!%p6730_p4)
}
0x12f0   : > { %s6734_s13 = scalar_lea.hbm %s8582_s3, 512  ;;  %s6738_s8 = scalar_lea.hbm %s8720_s22, 2048 }
0x12f1   : > { %p6735_p11 = scmp.ne.s32.totalorder %s8582_s3, %s6734_s13  ;;  %p6739_p13 = scmp.lt.s32.totalorder %s8582_s3, %s8720_s22 }
0x12f2   : > { %p6740_p3 = scmp.lt.s32.totalorder %s6738_s8, %s6734_s13 }
0x12f3   : > { %p6736_p6 = pnand %p6735_p11, %p7149_p12 }
0x12f4   : > { %p6741_p1 = por %p6740_p3, %p6739_p13 }
0x12f5   : > { %p6737_p0 = pneg %p6736_p6 }
0x12f7   : > { %p6742_p8 = pnand %p6741_p1, %p6737_p0 }
0x12f9   : > { %6745 = shalt.err (!%p6742_p8)
}
0x12fa   : > { %s6889_s19 = smov 128   ;;  %s6890_s28 = smov 8  }
0x12fb   : > { %6074 = dma.vmem_to_hbm [thread:$0]  (%p7149_p12), %s8584_s7, 512, %s8582_s3, %s8589_s5, %s6889_s19, %s6889_s19, %s6890_s28  }
0x12fc PF: > { %p6129_p5 = scmp.ge.s32.totalorder %s6864_s18, 2  ;;  %s4832_s17 = sand.u32 1, %s6824_s25  }
0x12fd   : > { %s4833_s2 = scalar_lea.sflag [#allocation6], %s4832_s17 }
0x12fe   : > { %p6109_p7 = pnand %p6129_p5, %p7163_p2 }
0x1300   : > { %p6110_p9 = pneg %p6109_p7 }
0x1302   : > { %6819 = dma.done.wait (%p6110_p9), %s4833_s2, 512  }
0x1303   : > { %6821 = vsyncadd (%p6110_p9), %s4833_s2, 4294966784  ;;  %s36_s18 = sadd.s32 1, %s6864_s18   ;;  %s8721_s15 = sld [smem:[#allocation32_spill]] }
0x1304   : > { %p33_p10 = scmp.ge.s32.totalorder %s36_s18, 6   ;;  %s8722_s24 = sld [smem:[#allocation34_spill]] }
0x1305   : > { %s8723_s17 = sld [smem:[#allocation35_spill]]  ;;  %s8724_s25 = smov %s6828_s26 }
0x1306   : > { %s8725_s26 = smov %s6832_s27  ;;  %s8726_s27 = smov %s7157_s4 }
0x1307   : > { %s8727_s28 = smov %s6840_s29  ;;  %s8728_s29 = smov %s6844_s30 }
0x1308   : > { %s8729_s30 = smov %s7154_s14  ;;  %s8730_s14 = smov %s6856_s16 }
0x1309   :  { %35 = sbr.rel (!%p33_p10) target bundleno = 28 (0x1c), region = 167 }
0x130a   : > { %s8731_s16 = smov %s8722_s24 }
0x130e   :  { %4838 = vsyncpa [#allocation5], 1 }
0x130f   :  { %4840 = vsyncpa [#allocation5 + $0x1], 1 }
0x1310   :  { %4841 = vsyncpa [#allocation8], 1 }
0x1311   :  { %4843 = vsyncpa [#allocation8 + $0x1], 1 }
0x1312   :  { %4844 = vsyncpa [#allocation11], 1 }
0x1313   :  { %4845 = vsyncpa [#allocation14], 1 }
0x1314   :  { %4846 = vsyncpa [#allocation17], 1 }
0x1315   :  { %4847 = vsyncpa [#allocation20], 1 }
0x1316   :  { %4848 = vsyncpa [#allocation6], 1 }
0x1317   :  { %4850 = vsyncpa [#allocation6 + $0x1], 1 }

</bundles_post_ra>
